<compile_context>
chip_gen: v7x
topology: tpu7x:2x2x1
jax: 0.10.0
libtpu: 0.0.40
codegen_flags: <defaults>
</compile_context>

<pallas_src>
import jax
import jax.numpy as jnp
from jax.experimental import pallas as pl
from jax.experimental.pallas import tpu as pltpu


# ----------------------------- Pallas kernels ------------------------------

def _pooled_conv_relu(p_ref, w_ref, b_ref):
    """relu(maxpool2x2(conv3x3 + bias)) for one row block.

    p_ref : (4*tm, 9*Cin) bf16 -- the four pool-corner im2col slabs stacked along rows
            (corner c occupies rows [c*tm, (c+1)*tm)).
    w_ref : (9*Cin, Cout) bf16 -- conv weight, (kh, kw, cin)-major rows.
    b_ref : (1, Cout) f32.
    Returns the pooled activation, (tm, Cout) f32.
    """
    tm = p_ref.shape[0] // 4
    # One MXU matmul covers all four corners (RHS stays staged; 4x longer M amortizes fill/drain).
    y = jnp.dot(p_ref[...], w_ref[...], preferred_element_type=jnp.float32)   # (4*tm, Cout) f32
    # 2x2 max-pool == elementwise max over the four corner slices (8-aligned sublane slices).
    y = jnp.maximum(jnp.maximum(y[:tm], y[tm:2 * tm]),
                    jnp.maximum(y[2 * tm:3 * tm], y[3 * tm:]))
    # Bias is identical across the corners and ReLU is monotone, so +bias / relu commute with the
    # pool max -> apply them once, after it.
    return jnp.maximum(y + b_ref[...], 0.0)


def _conv_pool_kernel(p_ref, w_ref, b_ref, o_ref):
    o_ref[...] = _pooled_conv_relu(p_ref, w_ref, b_ref).astype(o_ref.dtype)


def _conv_pool_fc_kernel(p_ref, w_ref, b_ref, fw_ref, fb_ref, o_ref):
    # Pooled spatial is 1x1 here, so `feat` is already the flattened (tm, 256) feature matrix.
    feat = _pooled_conv_relu(p_ref, w_ref, b_ref)
    # TODO(synk): nn.Dropout(0.5) is identity in eval mode; training-mode dropout not implemented.
    logits = jnp.dot(feat, fw_ref[...], preferred_element_type=jnp.float32)
    o_ref[...] = (logits + fb_ref[...]).astype(o_ref.dtype)


# ----------------------- Tiling and im2col glue (XLA) ------------------------

_SLAB_BYTES_CAP = 6 * 1024 * 1024   # per-buffer cap for the stacked slab block (x2 double buffer)
_VMEM_LIMIT = 32 * 1024 * 1024      # explicit scoped-VMEM budget (v5e's default is only 16 MiB)


def _round_up(x, m):
    return ((x + m - 1) // m) * m


def _pick_tm(rows, k, itemsize=2):
    """Rows per output block: aim for >=2 grid steps (v7x megacore), multiple of 8, and small
    enough that the (4*tm, k) slab double-buffer stays within ~12 MB."""
    cap = max(256, min(4096, _SLAB_BYTES_CAP // (4 * k * itemsize)))
    tm = min(-(-rows // 2), cap)
    return max(8, _round_up(tm, 8))


def _corner_slab(x, tm):
    """x: (B, H, W, C) NHWC -> interleaved pool-corner im2col slab of shape (nb*4*tm, 9*C).

    Block i (rows [i*4*tm, (i+1)*4*tm)) holds, for the tm pooled output rows [i*tm, (i+1)*tm),
    the conv3x3 patches of all four 2x2-pool-window corners, corner-major:
        slab[(i*4 + c)*tm + rr, (kh*3 + kw)*C + ci] = x[b, 2*hp + r + kh, 2*wp + s + kw, ci]
    with c = 2*r + s and (b, hp, wp) the pooled position of global row i*tm + rr.
    Pure XLA gather glue; fuses into a single pass emitting one bf16 slab per layer.
    """
    B, H, W, C = x.shape
    Hp, Wp = (H - 2) // 2, (W - 2) // 2
    R = B * Hp * Wp
    K = 9 * C
    corners = []
    for r in range(2):
        for s in range(2):
            parts = [x[:, r + kh: r + kh + 2 * Hp: 2, s + kw: s + kw + 2 * Wp: 2, :]
                     for kh in range(3) for kw in range(3)]
            p = jnp.concatenate(parts, axis=-1)                   # (B, Hp, Wp, 9*C)
            corners.append(p.reshape(R, K))
    slab = jnp.stack(corners, axis=0)                             # (4, R, K)
    nb = -(-R // tm)                                              # cdiv
    r_pad = nb * tm
    if r_pad != R:
        # Padded tail rows are computed on zeros but never read back (sliced off below).
        slab = jnp.pad(slab, ((0, 0), (0, r_pad - R), (0, 0)))
    slab = slab.reshape(4, nb, tm, K).transpose(1, 0, 2, 3).reshape(nb * 4 * tm, K)
    return slab, (B, Hp, Wp, R, nb)


# --------------------------- Fused layer wrappers ---------------------------

def conv_pool(x, w2, b2, out_dtype=jnp.bfloat16):
    """Fused conv3x3(valid) + bias + ReLU + maxpool2x2 on NHWC input; one pallas_call."""
    K, cout = w2.shape
    B, H, W, _ = x.shape
    tm = _pick_tm(B * ((H - 2) // 2) * ((W - 2) // 2), K)
    slab, (B, Hp, Wp, R, nb) = _corner_slab(x.astype(w2.dtype), tm)
    out = pl.pallas_call(
        _conv_pool_kernel,
        out_shape=jax.ShapeDtypeStruct((nb * tm, cout), out_dtype),
        grid=(nb,),
        in_specs=[pl.BlockSpec((4 * tm, K), lambda i: (i, 0)),
                  pl.BlockSpec((K, cout), lambda i: (0, 0)),
                  pl.BlockSpec((1, cout), lambda i: (0, 0))],
        out_specs=pl.BlockSpec((tm, cout), lambda i: (i, 0)),
        compiler_params=pltpu.CompilerParams(
            dimension_semantics=("parallel",), vmem_limit_bytes=_VMEM_LIMIT),
    )(slab, w2, b2)
    return out[:R].reshape(B, Hp, Wp, cout)


def conv_pool_fc(x, w2, b2, fw, fb):
    """Last conv stage fused with flatten + dropout(eval) + fc; returns (B, num_classes) f32."""
    K, cout = w2.shape
    nout = fw.shape[1]
    B, H, W, _ = x.shape
    assert (H - 2) // 2 == 1 and (W - 2) // 2 == 1, "fc fusion assumes pooled spatial size 1x1"
    tm = _pick_tm(B, K)
    slab, (_, _, _, R, nb) = _corner_slab(x.astype(w2.dtype), tm)
    out = pl.pallas_call(
        _conv_pool_fc_kernel,
        out_shape=jax.ShapeDtypeStruct((nb * tm, nout), jnp.float32),
        grid=(nb,),
        in_specs=[pl.BlockSpec((4 * tm, K), lambda i: (i, 0)),
                  pl.BlockSpec((K, cout), lambda i: (0, 0)),
                  pl.BlockSpec((1, cout), lambda i: (0, 0)),
                  pl.BlockSpec((cout, nout), lambda i: (0, 0)),
                  pl.BlockSpec((1, nout), lambda i: (0, 0))],
        out_specs=pl.BlockSpec((tm, nout), lambda i: (i, 0)),
        compiler_params=pltpu.CompilerParams(
            dimension_semantics=("parallel",), vmem_limit_bytes=_VMEM_LIMIT),
    )(slab, w2, b2, fw, fb)
    return out[:R]


# ------------------------------ Model wrapper --------------------------------

def init_params(key):
    """PyTorch-default-style init; weights pre-laid-out for the kernels (hoisted out of forward)."""
    def _uniform(k, shape, bound):
        return jax.random.uniform(k, shape, jnp.float32, -bound, bound)

    def conv_init(k, cout, cin, ksz):
        kw_, kb_ = jax.random.split(k)
        bound = 1.0 / (cin * ksz * ksz) ** 0.5
        return _uniform(kw_, (cout, cin, ksz, ksz), bound), _uniform(kb_, (cout,), bound)

    def linear_init(k, out_f, in_f):
        kw_, kb_ = jax.random.split(k)
        bound = 1.0 / in_f ** 0.5
        return _uniform(kw_, (out_f, in_f), bound), _uniform(kb_, (out_f,), bound)

    k1, k2, k3, k4, k5 = jax.random.split(key, 5)
    convs_torch = [conv_init(k1, 32, 1, 3), conv_init(k2, 64, 32, 3),
                   conv_init(k3, 128, 64, 3), conv_init(k4, 256, 128, 3)]
    fc_w, fc_b = linear_init(k5, 10, 256)

    convs = []
    for w, b in convs_torch:
        cout, cin, kh, kw = w.shape
        # torch (Cout, Cin, 3, 3) -> (kh, kw, cin, cout) -> (9*Cin, Cout), matching patch order.
        w2 = jnp.transpose(w, (2, 3, 1, 0)).reshape(kh * kw * cin, cout)
        convs.append((w2.astype(jnp.bfloat16), b.reshape(1, cout).astype(jnp.float32)))
    # fc stays f32: it is tiny and keeps the logits close to a float32 PyTorch reference.
    fc = (fc_w.T.astype(jnp.float32), fc_b.reshape(1, -1).astype(jnp.float32))
    return {"convs": convs, "fc1": fc}


@jax.jit
def forward(params, x_nchw):
    # NCHW (PyTorch) -> NHWC (kernel layout); with Cin=1 this transpose is effectively free.
    x = jnp.transpose(x_nchw, (0, 2, 3, 1))
    for w2, b2 in params["convs"][:-1]:
        x = conv_pool(x, w2, b2)
    w2, b2 = params["convs"][-1]
    fw, fb = params["fc1"]
    # flatten + dropout(eval: identity) + fc are folded into the last conv-stage kernel.
    return conv_pool_fc(x, w2, b2, fw, fb)


# ---------------------------------- Main ------------------------------------

if __name__ == "__main__":
    key = jax.random.PRNGKey(0)
    pkey, xkey = jax.random.split(key)
    params = init_params(pkey)

    # Input spatial size 46 is the smallest for which four (conv3x3 valid -> pool2) stages
    # reduce to 1x1, as required by the 256 -> 10 fully-connected layer.
    x = jax.random.normal(xkey, (2, 1, 46, 46), dtype=jnp.float32)

    out = forward(params, x)
    out = jax.block_until_ready(out)
    assert out.shape == (2, 10), out.shape
    assert out.dtype == jnp.float32
    print("KERNEL_OK")
</pallas_src>

<mosaic_0001>
module attributes {stable_mosaic.version = 11 : i64} {
  func.func @_conv_pool_kernel(%arg0: i32, %arg1: memref<1952x9xbf16, #tpu.memory_space<vmem>>, %arg2: memref<9x32xbf16, #tpu.memory_space<vmem>>, %arg3: memref<1x32xf32, #tpu.memory_space<vmem>>, %arg4: memref<488x32xbf16, #tpu.memory_space<vmem>>) attributes {dimension_semantics = [#tpu.dimension_semantics<parallel>], iteration_bounds = array<i64: 2>, scalar_prefetch = 0 : i64, scratch_operands = 0 : i64, tpu.core_type = #tpu.core_type<tc>, window_params = [{transform_indices = @transform_0, window_bounds = array<i64: 1952, 9>}, {pipeline_mode = #tpu.pipeline_mode<synchronous>, transform_indices = @transform_1, window_bounds = array<i64: 9, 32>}, {pipeline_mode = #tpu.pipeline_mode<synchronous>, transform_indices = @transform_2, window_bounds = array<i64: 1, 32>}, {transform_indices = @transform_3, window_bounds = array<i64: 488, 32>}]} {
    %c0 = arith.constant 0 : index
    %c0_0 = arith.constant 0 : index
    %0 = vector.load %arg1[%c0, %c0_0] : memref<1952x9xbf16, #tpu.memory_space<vmem>>, vector<1952x9xbf16>
    %c0_1 = arith.constant 0 : index
    %c0_2 = arith.constant 0 : index
    %1 = vector.load %arg2[%c0_1, %c0_2] : memref<9x32xbf16, #tpu.memory_space<vmem>>, vector<9x32xbf16>
    %cst = arith.constant dense<0.000000e+00> : vector<1952x32xf32>
    %2 = tpu.matmul %0, %1, %cst {dimension_numbers = #tpu.dot_dimension_numbers<[1], [0], [0], [1], [0, 0, 1, 1], [], []>} : vector<1952x9xbf16>, vector<9x32xbf16>, vector<1952x32xf32> -> vector<1952x32xf32>
    %3 = vector.extract_strided_slice %2 {offsets = [0, 0], sizes = [488, 32], strides = [1, 1]} : vector<1952x32xf32> to vector<488x32xf32>
    %4 = vector.extract_strided_slice %2 {offsets = [488, 0], sizes = [488, 32], strides = [1, 1]} : vector<1952x32xf32> to vector<488x32xf32>
    %5 = arith.maximumf %3, %4 : vector<488x32xf32>
    %6 = vector.extract_strided_slice %2 {offsets = [976, 0], sizes = [488, 32], strides = [1, 1]} : vector<1952x32xf32> to vector<488x32xf32>
    %7 = vector.extract_strided_slice %2 {offsets = [1464, 0], sizes = [488, 32], strides = [1, 1]} : vector<1952x32xf32> to vector<488x32xf32>
    %8 = arith.maximumf %6, %7 : vector<488x32xf32>
    %9 = arith.maximumf %5, %8 : vector<488x32xf32>
    %c0_3 = arith.constant 0 : index
    %c0_4 = arith.constant 0 : index
    %10 = vector.load %arg3[%c0_3, %c0_4] : memref<1x32xf32, #tpu.memory_space<vmem>>, vector<1x32xf32>
    %11 = vector.broadcast %10 : vector<1x32xf32> to vector<488x32xf32>
    %12 = arith.addf %9, %11 : vector<488x32xf32>
    %cst_5 = arith.constant 0.000000e+00 : f32
    %13 = vector.broadcast %cst_5 : f32 to vector<488x32xf32>
    %14 = arith.maximumf %12, %13 : vector<488x32xf32>
    %15 = arith.truncf %14 : vector<488x32xf32> to vector<488x32xbf16>
    %c0_6 = arith.constant 0 : index
    %c0_7 = arith.constant 0 : index
    %16 = vector.load %arg4[%c0_6, %c0_7] : memref<488x32xbf16, #tpu.memory_space<vmem>>, vector<488x32xbf16>
    tpu.vector_store %arg4[%c0_6, %c0_7], %15 {strides = array<i32>} : memref<488x32xbf16, #tpu.memory_space<vmem>>, vector<488x32xbf16>,
    return
  }
  func.func @transform_0(%arg0: i32) -> (i32, i32) {
    %c0_i32 = arith.constant 0 : i32
    %c0_i32_0 = arith.constant 0 : i32
    return %arg0, %c0_i32 : i32, i32
  }
  func.func @transform_1(%arg0: i32) -> (i32, i32) {
    %c0_i32 = arith.constant 0 : i32
    %c0_i32_0 = arith.constant 0 : i32
    %c0_i32_1 = arith.constant 0 : i32
    return %c0_i32, %c0_i32_0 : i32, i32
  }
  func.func @transform_2(%arg0: i32) -> (i32, i32) {
    %c0_i32 = arith.constant 0 : i32
    %c0_i32_0 = arith.constant 0 : i32
    %c0_i32_1 = arith.constant 0 : i32
    return %c0_i32, %c0_i32_0 : i32, i32
  }
  func.func @transform_3(%arg0: i32) -> (i32, i32) {
    %c0_i32 = arith.constant 0 : i32
    %c0_i32_0 = arith.constant 0 : i32
    return %arg0, %c0_i32 : i32, i32
  }
}

module attributes {stable_mosaic.version = 11 : i64} {
  func.func @_conv_pool_kernel(%arg0: i32, %arg1: memref<416x288xbf16, #tpu.memory_space<vmem>>, %arg2: memref<288x64xbf16, #tpu.memory_space<vmem>>, %arg3: memref<1x64xf32, #tpu.memory_space<vmem>>, %arg4: memref<104x64xbf16, #tpu.memory_space<vmem>>) attributes {dimension_semantics = [#tpu.dimension_semantics<parallel>], iteration_bounds = array<i64: 2>, scalar_prefetch = 0 : i64, scratch_operands = 0 : i64, tpu.core_type = #tpu.core_type<tc>, window_params = [{transform_indices = @transform_0, window_bounds = array<i64: 416, 288>}, {pipeline_mode = #tpu.pipeline_mode<synchronous>, transform_indices = @transform_1, window_bounds = array<i64: 288, 64>}, {pipeline_mode = #tpu.pipeline_mode<synchronous>, transform_indices = @transform_2, window_bounds = array<i64: 1, 64>}, {transform_indices = @transform_3, window_bounds = array<i64: 104, 64>}]} {
    %c0 = arith.constant 0 : index
    %c0_0 = arith.constant 0 : index
    %0 = vector.load %arg1[%c0, %c0_0] : memref<416x288xbf16, #tpu.memory_space<vmem>>, vector<416x288xbf16>
    %c0_1 = arith.constant 0 : index
    %c0_2 = arith.constant 0 : index
    %1 = vector.load %arg2[%c0_1, %c0_2] : memref<288x64xbf16, #tpu.memory_space<vmem>>, vector<288x64xbf16>
    %cst = arith.constant dense<0.000000e+00> : vector<416x64xf32>
    %2 = tpu.matmul %0, %1, %cst {dimension_numbers = #tpu.dot_dimension_numbers<[1], [0], [0], [1], [0, 0, 1, 1], [], []>} : vector<416x288xbf16>, vector<288x64xbf16>, vector<416x64xf32> -> vector<416x64xf32>
    %3 = vector.extract_strided_slice %2 {offsets = [0, 0], sizes = [104, 64], strides = [1, 1]} : vector<416x64xf32> to vector<104x64xf32>
    %4 = vector.extract_strided_slice %2 {offsets = [104, 0], sizes = [104, 64], strides = [1, 1]} : vector<416x64xf32> to vector<104x64xf32>
    %5 = arith.maximumf %3, %4 : vector<104x64xf32>
    %6 = vector.extract_strided_slice %2 {offsets = [208, 0], sizes = [104, 64], strides = [1, 1]} : vector<416x64xf32> to vector<104x64xf32>
    %7 = vector.extract_strided_slice %2 {offsets = [312, 0], sizes = [104, 64], strides = [1, 1]} : vector<416x64xf32> to vector<104x64xf32>
    %8 = arith.maximumf %6, %7 : vector<104x64xf32>
    %9 = arith.maximumf %5, %8 : vector<104x64xf32>
    %c0_3 = arith.constant 0 : index
    %c0_4 = arith.constant 0 : index
    %10 = vector.load %arg3[%c0_3, %c0_4] : memref<1x64xf32, #tpu.memory_space<vmem>>, vector<1x64xf32>
    %11 = vector.broadcast %10 : vector<1x64xf32> to vector<104x64xf32>
    %12 = arith.addf %9, %11 : vector<104x64xf32>
    %cst_5 = arith.constant 0.000000e+00 : f32
    %13 = vector.broadcast %cst_5 : f32 to vector<104x64xf32>
    %14 = arith.maximumf %12, %13 : vector<104x64xf32>
    %15 = arith.truncf %14 : vector<104x64xf32> to vector<104x64xbf16>
    %c0_6 = arith.constant 0 : index
    %c0_7 = arith.constant 0 : index
    %16 = vector.load %arg4[%c0_6, %c0_7] : memref<104x64xbf16, #tpu.memory_space<vmem>>, vector<104x64xbf16>
    tpu.vector_store %arg4[%c0_6, %c0_7], %15 {strides = array<i32>} : memref<104x64xbf16, #tpu.memory_space<vmem>>, vector<104x64xbf16>,
    return
  }
  func.func @transform_0(%arg0: i32) -> (i32, i32) {
    %c0_i32 = arith.constant 0 : i32
    %c0_i32_0 = arith.constant 0 : i32
    return %arg0, %c0_i32 : i32, i32
  }
  func.func @transform_1(%arg0: i32) -> (i32, i32) {
    %c0_i32 = arith.constant 0 : i32
    %c0_i32_0 = arith.constant 0 : i32
    %c0_i32_1 = arith.constant 0 : i32
    return %c0_i32, %c0_i32_0 : i32, i32
  }
  func.func @transform_2(%arg0: i32) -> (i32, i32) {
    %c0_i32 = arith.constant 0 : i32
    %c0_i32_0 = arith.constant 0 : i32
    %c0_i32_1 = arith.constant 0 : i32
    return %c0_i32, %c0_i32_0 : i32, i32
  }
  func.func @transform_3(%arg0: i32) -> (i32, i32) {
    %c0_i32 = arith.constant 0 : i32
    %c0_i32_0 = arith.constant 0 : i32
    return %arg0, %c0_i32 : i32, i32
  }
}

module attributes {stable_mosaic.version = 11 : i64} {
  func.func @_conv_pool_kernel(%arg0: i32, %arg1: memref<64x576xbf16, #tpu.memory_space<vmem>>, %arg2: memref<576x128xbf16, #tpu.memory_space<vmem>>, %arg3: memref<1x128xf32, #tpu.memory_space<vmem>>, %arg4: memref<16x128xbf16, #tpu.memory_space<vmem>>) attributes {dimension_semantics = [#tpu.dimension_semantics<parallel>], iteration_bounds = array<i64: 2>, scalar_prefetch = 0 : i64, scratch_operands = 0 : i64, tpu.core_type = #tpu.core_type<tc>, window_params = [{transform_indices = @transform_0, window_bounds = array<i64: 64, 576>}, {pipeline_mode = #tpu.pipeline_mode<synchronous>, transform_indices = @transform_1, window_bounds = array<i64: 576, 128>}, {pipeline_mode = #tpu.pipeline_mode<synchronous>, transform_indices = @transform_2, window_bounds = array<i64: 1, 128>}, {transform_indices = @transform_3, window_bounds = array<i64: 16, 128>}]} {
    %c0 = arith.constant 0 : index
    %c0_0 = arith.constant 0 : index
    %0 = vector.load %arg1[%c0, %c0_0] : memref<64x576xbf16, #tpu.memory_space<vmem>>, vector<64x576xbf16>
    %c0_1 = arith.constant 0 : index
    %c0_2 = arith.constant 0 : index
    %1 = vector.load %arg2[%c0_1, %c0_2] : memref<576x128xbf16, #tpu.memory_space<vmem>>, vector<576x128xbf16>
    %cst = arith.constant dense<0.000000e+00> : vector<64x128xf32>
    %2 = tpu.matmul %0, %1, %cst {dimension_numbers = #tpu.dot_dimension_numbers<[1], [0], [0], [1], [0, 0, 1, 1], [], []>} : vector<64x576xbf16>, vector<576x128xbf16>, vector<64x128xf32> -> vector<64x128xf32>
    %3 = vector.extract_strided_slice %2 {offsets = [0, 0], sizes = [16, 128], strides = [1, 1]} : vector<64x128xf32> to vector<16x128xf32>
    %4 = vector.extract_strided_slice %2 {offsets = [16, 0], sizes = [16, 128], strides = [1, 1]} : vector<64x128xf32> to vector<16x128xf32>
    %5 = arith.maximumf %3, %4 : vector<16x128xf32>
    %6 = vector.extract_strided_slice %2 {offsets = [32, 0], sizes = [16, 128], strides = [1, 1]} : vector<64x128xf32> to vector<16x128xf32>
    %7 = vector.extract_strided_slice %2 {offsets = [48, 0], sizes = [16, 128], strides = [1, 1]} : vector<64x128xf32> to vector<16x128xf32>
    %8 = arith.maximumf %6, %7 : vector<16x128xf32>
    %9 = arith.maximumf %5, %8 : vector<16x128xf32>
    %c0_3 = arith.constant 0 : index
    %c0_4 = arith.constant 0 : index
    %10 = vector.load %arg3[%c0_3, %c0_4] : memref<1x128xf32, #tpu.memory_space<vmem>>, vector<1x128xf32>
    %11 = vector.broadcast %10 : vector<1x128xf32> to vector<16x128xf32>
    %12 = arith.addf %9, %11 : vector<16x128xf32>
    %cst_5 = arith.constant 0.000000e+00 : f32
    %13 = vector.broadcast %cst_5 : f32 to vector<16x128xf32>
    %14 = arith.maximumf %12, %13 : vector<16x128xf32>
    %15 = arith.truncf %14 : vector<16x128xf32> to vector<16x128xbf16>
    %c0_6 = arith.constant 0 : index
    %c0_7 = arith.constant 0 : index
    %16 = vector.load %arg4[%c0_6, %c0_7] : memref<16x128xbf16, #tpu.memory_space<vmem>>, vector<16x128xbf16>
    tpu.vector_store %arg4[%c0_6, %c0_7], %15 {strides = array<i32>} : memref<16x128xbf16, #tpu.memory_space<vmem>>, vector<16x128xbf16>,
    return
  }
  func.func @transform_0(%arg0: i32) -> (i32, i32) {
    %c0_i32 = arith.constant 0 : i32
    %c0_i32_0 = arith.constant 0 : i32
    return %arg0, %c0_i32 : i32, i32
  }
  func.func @transform_1(%arg0: i32) -> (i32, i32) {
    %c0_i32 = arith.constant 0 : i32
    %c0_i32_0 = arith.constant 0 : i32
    %c0_i32_1 = arith.constant 0 : i32
    return %c0_i32, %c0_i32_0 : i32, i32
  }
  func.func @transform_2(%arg0: i32) -> (i32, i32) {
    %c0_i32 = arith.constant 0 : i32
    %c0_i32_0 = arith.constant 0 : i32
    %c0_i32_1 = arith.constant 0 : i32
    return %c0_i32, %c0_i32_0 : i32, i32
  }
  func.func @transform_3(%arg0: i32) -> (i32, i32) {
    %c0_i32 = arith.constant 0 : i32
    %c0_i32_0 = arith.constant 0 : i32
    return %arg0, %c0_i32 : i32, i32
  }
}

module attributes {stable_mosaic.version = 11 : i64} {
  func.func @_conv_pool_fc_kernel(%arg0: i32, %arg1: memref<32x1152xbf16, #tpu.memory_space<vmem>>, %arg2: memref<1152x256xbf16, #tpu.memory_space<vmem>>, %arg3: memref<1x256xf32, #tpu.memory_space<vmem>>, %arg4: memref<256x10xf32, #tpu.memory_space<vmem>>, %arg5: memref<1x10xf32, #tpu.memory_space<vmem>>, %arg6: memref<8x10xf32, #tpu.memory_space<vmem>>) attributes {dimension_semantics = [#tpu.dimension_semantics<parallel>], iteration_bounds = array<i64: 1>, scalar_prefetch = 0 : i64, scratch_operands = 0 : i64, tpu.core_type = #tpu.core_type<tc>, window_params = [{transform_indices = @transform_0, window_bounds = array<i64: 32, 1152>}, {pipeline_mode = #tpu.pipeline_mode<synchronous>, transform_indices = @transform_1, window_bounds = array<i64: 1152, 256>}, {pipeline_mode = #tpu.pipeline_mode<synchronous>, transform_indices = @transform_2, window_bounds = array<i64: 1, 256>}, {pipeline_mode = #tpu.pipeline_mode<synchronous>, transform_indices = @transform_3, window_bounds = array<i64: 256, 10>}, {pipeline_mode = #tpu.pipeline_mode<synchronous>, transform_indices = @transform_4, window_bounds = array<i64: 1, 10>}, {transform_indices = @transform_5, window_bounds = array<i64: 8, 10>}]} {
    %c0 = arith.constant 0 : index
    %c0_0 = arith.constant 0 : index
    %0 = vector.load %arg1[%c0, %c0_0] : memref<32x1152xbf16, #tpu.memory_space<vmem>>, vector<32x1152xbf16>
    %c0_1 = arith.constant 0 : index
    %c0_2 = arith.constant 0 : index
    %1 = vector.load %arg2[%c0_1, %c0_2] : memref<1152x256xbf16, #tpu.memory_space<vmem>>, vector<1152x256xbf16>
    %cst = arith.constant dense<0.000000e+00> : vector<32x256xf32>
    %2 = tpu.matmul %0, %1, %cst {dimension_numbers = #tpu.dot_dimension_numbers<[1], [0], [0], [1], [0, 0, 1, 1], [], []>} : vector<32x1152xbf16>, vector<1152x256xbf16>, vector<32x256xf32> -> vector<32x256xf32>
    %3 = vector.extract_strided_slice %2 {offsets = [0, 0], sizes = [8, 256], strides = [1, 1]} : vector<32x256xf32> to vector<8x256xf32>
    %4 = vector.extract_strided_slice %2 {offsets = [8, 0], sizes = [8, 256], strides = [1, 1]} : vector<32x256xf32> to vector<8x256xf32>
    %5 = arith.maximumf %3, %4 : vector<8x256xf32>
    %6 = vector.extract_strided_slice %2 {offsets = [16, 0], sizes = [8, 256], strides = [1, 1]} : vector<32x256xf32> to vector<8x256xf32>
    %7 = vector.extract_strided_slice %2 {offsets = [24, 0], sizes = [8, 256], strides = [1, 1]} : vector<32x256xf32> to vector<8x256xf32>
    %8 = arith.maximumf %6, %7 : vector<8x256xf32>
    %9 = arith.maximumf %5, %8 : vector<8x256xf32>
    %c0_3 = arith.constant 0 : index
    %c0_4 = arith.constant 0 : index
    %10 = vector.load %arg3[%c0_3, %c0_4] : memref<1x256xf32, #tpu.memory_space<vmem>>, vector<1x256xf32>
    %11 = vector.broadcast %10 : vector<1x256xf32> to vector<8x256xf32>
    %12 = arith.addf %9, %11 : vector<8x256xf32>
    %cst_5 = arith.constant 0.000000e+00 : f32
    %13 = vector.broadcast %cst_5 : f32 to vector<8x256xf32>
    %14 = arith.maximumf %12, %13 : vector<8x256xf32>
    %c0_6 = arith.constant 0 : index
    %c0_7 = arith.constant 0 : index
    %15 = vector.load %arg4[%c0_6, %c0_7] : memref<256x10xf32, #tpu.memory_space<vmem>>, vector<256x10xf32>
    %cst_8 = arith.constant dense<0.000000e+00> : vector<8x10xf32>
    %16 = tpu.matmul %14, %15, %cst_8 {dimension_numbers = #tpu.dot_dimension_numbers<[1], [0], [0], [1], [0, 0, 1, 1], [], []>} : vector<8x256xf32>, vector<256x10xf32>, vector<8x10xf32> -> vector<8x10xf32>
    %c0_9 = arith.constant 0 : index
    %c0_10 = arith.constant 0 : index
    %17 = vector.load %arg5[%c0_9, %c0_10] : memref<1x10xf32, #tpu.memory_space<vmem>>, vector<1x10xf32>
    %18 = vector.broadcast %17 : vector<1x10xf32> to vector<8x10xf32>
    %19 = arith.addf %16, %18 : vector<8x10xf32>
    %c0_11 = arith.constant 0 : index
    %c0_12 = arith.constant 0 : index
    %20 = vector.load %arg6[%c0_11, %c0_12] : memref<8x10xf32, #tpu.memory_space<vmem>>, vector<8x10xf32>
    tpu.vector_store %arg6[%c0_11, %c0_12], %19 {strides = array<i32>} : memref<8x10xf32, #tpu.memory_space<vmem>>, vector<8x10xf32>,
    return
  }
  func.func @transform_0(%arg0: i32) -> (i32, i32) {
    %c0_i32 = arith.constant 0 : i32
    %c0_i32_0 = arith.constant 0 : i32
    return %arg0, %c0_i32 : i32, i32
  }
  func.func @transform_1(%arg0: i32) -> (i32, i32) {
    %c0_i32 = arith.constant 0 : i32
    %c0_i32_0 = arith.constant 0 : i32
    %c0_i32_1 = arith.constant 0 : i32
    return %c0_i32, %c0_i32_0 : i32, i32
  }
  func.func @transform_2(%arg0: i32) -> (i32, i32) {
    %c0_i32 = arith.constant 0 : i32
    %c0_i32_0 = arith.constant 0 : i32
    %c0_i32_1 = arith.constant 0 : i32
    return %c0_i32, %c0_i32_0 : i32, i32
  }
  func.func @transform_3(%arg0: i32) -> (i32, i32) {
    %c0_i32 = arith.constant 0 : i32
    %c0_i32_0 = arith.constant 0 : i32
    %c0_i32_1 = arith.constant 0 : i32
    return %c0_i32, %c0_i32_0 : i32, i32
  }
  func.func @transform_4(%arg0: i32) -> (i32, i32) {
    %c0_i32 = arith.constant 0 : i32
    %c0_i32_0 = arith.constant 0 : i32
    %c0_i32_1 = arith.constant 0 : i32
    return %c0_i32, %c0_i32_0 : i32, i32
  }
  func.func @transform_5(%arg0: i32) -> (i32, i32) {
    %c0_i32 = arith.constant 0 : i32
    %c0_i32_0 = arith.constant 0 : i32
    return %arg0, %c0_i32 : i32, i32
  }
}

</mosaic_0001>

<bundles_post_ra>
// kernel: forward.4
= control target key start
LH: loop header
LB: loop body
LE: loop exit
PB: predicated region body
PF: predicated region fallthrough
CT: control target
= control target key end

     0   :  { %s4004_s12 = smov 0   ;;  %s4841_s0 = inlined_call_operand.vmem [shape: bf16[3904,9], index: 0, kind: input, shape index: {}]   ;;  %s4842_s1 = inlined_call_operand.vmem [shape: bf16[9,32], index: 1, kind: input, shape index: {}]   ;;  %s4843_s2 = inlined_call_operand.vmem [shape: f32[1,32], index: 2, kind: input, shape index: {}]   ;;  %s4844_s3 = inlined_call_operand.vmem [shape: bf16[976,32], index: 3, kind: output, shape index: {}]  }
   0x1 LB: > { %s3094_s13 = sadd.s32 4294967295, %s3981_s12   ;;  %p3098_p0 = scmp.ge.s32.totalorder %s3981_s12, 1  ;;  %s3981_s12 = sphi %s4004_s12, %s13_s12  }
   0x2   : > { %p138_p1 = scmp.lt.s32.totalorder %s3981_s12, 3 }
   0x4   : > { %p139_p2 = pnand %p3098_p0, %p138_p1 }
   0x6   : > { %142 = sbr.rel (%p139_p2) target bundleno = 488 (0x1e8), region = 32 }
   0xd   : > { %v3851_v0 = vld [vmem:[%s4842_s1] sm:$0x1f]   ;;  %vm1403_vm0 = vcmask 1043456   ;;  %vm1404_vm1 = vcmask 1044480   ;;  %s162_s16 = smul.u32 244, %s3094_s13  ;;  %v3983_v1 = vmov 65535  }
   0xe   : > { %v1405_v2 = vsel %vm1403_vm0, 4294967295, %v3983_v1  ;;  %vm1036_vm2 = vcmask 72704   ;;  %s168_s21 = smul.u32 61, %s3094_s13  ;;  %vm2976_vm3 = vcmask 257024  }
   0xf   : > { %v1406_v3 = vsel %vm1404_vm1, %v1405_v2, 0  ;;  %p163_p3 = scmp.lt.s32.totalorder %s162_s16, 487 }
  0x10   : > { %v1408_v4 = vand.u32 %v3851_v0, %v1406_v3  ;;  %p169_p4 = scmp.lt.s32.totalorder %s168_s21, 121 }
  0x11   : > { %s5000_s16 = smov (!%p163_p3, %s162_s16), 487 }
  0x12   : > { %3594 = vmatprep.subr.bf16.mxu0 %v1408_v4  ;;  %3840 = vmatprep.subr.bf16.mxu1 %v1408_v4  ;;  %s3099_s17 = sshll.u32 %s5000_s16, 2  ;;  %s5002_s21 = smov (!%p169_p4, %s168_s21), 121 }
  0x13   : > { %3595 = vmatpush3.bf16.msra.mxu0 %v1408_v4  ;;  %3841 = vmatpush3.bf16.msra.mxu1 %v1408_v4  ;;  %s4020_s20 = scalar_lea.vmem %s4841_s0, %s3099_s17  ;;  %s3100_s24 = sshll.u32 %s5002_s21, 2 }
  0x14   : > { %v3852_v5 = vld [vmem:[%s4020_s20] sm:$0xff]   ;;  %v3853_v6 = vld [vmem:[%s4020_s20 + $0x1f0] sm:$0xff]   ;;  %v3854_v7 = vld [vmem:[%s4020_s20 + $0x8] sm:$0xff]   ;;  %s4538_s27 = scalar_lea.vmem %s4844_s3, %s3100_s24 }
  0x15   : > { %3596 = vmatprep.mubr.msk.bf16.mxu0 %vm1036_vm2, %v3852_v5  ;;  %3720 = vmatprep.mubr.msk.bf16.mxu1 %vm1036_vm2, %v3853_v6  ;;  %v3855_v8 = vld [vmem:[%s4020_s20 + $0x1f8] sm:$0xff]   ;;  %v3856_v9 = vld [vmem:[%s4020_s20 + $0x10] sm:$0xff]   ;;  %v3857_v10 = vld [vmem:[%s4020_s20 + $0x200] sm:$0xff]  }
  0x16   : > { %3597 = vmatmul.mubr.msk.bf16.vlgmr.msra.gmra.mrb[0].mxu0 %vm1036_vm2, %v3854_v7  ;;  %3721 = vmatmul.mubr.msk.bf16.vlgmr.msra.gmra.mrb[0].mxu1 %vm1036_vm2, %v3855_v8  ;;  %v3858_v11 = vld [vmem:[%s4020_s20 + $0x18] sm:$0xff]   ;;  %v3859_v12 = vld [vmem:[%s4020_s20 + $0x208] sm:$0xff]   ;;  %v3860_v13 = vld [vmem:[%s4020_s20 + $0x20] sm:$0xff]  }
  0x17   : > { %3600 = vmatprep.mubr.msk.bf16.mxu0 %vm1036_vm2, %v3856_v9  ;;  %3724 = vmatprep.mubr.msk.bf16.mxu1 %vm1036_vm2, %v3857_v10  ;;  %v3861_v14 = vld [vmem:[%s4020_s20 + $0x210] sm:$0xff]   ;;  %v3862_v15 = vld [vmem:[%s4020_s20 + $0x28] sm:$0xff]   ;;  %v3863_v16 = vld [vmem:[%s4020_s20 + $0x218] sm:$0xff]  }
  0x18   : > { %v3864_v17 = vld [vmem:[%s4020_s20 + $0x30] sm:$0xff]   ;;  %v3865_v18 = vld [vmem:[%s4020_s20 + $0x220] sm:$0xff]   ;;  %v3866_v19 = vld [vmem:[%s4020_s20 + $0x38] sm:$0xff]  }
  0x19   : > { %v3867_v20 = vld [vmem:[%s4020_s20 + $0x228] sm:$0xff]   ;;  %v3868_v21 = vld [vmem:[%s4020_s20 + $0x40] sm:$0xff]   ;;  %v3869_v22 = vld [vmem:[%s4020_s20 + $0x230] sm:$0xff]  }
  0x1a   : > { %v3870_v23 = vld [vmem:[%s4020_s20 + $0x48] sm:$0xff]   ;;  %v3871_v24 = vld [vmem:[%s4020_s20 + $0x238] sm:$0xff]   ;;  %v3872_v25 = vld [vmem:[%s4020_s20 + $0x50] sm:$0xff]  }
  0x1b   : > { %v3873_v26 = vld [vmem:[%s4020_s20 + $0x240] sm:$0xff]   ;;  %v3874_v27 = vld [vmem:[%s4020_s20 + $0x58] sm:$0xff]   ;;  %v3875_v28 = vld [vmem:[%s4020_s20 + $0x248] sm:$0xff]  }
  0x1c   : > { %v3876_v29 = vld [vmem:[%s4020_s20 + $0x60] sm:$0xff]   ;;  %v3877_v30 = vld [vmem:[%s4020_s20 + $0x250] sm:$0xff]   ;;  %v3878_v31 = vld [vmem:[%s4020_s20 + $0x68] sm:$0xff]  }
  0x1d   : > { %v3879_v32 = vld [vmem:[%s4020_s20 + $0x258] sm:$0xff]   ;;  %v3880_v33 = vld [vmem:[%s4020_s20 + $0x70] sm:$0xff]   ;;  %v3881_v34 = vld [vmem:[%s4020_s20 + $0x260] sm:$0xff]  }
  0x1e   : > { %3601 = vmatmul.mubr.msk.bf16.gmra.mrb[4].mxu0 %vm1036_vm2, %v3858_v11  ;;  %3725 = vmatmul.mubr.msk.bf16.gmra.mrb[4].mxu1 %vm1036_vm2, %v3859_v12  ;;  %v3882_v35 = vld [vmem:[%s4020_s20 + $0x78] sm:$0xff]   ;;  %v3883_v36 = vld [vmem:[%s4020_s20 + $0x268] sm:$0xff]   ;;  %v3884_v37 = vld [vmem:[%s4020_s20 + $0x80] sm:$0xff]  }
  0x1f   : > { %3604 = vmatprep.mubr.msk.bf16.mxu0 %vm1036_vm2, %v3860_v13  ;;  %3728 = vmatprep.mubr.msk.bf16.mxu1 %vm1036_vm2, %v3861_v14  ;;  %v3885_v38 = vld [vmem:[%s4020_s20 + $0x270] sm:$0xff]   ;;  %v3886_v39 = vld [vmem:[%s4020_s20 + $0x88] sm:$0xff]   ;;  %v3887_v40 = vld [vmem:[%s4020_s20 + $0x278] sm:$0xff]  }
  0x20   : > { %v3888_v41 = vld [vmem:[%s4020_s20 + $0x90] sm:$0xff]   ;;  %v3889_v42 = vld [vmem:[%s4020_s20 + $0x280] sm:$0xff]   ;;  %v3890_v43 = vld [vmem:[%s4020_s20 + $0x98] sm:$0xff]  }
  0x21   : > { %v3891_v44 = vld [vmem:[%s4020_s20 + $0x288] sm:$0xff]   ;;  %v3892_v45 = vld [vmem:[%s4020_s20 + $0xa0] sm:$0xff]   ;;  %v3893_v46 = vld [vmem:[%s4020_s20 + $0x290] sm:$0xff]  }
  0x22   : > { %v3894_v47 = vld [vmem:[%s4020_s20 + $0xa8] sm:$0xff]   ;;  %v3895_v48 = vld [vmem:[%s4020_s20 + $0x298] sm:$0xff]   ;;  %v3896_v49 = vld [vmem:[%s4020_s20 + $0xb0] sm:$0xff]  }
  0x23   : > { %v3897_v50 = vld [vmem:[%s4020_s20 + $0x2a0] sm:$0xff]   ;;  %v3898_v51 = vld [vmem:[%s4020_s20 + $0xb8] sm:$0xff]   ;;  %v3899_v52 = vld [vmem:[%s4020_s20 + $0x2a8] sm:$0xff]  }
  0x24   : > { %v3900_v53 = vld [vmem:[%s4020_s20 + $0xc0] sm:$0xff]   ;;  %v3901_v54 = vld [vmem:[%s4020_s20 + $0x2b0] sm:$0xff]   ;;  %v3902_v55 = vld [vmem:[%s4020_s20 + $0xc8] sm:$0xff]  }
  0x25   : > { %v3903_v56 = vld [vmem:[%s4020_s20 + $0x2b8] sm:$0xff]   ;;  %v3904_v57 = vld [vmem:[%s4020_s20 + $0xd0] sm:$0xff]   ;;  %v3905_v58 = vld [vmem:[%s4020_s20 + $0x2c0] sm:$0xff]  }
  0x26   : > { %3605 = vmatmul.mubr.msk.bf16.gmra.mrb[8].mxu0 %vm1036_vm2, %v3862_v15  ;;  %3729 = vmatmul.mubr.msk.bf16.gmra.mrb[8].mxu1 %vm1036_vm2, %v3863_v16  ;;  %v3906_v59 = vld [vmem:[%s4020_s20 + $0xd8] sm:$0xff]   ;;  %v3907_v60 = vld [vmem:[%s4020_s20 + $0x2c8] sm:$0xff]   ;;  %v3908_v61 = vld [vmem:[%s4020_s20 + $0xe0] sm:$0xff]  }
  0x27   : > { %3608 = vmatprep.mubr.msk.bf16.mxu0 %vm1036_vm2, %v3864_v17  ;;  %3732 = vmatprep.mubr.msk.bf16.mxu1 %vm1036_vm2, %v3865_v18  ;;  %v3909_v62 = vld [vmem:[%s4020_s20 + $0x2d0] sm:$0xff]   ;;  %v3910_v63 = vld [vmem:[%s4020_s20 + $0xe8] sm:$0xff]   ;;  %v3911_v0 = vld [vmem:[%s4020_s20 + $0x2d8] sm:$0xff]  }
  0x28   : > { %v3912_v1 = vld [vmem:[%s4020_s20 + $0xf0] sm:$0xff]   ;;  %v3913_v2 = vld [vmem:[%s4020_s20 + $0x2e0] sm:$0xff]   ;;  %v3914_v3 = vld [vmem:[%s4020_s20 + $0xf8] sm:$0xff]  }
  0x29   : > { %v3915_v4 = vld [vmem:[%s4020_s20 + $0x2e8] sm:$0xff]   ;;  %v3916_v5 = vld [vmem:[%s4020_s20 + $0x100] sm:$0xff]   ;;  %v3917_v6 = vld [vmem:[%s4020_s20 + $0x2f0] sm:$0xff]  }
  0x2a   : > { %v3918_v7 = vld [vmem:[%s4020_s20 + $0x108] sm:$0xff]   ;;  %v3919_v8 = vld [vmem:[%s4020_s20 + $0x2f8] sm:$0xff]   ;;  %v3920_v9 = vld [vmem:[%s4020_s20 + $0x110] sm:$0xff]  }
  0x2b   : > { %v3921_v10 = vld [vmem:[%s4020_s20 + $0x300] sm:$0xff]   ;;  %v3922_v11 = vld [vmem:[%s4020_s20 + $0x118] sm:$0xff]   ;;  %v3923_v12 = vld [vmem:[%s4020_s20 + $0x308] sm:$0xff]  }
  0x2c   : > { %v3924_v13 = vld [vmem:[%s4020_s20 + $0x120] sm:$0xff]   ;;  %v3925_v14 = vld [vmem:[%s4020_s20 + $0x310] sm:$0xff]   ;;  %v3926_v15 = vld [vmem:[%s4020_s20 + $0x128] sm:$0xff]  }
  0x2d   : > { %v3927_v16 = vld [vmem:[%s4020_s20 + $0x318] sm:$0xff]   ;;  %v3928_v17 = vld [vmem:[%s4020_s20 + $0x130] sm:$0xff]   ;;  %v3929_v18 = vld [vmem:[%s4020_s20 + $0x320] sm:$0xff]  }
  0x2e   : > { %3609 = vmatmul.mubr.msk.bf16.gmra.mrb[12].mxu0 %vm1036_vm2, %v3866_v19  ;;  %3733 = vmatmul.mubr.msk.bf16.gmra.mrb[12].mxu1 %vm1036_vm2, %v3867_v20  ;;  %v3930_v19 = vld [vmem:[%s4020_s20 + $0x138] sm:$0xff]   ;;  %v3931_v20 = vld [vmem:[%s4020_s20 + $0x328] sm:$0xff]  }
  0x2f   : > { %3612 = vmatprep.mubr.msk.bf16.mxu0 %vm1036_vm2, %v3868_v21  ;;  %3736 = vmatprep.mubr.msk.bf16.mxu1 %vm1036_vm2, %v3869_v22  ;;  %v3932_v21 = vld [vmem:[%s4020_s20 + $0x140] sm:$0xff]   ;;  %v3933_v22 = vld [vmem:[%s4020_s20 + $0x330] sm:$0xff]  }
  0x36   : > { %3613 = vmatmul.mubr.msk.bf16.gmra.mrb[16].mxu0 %vm1036_vm2, %v3870_v23  ;;  %3737 = vmatmul.mubr.msk.bf16.gmra.mrb[16].mxu1 %vm1036_vm2, %v3871_v24  ;;  %v3934_v23 = vld [vmem:[%s4020_s20 + $0x148] sm:$0xff]   ;;  %v3935_v24 = vld [vmem:[%s4020_s20 + $0x338] sm:$0xff]  }
  0x37   : > { %3616 = vmatprep.mubr.msk.bf16.mxu0 %vm1036_vm2, %v3872_v25  ;;  %3740 = vmatprep.mubr.msk.bf16.mxu1 %vm1036_vm2, %v3873_v26  ;;  %v3936_v25 = vld [vmem:[%s4020_s20 + $0x150] sm:$0xff]   ;;  %v3937_v26 = vld [vmem:[%s4020_s20 + $0x340] sm:$0xff]  }
  0x3e   : > { %3617 = vmatmul.mubr.msk.bf16.gmra.mrb[20].mxu0 %vm1036_vm2, %v3874_v27  ;;  %3741 = vmatmul.mubr.msk.bf16.gmra.mrb[20].mxu1 %vm1036_vm2, %v3875_v28  ;;  %v3938_v27 = vld [vmem:[%s4020_s20 + $0x158] sm:$0xff]   ;;  %v3939_v28 = vld [vmem:[%s4020_s20 + $0x348] sm:$0xff]  }
  0x3f   : > { %3620 = vmatprep.mubr.msk.bf16.mxu0 %vm1036_vm2, %v3876_v29  ;;  %3744 = vmatprep.mubr.msk.bf16.mxu1 %vm1036_vm2, %v3877_v30  ;;  %v3940_v29 = vld [vmem:[%s4020_s20 + $0x160] sm:$0xff]   ;;  %v3941_v30 = vld [vmem:[%s4020_s20 + $0x350] sm:$0xff]  }
  0x46   : > { %3621 = vmatmul.mubr.msk.bf16.gmra.mrb[24].mxu0 %vm1036_vm2, %v3878_v31  ;;  %3745 = vmatmul.mubr.msk.bf16.gmra.mrb[24].mxu1 %vm1036_vm2, %v3879_v32  ;;  %v3942_v31 = vld [vmem:[%s4020_s20 + $0x168] sm:$0xff]   ;;  %v3943_v32 = vld [vmem:[%s4020_s20 + $0x358] sm:$0xff]  }
  0x47   : > { %3624 = vmatprep.mubr.msk.bf16.mxu0 %vm1036_vm2, %v3880_v33  ;;  %3748 = vmatprep.mubr.msk.bf16.mxu1 %vm1036_vm2, %v3881_v34  ;;  %v3944_v33 = vld [vmem:[%s4020_s20 + $0x170] sm:$0xff]   ;;  %v3945_v34 = vld [vmem:[%s4020_s20 + $0x360] sm:$0xff]  }
  0x4e   : > { %3625 = vmatmul.mubr.msk.bf16.gmra.mrb[28].mxu0 %vm1036_vm2, %v3882_v35  ;;  %3749 = vmatmul.mubr.msk.bf16.gmra.mrb[28].mxu1 %vm1036_vm2, %v3883_v36  ;;  %v3946_v35 = vld [vmem:[%s4020_s20 + $0x178] sm:$0xff]   ;;  %v3947_v36 = vld [vmem:[%s4020_s20 + $0x368] sm:$0xff]  }
  0x4f   : > { %3628 = vmatprep.mubr.msk.bf16.mxu0 %vm1036_vm2, %v3884_v37  ;;  %3752 = vmatprep.mubr.msk.bf16.mxu1 %vm1036_vm2, %v3885_v38  ;;  %v3948_v37 = vld [vmem:[%s4020_s20 + $0x180] sm:$0xff]   ;;  %v3949_v38 = vld [vmem:[%s4020_s20 + $0x370] sm:$0xff]  }
  0x56   : > { %3629 = vmatmul.mubr.msk.bf16.gmra.mrb[32].mxu0 %vm1036_vm2, %v3886_v39  ;;  %3753 = vmatmul.mubr.msk.bf16.gmra.mrb[32].mxu1 %vm1036_vm2, %v3887_v40  ;;  %v3950_v39 = vld [vmem:[%s4020_s20 + $0x188] sm:$0xff]   ;;  %v3951_v40 = vld [vmem:[%s4020_s20 + $0x378] sm:$0xff]  }
  0x57   : > { %3632 = vmatprep.mubr.msk.bf16.mxu0 %vm1036_vm2, %v3888_v41  ;;  %3756 = vmatprep.mubr.msk.bf16.mxu1 %vm1036_vm2, %v3889_v42  ;;  %v3952_v41 = vld [vmem:[%s4020_s20 + $0x190] sm:$0xff]   ;;  %v3953_v42 = vld [vmem:[%s4020_s20 + $0x380] sm:$0xff]  }
  0x5e   : > { %3633 = vmatmul.mubr.msk.bf16.gmra.mrb[36].mxu0 %vm1036_vm2, %v3890_v43  ;;  %3757 = vmatmul.mubr.msk.bf16.gmra.mrb[36].mxu1 %vm1036_vm2, %v3891_v44  ;;  %v3954_v43 = vld [vmem:[%s4020_s20 + $0x198] sm:$0xff]   ;;  %v3955_v44 = vld [vmem:[%s4020_s20 + $0x388] sm:$0xff]  }
  0x5f   : > { %3636 = vmatprep.mubr.msk.bf16.mxu0 %vm1036_vm2, %v3892_v45  ;;  %3760 = vmatprep.mubr.msk.bf16.mxu1 %vm1036_vm2, %v3893_v46  ;;  %v3956_v45 = vld [vmem:[%s4020_s20 + $0x1a0] sm:$0xff]   ;;  %v3957_v46 = vld [vmem:[%s4020_s20 + $0x390] sm:$0xff]  }
  0x66   : > { %3637 = vmatmul.mubr.msk.bf16.gmra.mrb[40].mxu0 %vm1036_vm2, %v3894_v47  ;;  %3761 = vmatmul.mubr.msk.bf16.gmra.mrb[40].mxu1 %vm1036_vm2, %v3895_v48  ;;  %v3958_v47 = vld [vmem:[%s4020_s20 + $0x1a8] sm:$0xff]   ;;  %v3959_v48 = vld [vmem:[%s4020_s20 + $0x398] sm:$0xff]  }
  0x67   : > { %3640 = vmatprep.mubr.msk.bf16.mxu0 %vm1036_vm2, %v3896_v49  ;;  %3764 = vmatprep.mubr.msk.bf16.mxu1 %vm1036_vm2, %v3897_v50  ;;  %v3960_v49 = vld [vmem:[%s4020_s20 + $0x1b0] sm:$0xff]   ;;  %v3961_v50 = vld [vmem:[%s4020_s20 + $0x3a0] sm:$0xff]  }
  0x6e   : > { %3641 = vmatmul.mubr.msk.bf16.gmra.mrb[44].mxu0 %vm1036_vm2, %v3898_v51  ;;  %3765 = vmatmul.mubr.msk.bf16.gmra.mrb[44].mxu1 %vm1036_vm2, %v3899_v52 }
  0x6f   : > { %3644 = vmatprep.mubr.msk.bf16.mxu0 %vm1036_vm2, %v3900_v53  ;;  %3768 = vmatprep.mubr.msk.bf16.mxu1 %vm1036_vm2, %v3901_v54  ;;  %v3962_v53 = vld [vmem:[%s4020_s20 + $0x1b8] sm:$0xff]  }
  0x76   : > { %3645 = vmatmul.mubr.msk.bf16.gmra.mrb[48].mxu0 %vm1036_vm2, %v3902_v55  ;;  %3769 = vmatmul.mubr.msk.bf16.gmra.mrb[48].mxu1 %vm1036_vm2, %v3903_v56  ;;  %v3963_v56 = vld [vmem:[%s4020_s20 + $0x3a8] sm:$0xff]  }
  0x77   : > { %3648 = vmatprep.mubr.msk.bf16.mxu0 %vm1036_vm2, %v3904_v57  ;;  %3772 = vmatprep.mubr.msk.bf16.mxu1 %vm1036_vm2, %v3905_v58  ;;  %v3964_v58 = vld [vmem:[%s4020_s20 + $0x1c0] sm:$0xff]  }
  0x7e   : > { %3649 = vmatmul.mubr.msk.bf16.gmra.mrb[52].mxu0 %vm1036_vm2, %v3906_v59  ;;  %3773 = vmatmul.mubr.msk.bf16.gmra.mrb[52].mxu1 %vm1036_vm2, %v3907_v60 }
  0x7f   : > { %3652 = vmatprep.mubr.msk.bf16.mxu0 %vm1036_vm2, %v3908_v61  ;;  %3776 = vmatprep.mubr.msk.bf16.mxu1 %vm1036_vm2, %v3909_v62  ;;  %v3965_v61 = vld [vmem:[%s4020_s20 + $0x3b0] sm:$0xff]  }
  0x86   : > { %3653 = vmatmul.mubr.msk.bf16.gmra.mrb[56].mxu0 %vm1036_vm2, %v3910_v63  ;;  %3777 = vmatmul.mubr.msk.bf16.gmra.mrb[56].mxu1 %vm1036_vm2, %v3911_v0 }
  0x87   : > { %3656 = vmatprep.mubr.msk.bf16.mxu0 %vm1036_vm2, %v3912_v1  ;;  %3780 = vmatprep.mubr.msk.bf16.mxu1 %vm1036_vm2, %v3913_v2  ;;  %v3966_v1 = vld [vmem:[%s4020_s20 + $0x1c8] sm:$0xff]  }
  0x8e   : > { %3657 = vmatmul.mubr.msk.bf16.gmra.mrb[60].mxu0 %vm1036_vm2, %v3914_v3  ;;  %3781 = vmatmul.mubr.msk.bf16.gmra.mrb[60].mxu1 %vm1036_vm2, %v3915_v4  ;;  %v3967_v4 = vld [vmem:[%s4020_s20 + $0x3b8] sm:$0xff]  }
  0x8f   : > { %3660 = vmatprep.mubr.msk.bf16.mxu0 %vm1036_vm2, %v3916_v5  ;;  %3784 = vmatprep.mubr.msk.bf16.mxu1 %vm1036_vm2, %v3917_v6  ;;  %v3968_v6 = vld [vmem:[%s4020_s20 + $0x1d0] sm:$0xff]  }
  0x96   : > { %3661 = vmatmul.mubr.msk.bf16.gmra.mrb[64].mxu0 %vm1036_vm2, %v3918_v7  ;;  %3785 = vmatmul.mubr.msk.bf16.gmra.mrb[64].mxu1 %vm1036_vm2, %v3919_v8 }
  0x97   : > { %3664 = vmatprep.mubr.msk.bf16.mxu0 %vm1036_vm2, %v3920_v9  ;;  %3788 = vmatprep.mubr.msk.bf16.mxu1 %vm1036_vm2, %v3921_v10  ;;  %v3969_v9 = vld [vmem:[%s4020_s20 + $0x3c0] sm:$0xff]  }
  0x9e   : > { %3665 = vmatmul.mubr.msk.bf16.gmra.mrb[68].mxu0 %vm1036_vm2, %v3922_v11  ;;  %3789 = vmatmul.mubr.msk.bf16.gmra.mrb[68].mxu1 %vm1036_vm2, %v3923_v12 }
  0x9f   : > { %3668 = vmatprep.mubr.msk.bf16.mxu0 %vm1036_vm2, %v3924_v13  ;;  %3792 = vmatprep.mubr.msk.bf16.mxu1 %vm1036_vm2, %v3925_v14  ;;  %v3970_v13 = vld [vmem:[%s4020_s20 + $0x1d8] sm:$0xff]  }
  0xa6   : > { %3669 = vmatmul.mubr.msk.bf16.gmra.mrb[72].mxu0 %vm1036_vm2, %v3926_v15  ;;  %3793 = vmatmul.mubr.msk.bf16.gmra.mrb[72].mxu1 %vm1036_vm2, %v3927_v16  ;;  %v3971_v16 = vld [vmem:[%s4020_s20 + $0x3c8] sm:$0xff]  }
  0xa7   : > { %3672 = vmatprep.mubr.msk.bf16.mxu0 %vm1036_vm2, %v3928_v17  ;;  %3796 = vmatprep.mubr.msk.bf16.mxu1 %vm1036_vm2, %v3929_v18  ;;  %v3972_v18 = vld [vmem:[%s4020_s20 + $0x1e0] sm:$0xff]  }
  0xae   : > { %3673 = vmatmul.mubr.msk.bf16.gmra.mrb[76].mxu0 %vm1036_vm2, %v3930_v19  ;;  %3797 = vmatmul.mubr.msk.bf16.gmra.mrb[76].mxu1 %vm1036_vm2, %v3931_v20 }
  0xaf   : > { %3676 = vmatprep.mubr.msk.bf16.mxu0 %vm1036_vm2, %v3932_v21  ;;  %3800 = vmatprep.mubr.msk.bf16.mxu1 %vm1036_vm2, %v3933_v22 }
  0xb6   : > { %3677 = vmatmul.mubr.msk.bf16.gmra.mrb[80].mxu0 %vm1036_vm2, %v3934_v23  ;;  %3801 = vmatmul.mubr.msk.bf16.gmra.mrb[80].mxu1 %vm1036_vm2, %v3935_v24  ;;  %v3973_v24 = vld [vmem:[%s4020_s20 + $0x1e8] sm:$0xff]  }
  0xb7   : > { %3680 = vmatprep.mubr.msk.bf16.mxu0 %vm1036_vm2, %v3936_v25  ;;  %3804 = vmatprep.mubr.msk.bf16.mxu1 %vm1036_vm2, %v3937_v26 }
  0xbe   : > { %3681 = vmatmul.mubr.msk.bf16.gmra.mrb[84].mxu0 %vm1036_vm2, %v3938_v27  ;;  %3805 = vmatmul.mubr.msk.bf16.gmra.mrb[84].mxu1 %vm1036_vm2, %v3939_v28 }
  0xbf   : > { %3684 = vmatprep.mubr.msk.bf16.mxu0 %vm1036_vm2, %v3940_v29  ;;  %3808 = vmatprep.mubr.msk.bf16.mxu1 %vm1036_vm2, %v3941_v30 }
  0xc6   : > { %3685 = vmatmul.mubr.msk.bf16.gmra.mrb[88].mxu0 %vm1036_vm2, %v3942_v31  ;;  %3809 = vmatmul.mubr.msk.bf16.gmra.mrb[88].mxu1 %vm1036_vm2, %v3943_v32 }
  0xc7   : > { %3688 = vmatprep.mubr.msk.bf16.mxu0 %vm1036_vm2, %v3944_v33  ;;  %3812 = vmatprep.mubr.msk.bf16.mxu1 %vm1036_vm2, %v3945_v34 }
  0xce   : > { %3689 = vmatmul.mubr.msk.bf16.gmra.mrb[92].mxu0 %vm1036_vm2, %v3946_v35  ;;  %3813 = vmatmul.mubr.msk.bf16.gmra.mrb[92].mxu1 %vm1036_vm2, %v3947_v36 }
  0xcf   : > { %3692 = vmatprep.mubr.msk.bf16.mxu0 %vm1036_vm2, %v3948_v37  ;;  %3816 = vmatprep.mubr.msk.bf16.mxu1 %vm1036_vm2, %v3949_v38 }
  0xd6   : > { %3693 = vmatmul.mubr.msk.bf16.gmra.mrb[96].mxu0 %vm1036_vm2, %v3950_v39  ;;  %3817 = vmatmul.mubr.msk.bf16.gmra.mrb[96].mxu1 %vm1036_vm2, %v3951_v40 }
  0xd7   : > { %3696 = vmatprep.mubr.msk.bf16.mxu0 %vm1036_vm2, %v3952_v41  ;;  %3820 = vmatprep.mubr.msk.bf16.mxu1 %vm1036_vm2, %v3953_v42 }
  0xde   : > { %3697 = vmatmul.mubr.msk.bf16.gmra.mrb[100].mxu0 %vm1036_vm2, %v3954_v43  ;;  %3821 = vmatmul.mubr.msk.bf16.gmra.mrb[100].mxu1 %vm1036_vm2, %v3955_v44 }
  0xdf   : > { %3700 = vmatprep.mubr.msk.bf16.mxu0 %vm1036_vm2, %v3956_v45  ;;  %3824 = vmatprep.mubr.msk.bf16.mxu1 %vm1036_vm2, %v3957_v46 }
  0xe6   : > { %3701 = vmatmul.mubr.msk.bf16.gmra.mrb[104].mxu0 %vm1036_vm2, %v3958_v47  ;;  %3825 = vmatmul.mubr.msk.bf16.gmra.mrb[104].mxu1 %vm1036_vm2, %v3959_v48 }
  0xe7   : > { %3704 = vmatprep.mubr.msk.bf16.mxu0 %vm1036_vm2, %v3960_v49  ;;  %3828 = vmatprep.mubr.msk.bf16.mxu1 %vm1036_vm2, %v3961_v50 }
  0xe9   : > { %v4242_v51 = vpop.f32.mrb[0].mxu0  ;;  %v4247_v54 = vpop.f32.mrb[0].mxu1 }
  0xea   : > { %v4244_v52 = vpop.f32.mrb[1].mxu0  ;;  %v4252_v57 = vpop.f32.mrb[1].mxu1 }
  0xeb   : > { %4849 = vst [vmem:[#allocation2_spill] sm:$0xff] %v4244_v52  ;;  %v4249_v55 = vpop.f32.mrb[2].mxu0  ;;  %v4257_v60 = vpop.f32.mrb[2].mxu1 }
  0xec   : > { %v4255_v59 = vpop.f32.mrb[3].mxu0  ;;  %v4260_v62 = vpop.f32.mrb[3].mxu1 }
  0xed   : > { %4850 = vst [vmem:[#allocation3_spill] sm:$0xff] %v4255_v59 }
  0xee   : > { %3705 = vmatmul.mubr.msk.bf16.gmra.mrb[108].mxu0 %vm1036_vm2, %v3962_v53  ;;  %3829 = vmatmul.mubr.msk.bf16.gmra.mrb[108].mxu1 %vm1036_vm2, %v3963_v56 }
  0xef   : > { %3708 = vmatprep.mubr.msk.bf16.mxu0 %vm1036_vm2, %v3964_v58  ;;  %3832 = vmatprep.mubr.msk.bf16.mxu1 %vm1036_vm2, %v3965_v61 }
  0xf1   : > { %v4266_v63 = vpop.f32.mrb[4].mxu0  ;;  %v4271_v2 = vpop.f32.mrb[4].mxu1 }
  0xf2   : > { %v4268_v0 = vpop.f32.mrb[5].mxu0  ;;  %v4276_v5 = vpop.f32.mrb[5].mxu1 }
  0xf3   : > { %v4273_v3 = vpop.f32.mrb[6].mxu0  ;;  %v4281_v8 = vpop.f32.mrb[6].mxu1 }
  0xf4   : > { %v4279_v7 = vpop.f32.mrb[7].mxu0  ;;  %v4284_v10 = vpop.f32.mrb[7].mxu1 }
  0xf6   : > { %3709 = vmatmul.mubr.msk.bf16.gmra.mrb[112].mxu0 %vm1036_vm2, %v3966_v1  ;;  %3833 = vmatmul.mubr.msk.bf16.gmra.mrb[112].mxu1 %vm1036_vm2, %v3967_v4 }
  0xf7   : > { %3712 = vmatprep.mubr.msk.bf16.mxu0 %vm1036_vm2, %v3968_v6  ;;  %3836 = vmatprep.mubr.msk.bf16.mxu1 %vm1036_vm2, %v3969_v9 }
  0xf9   : > { %v4290_v11 = vpop.f32.mrb[8].mxu0  ;;  %v4295_v14 = vpop.f32.mrb[8].mxu1 }
  0xfa   : > { %v4292_v12 = vpop.f32.mrb[9].mxu0  ;;  %v4300_v17 = vpop.f32.mrb[9].mxu1 }
  0xfb   : > { %v4297_v15 = vpop.f32.mrb[10].mxu0  ;;  %v4305_v20 = vpop.f32.mrb[10].mxu1 }
  0xfc   : > { %v4303_v19 = vpop.f32.mrb[11].mxu0  ;;  %v4307_v21 = vpop.f32.mrb[11].mxu1 }
  0xfe   : > { %3713 = vmatmul.mubr.msk.bf16.gmra.mrb[116].mxu0 %vm1036_vm2, %v3970_v13  ;;  %3837 = vmatmul.mubr.msk.bf16.gmra.mrb[116].mxu1 %vm1036_vm2, %v3971_v16 }
  0xff   : > { %3716 = vmatprep.mubr.msk.bf16.mxu0 %vm1036_vm2, %v3972_v18 }
 0x101   : > { %v4312_v22 = vpop.f32.mrb[12].mxu0  ;;  %v4317_v25 = vpop.f32.mrb[12].mxu1 }
 0x102   : > { %v4314_v23 = vpop.f32.mrb[13].mxu0  ;;  %v4321_v27 = vpop.f32.mrb[13].mxu1 }
 0x103   : > { %v4319_v26 = vpop.f32.mrb[14].mxu0  ;;  %v4325_v29 = vpop.f32.mrb[14].mxu1 }
 0x104   : > { %v4323_v28 = vpop.f32.mrb[15].mxu0  ;;  %v4327_v30 = vpop.f32.mrb[15].mxu1 }
 0x106   : > { %3717 = vmatmul.mubr.msk.bf16.gmra.mrb[120].mxu0 %vm1036_vm2, %v3973_v24 }
 0x109   : > { %v4330_v31 = vpop.f32.mrb[16].mxu0  ;;  %v4334_v33 = vpop.f32.mrb[16].mxu1 }
 0x10a   : > { %v4332_v32 = vpop.f32.mrb[17].mxu0  ;;  %v4338_v35 = vpop.f32.mrb[17].mxu1 }
 0x10b   : > { %v4336_v34 = vpop.f32.mrb[18].mxu0  ;;  %v4342_v37 = vpop.f32.mrb[18].mxu1 }
 0x10c   : > { %v4340_v36 = vpop.f32.mrb[19].mxu0  ;;  %v4344_v38 = vpop.f32.mrb[19].mxu1 }
 0x111   : > { %v4346_v39 = vpop.f32.mrb[20].mxu0  ;;  %v4350_v41 = vpop.f32.mrb[20].mxu1 }
 0x112   : > { %v4348_v40 = vpop.f32.mrb[21].mxu0  ;;  %v4354_v43 = vpop.f32.mrb[21].mxu1 }
 0x113   : > { %v4352_v42 = vpop.f32.mrb[22].mxu0  ;;  %v4358_v45 = vpop.f32.mrb[22].mxu1 }
 0x114   : > { %v4356_v44 = vpop.f32.mrb[23].mxu0  ;;  %v4360_v46 = vpop.f32.mrb[23].mxu1 }
 0x119   : > { %v4362_v47 = vpop.f32.mrb[24].mxu0  ;;  %v4366_v49 = vpop.f32.mrb[24].mxu1 }
 0x11a   : > { %v4364_v48 = vpop.f32.mrb[25].mxu0  ;;  %v4370_v53 = vpop.f32.mrb[25].mxu1 }
 0x11b   : > { %4851 = vst [vmem:[#allocation4_spill] sm:$0xff] %v4364_v48  ;;  %v4368_v50 = vpop.f32.mrb[26].mxu0  ;;  %4853 = vst [vmem:[#allocation6_spill] sm:$0xff] %v4370_v53  ;;  %v4374_v58 = vpop.f32.mrb[26].mxu1 }
 0x11c   : > { %4852 = vst [vmem:[#allocation5_spill] sm:$0xff] %v4368_v50  ;;  %v4372_v56 = vpop.f32.mrb[27].mxu0  ;;  %4854 = vst [vmem:[#allocation7_spill] sm:$0xff] %v4374_v58  ;;  %v4376_v61 = vpop.f32.mrb[27].mxu1 }
 0x121   : > { %v4378_v1 = vpop.f32.mrb[28].mxu0  ;;  %v4382_v6 = vpop.f32.mrb[28].mxu1 }
 0x122   : > { %4855 = vst [vmem:[#allocation8_spill] sm:$0xff] %v4378_v1  ;;  %v4380_v4 = vpop.f32.mrb[29].mxu0  ;;  %4857 = vst [vmem:[#allocation10_spill] sm:$0xff] %v4382_v6  ;;  %v4386_v13 = vpop.f32.mrb[29].mxu1 }
 0x123   : > { %4856 = vst [vmem:[#allocation9_spill] sm:$0xff] %v4380_v4  ;;  %v4384_v9 = vpop.f32.mrb[30].mxu0  ;;  %4859 = vst [vmem:[#allocation12_spill] sm:$0xff] %v4386_v13  ;;  %v4390_v18 = vpop.f32.mrb[30].mxu1 }
 0x124   : > { %4858 = vst [vmem:[#allocation11_spill] sm:$0xff] %v4384_v9  ;;  %v4388_v16 = vpop.f32.mrb[31].mxu0  ;;  %4861 = vst [vmem:[#allocation14_spill] sm:$0xff] %v4390_v18  ;;  %v4392_v24 = vpop.f32.mrb[31].mxu1 }
 0x125   : > { %4860 = vst [vmem:[#allocation13_spill] sm:$0xff] %v4388_v16  ;;  %4862 = vst [vmem:[#allocation15_spill] sm:$0xff] %v4392_v24 }
 0x129   : > { %v4394_v50 = vpop.f32.mrb[32].mxu0  ;;  %v4398_v53 = vpop.f32.mrb[32].mxu1 }
 0x12a   : > { %4863 = vst [vmem:[#allocation16_spill] sm:$0xff] %v4394_v50  ;;  %v4396_v58 = vpop.f32.mrb[33].mxu0  ;;  %4865 = vst [vmem:[#allocation18_spill] sm:$0xff] %v4398_v53  ;;  %v4402_v4 = vpop.f32.mrb[33].mxu1 }
 0x12b   : > { %4864 = vst [vmem:[#allocation17_spill] sm:$0xff] %v4396_v58  ;;  %v4400_v1 = vpop.f32.mrb[34].mxu0  ;;  %4867 = vst [vmem:[#allocation20_spill] sm:$0xff] %v4402_v4  ;;  %v4406_v9 = vpop.f32.mrb[34].mxu1 }
 0x12c   : > { %4866 = vst [vmem:[#allocation19_spill] sm:$0xff] %v4400_v1  ;;  %v4404_v6 = vpop.f32.mrb[35].mxu0  ;;  %4869 = vst [vmem:[#allocation22_spill] sm:$0xff] %v4406_v9  ;;  %v4408_v13 = vpop.f32.mrb[35].mxu1 }
 0x12d   : > { %4868 = vst [vmem:[#allocation21_spill] sm:$0xff] %v4404_v6  ;;  %4870 = vst [vmem:[#allocation23_spill] sm:$0xff] %v4408_v13 }
 0x131   : > { %v4410_v16 = vpop.f32.mrb[36].mxu0  ;;  %v4414_v24 = vpop.f32.mrb[36].mxu1 }
 0x132   : > { %4871 = vst [vmem:[#allocation24_spill] sm:$0xff] %v4410_v16  ;;  %v4412_v18 = vpop.f32.mrb[37].mxu0  ;;  %4873 = vst [vmem:[#allocation26_spill] sm:$0xff] %v4414_v24  ;;  %v4418_v58 = vpop.f32.mrb[37].mxu1 }
 0x133   : > { %4872 = vst [vmem:[#allocation25_spill] sm:$0xff] %v4412_v18  ;;  %v4416_v50 = vpop.f32.mrb[38].mxu0  ;;  %4875 = vst [vmem:[#allocation28_spill] sm:$0xff] %v4418_v58  ;;  %v4422_v1 = vpop.f32.mrb[38].mxu1 }
 0x134   : > { %4874 = vst [vmem:[#allocation27_spill] sm:$0xff] %v4416_v50  ;;  %v4420_v53 = vpop.f32.mrb[39].mxu0  ;;  %4877 = vst [vmem:[#allocation30_spill] sm:$0xff] %v4422_v1  ;;  %v4424_v4 = vpop.f32.mrb[39].mxu1 }
 0x135   : > { %4876 = vst [vmem:[#allocation29_spill] sm:$0xff] %v4420_v53  ;;  %4878 = vst [vmem:[#allocation31_spill] sm:$0xff] %v4424_v4 }
 0x139   : > { %v4426_v6 = vpop.f32.mrb[40].mxu0  ;;  %v4430_v13 = vpop.f32.mrb[40].mxu1 }
 0x13a   : > { %4879 = vst [vmem:[#allocation32_spill] sm:$0xff] %v4426_v6  ;;  %v4428_v9 = vpop.f32.mrb[41].mxu0  ;;  %4881 = vst [vmem:[#allocation34_spill] sm:$0xff] %v4430_v13  ;;  %v4434_v18 = vpop.f32.mrb[41].mxu1 }
 0x13b   : > { %4880 = vst [vmem:[#allocation33_spill] sm:$0xff] %v4428_v9  ;;  %v4432_v16 = vpop.f32.mrb[42].mxu0  ;;  %4883 = vst [vmem:[#allocation36_spill] sm:$0xff] %v4434_v18  ;;  %v4438_v50 = vpop.f32.mrb[42].mxu1 }
 0x13c   : > { %4882 = vst [vmem:[#allocation35_spill] sm:$0xff] %v4432_v16  ;;  %v4436_v24 = vpop.f32.mrb[43].mxu0  ;;  %4885 = vst [vmem:[#allocation38_spill] sm:$0xff] %v4438_v50  ;;  %v4440_v58 = vpop.f32.mrb[43].mxu1 }
 0x13d   : > { %4884 = vst [vmem:[#allocation37_spill] sm:$0xff] %v4436_v24  ;;  %4886 = vst [vmem:[#allocation39_spill] sm:$0xff] %v4440_v58 }
 0x141   : > { %v4442_v53 = vpop.f32.mrb[44].mxu0  ;;  %v4446_v4 = vpop.f32.mrb[44].mxu1 }
 0x142   : > { %4887 = vst [vmem:[#allocation40_spill] sm:$0xff] %v4442_v53  ;;  %v4444_v1 = vpop.f32.mrb[45].mxu0  ;;  %4889 = vst [vmem:[#allocation42_spill] sm:$0xff] %v4446_v4  ;;  %v4450_v9 = vpop.f32.mrb[45].mxu1 }
 0x143   : > { %4888 = vst [vmem:[#allocation41_spill] sm:$0xff] %v4444_v1  ;;  %v4448_v6 = vpop.f32.mrb[46].mxu0  ;;  %4891 = vst [vmem:[#allocation44_spill] sm:$0xff] %v4450_v9  ;;  %v4454_v16 = vpop.f32.mrb[46].mxu1 }
 0x144   : > { %4890 = vst [vmem:[#allocation43_spill] sm:$0xff] %v4448_v6  ;;  %v4452_v13 = vpop.f32.mrb[47].mxu0  ;;  %4893 = vst [vmem:[#allocation46_spill] sm:$0xff] %v4454_v16  ;;  %v4456_v18 = vpop.f32.mrb[47].mxu1 }
 0x145   : > { %4892 = vst [vmem:[#allocation45_spill] sm:$0xff] %v4452_v13  ;;  %4894 = vst [vmem:[#allocation47_spill] sm:$0xff] %v4456_v18 }
 0x149   : > { %v4458_v24 = vpop.f32.mrb[48].mxu0  ;;  %v4462_v58 = vpop.f32.mrb[48].mxu1 }
 0x14a   : > { %4895 = vst [vmem:[#allocation48_spill] sm:$0xff] %v4458_v24  ;;  %v4460_v50 = vpop.f32.mrb[49].mxu0  ;;  %4897 = vst [vmem:[#allocation50_spill] sm:$0xff] %v4462_v58  ;;  %v4466_v1 = vpop.f32.mrb[49].mxu1 }
 0x14b   : > { %4896 = vst [vmem:[#allocation49_spill] sm:$0xff] %v4460_v50  ;;  %v4464_v53 = vpop.f32.mrb[50].mxu0  ;;  %4899 = vst [vmem:[#allocation52_spill] sm:$0xff] %v4466_v1  ;;  %v4470_v6 = vpop.f32.mrb[50].mxu1 }
 0x14c   : > { %4898 = vst [vmem:[#allocation51_spill] sm:$0xff] %v4464_v53  ;;  %v4468_v4 = vpop.f32.mrb[51].mxu0  ;;  %4901 = vst [vmem:[#allocation54_spill] sm:$0xff] %v4470_v6  ;;  %v4472_v9 = vpop.f32.mrb[51].mxu1 }
 0x14d   : > { %4900 = vst [vmem:[#allocation53_spill] sm:$0xff] %v4468_v4  ;;  %4902 = vst [vmem:[#allocation55_spill] sm:$0xff] %v4472_v9 }
 0x151   : > { %v4474_v13 = vpop.f32.mrb[52].mxu0  ;;  %v4478_v24 = vpop.f32.mrb[52].mxu1 }
 0x152   : > { %4903 = vst [vmem:[#allocation56_spill] sm:$0xff] %v4474_v13  ;;  %v4476_v16 = vpop.f32.mrb[53].mxu0  ;;  %4905 = vst [vmem:[#allocation58_spill] sm:$0xff] %v4478_v24  ;;  %v4482_v58 = vpop.f32.mrb[53].mxu1 }
 0x153   : > { %4904 = vst [vmem:[#allocation57_spill] sm:$0xff] %v4476_v16  ;;  %v4480_v50 = vpop.f32.mrb[54].mxu0  ;;  %4907 = vst [vmem:[#allocation60_spill] sm:$0xff] %v4482_v58  ;;  %v4486_v1 = vpop.f32.mrb[54].mxu1 }
 0x154   : > { %4906 = vst [vmem:[#allocation59_spill] sm:$0xff] %v4480_v50  ;;  %v4484_v53 = vpop.f32.mrb[55].mxu0  ;;  %4909 = vst [vmem:[#allocation62_spill] sm:$0xff] %v4486_v1  ;;  %v4488_v4 = vpop.f32.mrb[55].mxu1 }
 0x155   : > { %4908 = vst [vmem:[#allocation61_spill] sm:$0xff] %v4484_v53  ;;  %4910 = vst [vmem:[#allocation63_spill] sm:$0xff] %v4488_v4 }
 0x159   : > { %v4490_v6 = vpop.f32.mrb[56].mxu0  ;;  %v4494_v13 = vpop.f32.mrb[56].mxu1 }
 0x15a   : > { %4911 = vst [vmem:[#allocation64_spill] sm:$0xff] %v4490_v6  ;;  %v4492_v9 = vpop.f32.mrb[57].mxu0  ;;  %4913 = vst [vmem:[#allocation66_spill] sm:$0xff] %v4494_v13  ;;  %v4498_v16 = vpop.f32.mrb[57].mxu1 }
 0x15b   : > { %4912 = vst [vmem:[#allocation65_spill] sm:$0xff] %v4492_v9  ;;  %v4496_v18 = vpop.f32.mrb[58].mxu0  ;;  %4915 = vst [vmem:[#allocation68_spill] sm:$0xff] %v4498_v16  ;;  %v4502_v50 = vpop.f32.mrb[58].mxu1 }
 0x15c   : > { %4914 = vst [vmem:[#allocation67_spill] sm:$0xff] %v4496_v18  ;;  %v4500_v24 = vpop.f32.mrb[59].mxu0  ;;  %4917 = vst [vmem:[#allocation70_spill] sm:$0xff] %v4502_v50  ;;  %v4504_v58 = vpop.f32.mrb[59].mxu1 }
 0x15d   : > { %4916 = vst [vmem:[#allocation69_spill] sm:$0xff] %v4500_v24  ;;  %4918 = vst [vmem:[#allocation71_spill] sm:$0xff] %v4504_v58 }
 0x161   : > { %v4508_v1 = vpop.f32.mrb[60].mxu0  ;;  %v3782_v9 = vpop.f32.mrb[60].mxu1 }
 0x162   : > { %4919 = vst [vmem:[#allocation72_spill] sm:$0xff] %v4508_v1  ;;  %v4512_v4 = vpop.f32.mrb[61].mxu0  ;;  %v2483_v18 = vmax.f32 %v4260_v62, %v3782_v9  ;;  %v4515_v16 = vpop.f32.mrb[61].mxu1  ;;  %v4527_v62 = vld [vmem:[%s4843_s2] ss:$0 sm:$0xff] }
 0x163   : > { %4920 = vst [vmem:[#allocation73_spill] sm:$0xff] %v4512_v4  ;;  %4921 = vst [vmem:[#allocation74_spill] sm:$0xff] %v4515_v16  ;;  %v3659_v13 = vpop.f32.mrb[62].mxu0  ;;  %v3783_v24 = vpop.f32.mrb[62].mxu1 }
 0x164   : > { %v2421_v50 = vmax.f32 %v4242_v51, %v3659_v13  ;;  %v4518_v58 = vpop.f32.mrb[63].mxu0  ;;  %v2484_v53 = vmax.f32 %v4247_v54, %v3783_v24  ;;  %v2183_v6 = vpop.f32.mrb[63].mxu1 }
 0x165   : > { %4922 = vst [vmem:[#allocation75_spill] sm:$0xff] %v4518_v58  ;;  %v2482_v1 = vmax.f32 %v4252_v57, %v2183_v6 }
 0x167   : > { %v2543_v9 = vmax.f32 %v2421_v50, %v2482_v1 }
 0x169   : > { %v3662_v59 = vpop.f32.mrb[64].mxu0  ;;  %v2611_v51 = vadd.f32 %v4527_v62, %v2543_v9  ;;  %v3786_v54 = vpop.f32.mrb[64].mxu1 }
 0x16a   : > { %v2424_v13 = vmax.f32 %v4279_v7, %v3662_v59  ;;  %v1700_v24 = vpop.f32.mrb[65].mxu0  ;;  %v2487_v48 = vmax.f32 %v4284_v10, %v3786_v54  ;;  %v2196_v16 = vpop.f32.mrb[65].mxu1 }
 0x16b   : > { %v2422_v4 = vmax.f32 %v4249_v55, %v1700_v24  ;;  %v3663_v57 = vpop.f32.mrb[66].mxu0  ;;  %v2672_v6 = vmax.f32 %v2611_v51, 0.0  ;;  %v2485_v58 = vmax.f32 %v4257_v60, %v2196_v16  ;;  %v3787_v50 = vpop.f32.mrb[66].mxu1 }
 0x16c   : > { %v2425_v52 = vmax.f32 %v4266_v63, %v3663_v57  ;;  %v1703_v1 = vpop.f32.mrb[67].mxu0  ;;  %v2488_v7 = vmax.f32 %v4271_v2, %v3787_v50  ;;  %v2199_v10 = vpop.f32.mrb[67].mxu1 }
 0x16d   : > { %v2544_v59 = vmax.f32 %v2422_v4, %v2483_v18  ;;  %v2423_v55 = vmax.f32 %v4268_v0, %v1703_v1  ;;  %v3412_v9 = vpack.c.bf16 %v2672_v6, %v2672_v6  ;;  %v2546_v51 = vmax.f32 %v2424_v13, %v2485_v58 }
 0x16e   : > { %v2486_v60 = vmax.f32 %v4276_v5, %v2199_v10 }
 0x16f   : > { %v2612_v63 = vadd.f32 %v4527_v62, %v2544_v59  ;;  %v2545_v16 = vmax.f32 %v2423_v55, %v2484_v53  ;;  %2979 = vst.msk [vmem:[%s4538_s27 + $0x8] sm:$0xf] %vm2976_vm3, %v3412_v9  ;;  %v2614_v54 = vadd.f32 %v4527_v62, %v2546_v51 }
 0x170   : > { %v2547_v24 = vmax.f32 %v2425_v52, %v2486_v60 }
 0x171   : > { %v2673_v57 = vmax.f32 %v2612_v63, 0.0  ;;  %v2613_v4 = vadd.f32 %v4527_v62, %v2545_v16  ;;  %v3666_v18 = vpop.f32.mrb[68].mxu0  ;;  %v2675_v2 = vmax.f32 %v2614_v54, 0.0  ;;  %v3790_v13 = vpop.f32.mrb[68].mxu1 }
 0x172   : > { %v2615_v0 = vadd.f32 %v4527_v62, %v2547_v24  ;;  %v2428_v58 = vmax.f32 %v4303_v19, %v3666_v18  ;;  %v1716_v5 = vpop.f32.mrb[69].mxu0  ;;  %v2491_v53 = vmax.f32 %v4307_v21, %v3790_v13  ;;  %v2212_v52 = vpop.f32.mrb[69].mxu1 }
 0x173   : > { %v3413_v6 = vpack.c.bf16 %v2673_v57, %v2673_v57  ;;  %v2674_v50 = vmax.f32 %v2613_v4, 0.0  ;;  %v2426_v1 = vmax.f32 %v4273_v3, %v1716_v5  ;;  %v3667_v59 = vpop.f32.mrb[70].mxu0  ;;  %v3415_v55 = vpack.c.bf16 %v2675_v2, %v2675_v2  ;;  %v3791_v19 = vpop.f32.mrb[70].mxu1 }
 0x174   : > { %v2676_v10 = vmax.f32 %v2615_v0, 0.0  ;;  %v2489_v9 = vmax.f32 %v4281_v8, %v2212_v52  ;;  %v2429_v51 = vmax.f32 %v4290_v11, %v3667_v59  ;;  %v1719_v60 = vpop.f32.mrb[71].mxu0  ;;  %v2492_v21 = vmax.f32 %v4295_v14, %v3791_v19  ;;  %v2215_v54 = vpop.f32.mrb[71].mxu1 }
 0x175   : > { %2980 = vst.msk [vmem:[%s4538_s27 + $0xc] sm:$0xf] %vm2976_vm3, %v3413_v6  ;;  %v3414_v63 = vpack.c.bf16 %v2674_v50, %v2674_v50  ;;  %v2548_v16 = vmax.f32 %v2426_v1, %v2487_v48  ;;  %v2427_v3 = vmax.f32 %v4292_v12, %v1719_v60  ;;  %2982 = vst.msk [vmem:[%s4538_s27 + $0x14] sm:$0xf] %vm2976_vm3, %v3415_v55 }
 0x176   : > { %v3416_v24 = vpack.c.bf16 %v2676_v10, %v2676_v10  ;;  %v2550_v57 = vmax.f32 %v2428_v58, %v2489_v9  ;;  %v2490_v8 = vmax.f32 %v4300_v17, %v2215_v54 }
 0x177   : > { %2981 = vst.msk [vmem:[%s4538_s27 + $0x10] sm:$0xf] %vm2976_vm3, %v3414_v63  ;;  %v2616_v11 = vadd.f32 %v4527_v62, %v2548_v16  ;;  %v2549_v4 = vmax.f32 %v2427_v3, %v2488_v7 }
 0x178   : > { %2983 = vst.msk [vmem:[%s4538_s27 + $0x18] sm:$0xf] %vm2976_vm3, %v3416_v24  ;;  %v2618_v48 = vadd.f32 %v4527_v62, %v2550_v57  ;;  %v2551_v18 = vmax.f32 %v2429_v51, %v2490_v8 }
 0x179   : > { %v2677_v14 = vmax.f32 %v2616_v11, 0.0  ;;  %v2617_v12 = vadd.f32 %v4527_v62, %v2549_v4  ;;  %v3670_v2 = vpop.f32.mrb[72].mxu0  ;;  %v3794_v58 = vpop.f32.mrb[72].mxu1 }
 0x17a   : > { %v2679_v0 = vmax.f32 %v2618_v48, 0.0  ;;  %v2619_v13 = vadd.f32 %v4527_v62, %v2551_v18  ;;  %v2432_v17 = vmax.f32 %v4323_v28, %v3670_v2  ;;  %v1732_v5 = vpop.f32.mrb[73].mxu0  ;;  %v2495_v7 = vmax.f32 %v4327_v30, %v3794_v58  ;;  %v2228_v52 = vpop.f32.mrb[73].mxu1 }
 0x17b   : > { %v3417_v6 = vpack.c.bf16 %v2677_v14, %v2677_v14  ;;  %v2678_v50 = vmax.f32 %v2617_v12, 0.0  ;;  %v2430_v1 = vmax.f32 %v4297_v15, %v1732_v5  ;;  %v3671_v59 = vpop.f32.mrb[74].mxu0  ;;  %v2493_v9 = vmax.f32 %v4305_v20, %v2228_v52  ;;  %v3795_v28 = vpop.f32.mrb[74].mxu1 }
 0x17c   : > { %v3419_v55 = vpack.c.bf16 %v2679_v0, %v2679_v0  ;;  %v2680_v10 = vmax.f32 %v2619_v13, 0.0  ;;  %v2433_v51 = vmax.f32 %v4312_v22, %v3671_v59  ;;  %v1735_v19 = vpop.f32.mrb[75].mxu0  ;;  %v2496_v30 = vmax.f32 %v4317_v25, %v3795_v28  ;;  %v2231_v16 = vpop.f32.mrb[75].mxu1 }
 0x17d   : > { %2984 = vst.msk [vmem:[%s4538_s27 + $0x1c] sm:$0xf] %vm2976_vm3, %v3417_v6  ;;  %v3418_v60 = vpack.c.bf16 %v2678_v50, %v2678_v50  ;;  %v2552_v63 = vmax.f32 %v2430_v1, %v2491_v53  ;;  %v2431_v15 = vmax.f32 %v4314_v23, %v1735_v19  ;;  %v2554_v54 = vmax.f32 %v2432_v17, %v2493_v9 }
 0x17e   : > { %2986 = vst.msk [vmem:[%s4538_s27 + $0x24] sm:$0xf] %vm2976_vm3, %v3419_v55  ;;  %v3420_v3 = vpack.c.bf16 %v2680_v10, %v2680_v10  ;;  %v2494_v20 = vmax.f32 %v4321_v27, %v2231_v16 }
 0x17f   : > { %2985 = vst.msk [vmem:[%s4538_s27 + $0x20] sm:$0xf] %vm2976_vm3, %v3418_v60  ;;  %v2620_v22 = vadd.f32 %v4527_v62, %v2552_v63  ;;  %v2553_v24 = vmax.f32 %v2431_v15, %v2492_v21  ;;  %v2622_v53 = vadd.f32 %v4527_v62, %v2554_v54 }
 0x180   : > { %2987 = vst.msk [vmem:[%s4538_s27 + $0x28] sm:$0xf] %vm2976_vm3, %v3420_v3  ;;  %v2555_v57 = vmax.f32 %v2433_v51, %v2494_v20 }
 0x181   : > { %v2681_v25 = vmax.f32 %v2620_v22, 0.0  ;;  %v2621_v23 = vadd.f32 %v4527_v62, %v2553_v24  ;;  %v3674_v8 = vpop.f32.mrb[76].mxu0  ;;  %v2683_v11 = vmax.f32 %v2622_v53, 0.0  ;;  %v3798_v48 = vpop.f32.mrb[76].mxu1 }
 0x182   : > { %v2623_v4 = vadd.f32 %v4527_v62, %v2555_v57  ;;  %v2436_v27 = vmax.f32 %v4340_v36, %v3674_v8  ;;  %v1748_v18 = vpop.f32.mrb[77].mxu0  ;;  %v2499_v21 = vmax.f32 %v4344_v38, %v3798_v48  ;;  %v2244_v0 = vpop.f32.mrb[77].mxu1 }
 0x183   : > { %v3421_v14 = vpack.c.bf16 %v2681_v25, %v2681_v25  ;;  %v2682_v12 = vmax.f32 %v2621_v23, 0.0  ;;  %v2434_v2 = vmax.f32 %v4319_v26, %v1748_v18  ;;  %v3675_v13 = vpop.f32.mrb[78].mxu0  ;;  %v3423_v17 = vpack.c.bf16 %v2683_v11, %v2683_v11  ;;  %v3799_v36 = vpop.f32.mrb[78].mxu1 }
 0x184   : > { %v2684_v58 = vmax.f32 %v2623_v4, 0.0  ;;  %v2497_v5 = vmax.f32 %v4325_v29, %v2244_v0  ;;  %v2437_v6 = vmax.f32 %v4330_v31, %v3675_v13  ;;  %v1751_v50 = vpop.f32.mrb[79].mxu0  ;;  %v2500_v38 = vmax.f32 %v4334_v33, %v3799_v36  ;;  %v2247_v59 = vpop.f32.mrb[79].mxu1 }
 0x185   : > { %2988 = vst.msk [vmem:[%s4538_s27 + $0x2c] sm:$0xf] %vm2976_vm3, %v3421_v14  ;;  %v3422_v1 = vpack.c.bf16 %v2682_v12, %v2682_v12  ;;  %v2556_v52 = vmax.f32 %v2434_v2, %v2495_v7  ;;  %v2435_v26 = vmax.f32 %v4332_v32, %v1751_v50  ;;  %2990 = vst.msk [vmem:[%s4538_s27 + $0x34] sm:$0xf] %vm2976_vm3, %v3423_v17 }
 0x186   : > { %v3424_v55 = vpack.c.bf16 %v2684_v58, %v2684_v58  ;;  %v2558_v10 = vmax.f32 %v2436_v27, %v2497_v5  ;;  %v2498_v29 = vmax.f32 %v4338_v35, %v2247_v59 }
 0x187   : > { %2989 = vst.msk [vmem:[%s4538_s27 + $0x30] sm:$0xf] %vm2976_vm3, %v3422_v1  ;;  %v2624_v31 = vadd.f32 %v4527_v62, %v2556_v52  ;;  %v2557_v9 = vmax.f32 %v2435_v26, %v2496_v30 }
 0x188   : > { %2991 = vst.msk [vmem:[%s4538_s27 + $0x38] sm:$0xf] %vm2976_vm3, %v3424_v55  ;;  %v2626_v7 = vadd.f32 %v4527_v62, %v2558_v10  ;;  %v2559_v51 = vmax.f32 %v2437_v6, %v2498_v29 }
 0x189   : > { %v2685_v33 = vmax.f32 %v2624_v31, 0.0  ;;  %v2625_v32 = vadd.f32 %v4527_v62, %v2557_v9  ;;  %v3678_v28 = vpop.f32.mrb[80].mxu0  ;;  %v3802_v63 = vpop.f32.mrb[80].mxu1  ;;  %v4923_v31 = vld [vmem:[#allocation4_spill] sm:$0xff] }
 0x18a   : > { %v2687_v19 = vmax.f32 %v2626_v7, 0.0  ;;  %v2627_v60 = vadd.f32 %v4527_v62, %v2559_v51  ;;  %v2440_v35 = vmax.f32 %v4356_v44, %v3678_v28  ;;  %v1764_v15 = vpop.f32.mrb[81].mxu0  ;;  %v2503_v30 = vmax.f32 %v4360_v46, %v3802_v63  ;;  %v2260_v20 = vpop.f32.mrb[81].mxu1 }
 0x18b   : > { %v3425_v16 = vpack.c.bf16 %v2685_v33, %v2685_v33  ;;  %v2686_v3 = vmax.f32 %v2625_v32, 0.0  ;;  %v2438_v54 = vmax.f32 %v4336_v34, %v1764_v15  ;;  %v3679_v22 = vpop.f32.mrb[82].mxu0  ;;  %v2501_v57 = vmax.f32 %v4342_v37, %v2260_v20  ;;  %v3803_v44 = vpop.f32.mrb[82].mxu1  ;;  %v4924_v33 = vld [vmem:[#allocation6_spill] sm:$0xff] }
 0x18c   : > { %v3427_v24 = vpack.c.bf16 %v2687_v19, %v2687_v19  ;;  %v2688_v53 = vmax.f32 %v2627_v60, 0.0  ;;  %v2441_v25 = vmax.f32 %v4346_v39, %v3679_v22  ;;  %v1767_v23 = vpop.f32.mrb[83].mxu0  ;;  %v2504_v46 = vmax.f32 %v4350_v41, %v3803_v44  ;;  %v2263_v4 = vpop.f32.mrb[83].mxu1 }
 0x18d   : > { %2992 = vst.msk [vmem:[%s4538_s27 + $0x3c] sm:$0xf] %vm2976_vm3, %v3425_v16  ;;  %v3426_v8 = vpack.c.bf16 %v2686_v3, %v2686_v3  ;;  %v2560_v11 = vmax.f32 %v2438_v54, %v2499_v21  ;;  %v2439_v34 = vmax.f32 %v4348_v40, %v1767_v23  ;;  %v2562_v48 = vmax.f32 %v2440_v35, %v2501_v57  ;;  %v4925_v16 = vld [vmem:[#allocation13_spill] sm:$0xff] }
 0x18e   : > { %2994 = vst.msk [vmem:[%s4538_s27 + $0x44] sm:$0xf] %vm2976_vm3, %v3427_v24  ;;  %v3428_v27 = vpack.c.bf16 %v2688_v53, %v2688_v53  ;;  %v2502_v37 = vmax.f32 %v4354_v43, %v2263_v4  ;;  %v4926_v24 = vld [vmem:[#allocation15_spill] sm:$0xff]  ;;  %v4927_v57 = vld [vmem:[#allocation5_spill] sm:$0xff]  ;;  %v4929_v4 = vld [vmem:[#allocation8_spill] sm:$0xff] }
 0x18f   : > { %2993 = vst.msk [vmem:[%s4538_s27 + $0x40] sm:$0xf] %vm2976_vm3, %v3426_v8  ;;  %v2628_v39 = vadd.f32 %v4527_v62, %v2560_v11  ;;  %v2561_v18 = vmax.f32 %v2439_v34, %v2500_v38  ;;  %v2630_v14 = vadd.f32 %v4527_v62, %v2562_v48 }
 0x190   : > { %2995 = vst.msk [vmem:[%s4538_s27 + $0x48] sm:$0xf] %vm2976_vm3, %v3428_v27  ;;  %v2563_v12 = vmax.f32 %v2441_v25, %v2502_v37 }
 0x191   : > { %v2689_v41 = vmax.f32 %v2628_v39, 0.0  ;;  %v2629_v40 = vadd.f32 %v4527_v62, %v2561_v18  ;;  %v3682_v21 = vpop.f32.mrb[84].mxu0  ;;  %v2691_v2 = vmax.f32 %v2630_v14, 0.0  ;;  %v3806_v13 = vpop.f32.mrb[84].mxu1  ;;  %v4930_v14 = vld [vmem:[#allocation10_spill] sm:$0xff] }
 0x192   : > { %v2631_v0 = vadd.f32 %v4527_v62, %v2563_v12  ;;  %v2444_v43 = vmax.f32 %v4372_v56, %v3682_v21  ;;  %v1780_v17 = vpop.f32.mrb[85].mxu0  ;;  %v2507_v6 = vmax.f32 %v4376_v61, %v3806_v13  ;;  %v2276_v50 = vpop.f32.mrb[85].mxu1 }
 0x193   : > { %v3429_v58 = vpack.c.bf16 %v2689_v41, %v2689_v41  ;;  %v2690_v5 = vmax.f32 %v2629_v40, 0.0  ;;  %v2442_v36 = vmax.f32 %v4352_v42, %v1780_v17  ;;  %v3683_v1 = vpop.f32.mrb[86].mxu0  ;;  %v3431_v52 = vpack.c.bf16 %v2691_v2, %v2691_v2  ;;  %v3807_v56 = vpop.f32.mrb[86].mxu1  ;;  %v4931_v41 = vld [vmem:[#allocation9_spill] sm:$0xff] }
 0x194   : > { %v2692_v38 = vmax.f32 %v2631_v0, 0.0  ;;  %v2505_v26 = vmax.f32 %v4358_v45, %v2276_v50  ;;  %v2445_v59 = vmax.f32 %v4362_v47, %v3683_v1  ;;  %v1783_v55 = vpop.f32.mrb[87].mxu0  ;;  %v2508_v61 = vmax.f32 %v4366_v49, %v3807_v56  ;;  %v2279_v9 = vpop.f32.mrb[87].mxu1 }
 0x195   : > { %2996 = vst.msk [vmem:[%s4538_s27 + $0x4c] sm:$0xf] %vm2976_vm3, %v3429_v58  ;;  %v3430_v10 = vpack.c.bf16 %v2690_v5, %v2690_v5  ;;  %v2564_v29 = vmax.f32 %v2442_v36, %v2503_v30  ;;  %v2443_v42 = vmax.f32 %v4923_v31, %v1783_v55  ;;  %2998 = vst.msk [vmem:[%s4538_s27 + $0x54] sm:$0xf] %vm2976_vm3, %v3431_v52 }
 0x196   : > { %v3432_v7 = vpack.c.bf16 %v2692_v38, %v2692_v38  ;;  %v2566_v51 = vmax.f32 %v2444_v43, %v2505_v26  ;;  %v2506_v45 = vmax.f32 %v4924_v33, %v2279_v9  ;;  %v4932_v43 = vld [vmem:[#allocation12_spill] sm:$0xff]  ;;  %v4933_v26 = vld [vmem:[#allocation21_spill] sm:$0xff] }
 0x197   : > { %2997 = vst.msk [vmem:[%s4538_s27 + $0x50] sm:$0xf] %vm2976_vm3, %v3430_v10  ;;  %v2632_v47 = vadd.f32 %v4527_v62, %v2564_v29  ;;  %v2565_v32 = vmax.f32 %v2443_v42, %v2504_v46  ;;  %v4928_v46 = vld [vmem:[#allocation7_spill] sm:$0xff] }
 0x198   : > { %2999 = vst.msk [vmem:[%s4538_s27 + $0x58] sm:$0xf] %vm2976_vm3, %v3432_v7  ;;  %v2634_v28 = vadd.f32 %v4527_v62, %v2566_v51  ;;  %v2567_v19 = vmax.f32 %v2445_v59, %v2506_v45  ;;  %v4935_v42 = vld [vmem:[#allocation11_spill] sm:$0xff] }
 0x199   : > { %v2693_v49 = vmax.f32 %v2632_v47, 0.0  ;;  %v2633_v60 = vadd.f32 %v4527_v62, %v2565_v32  ;;  %v3686_v35 = vpop.f32.mrb[88].mxu0  ;;  %v3810_v30 = vpop.f32.mrb[88].mxu1  ;;  %v4936_v47 = vld [vmem:[#allocation14_spill] sm:$0xff] }
 0x19a   : > { %v2695_v63 = vmax.f32 %v2634_v28, 0.0  ;;  %v2635_v15 = vadd.f32 %v4527_v62, %v2567_v19  ;;  %v2448_v3 = vmax.f32 %v4925_v16, %v3686_v35  ;;  %v1796_v54 = vpop.f32.mrb[89].mxu0  ;;  %v2511_v53 = vmax.f32 %v4926_v24, %v3810_v30  ;;  %v2292_v44 = vpop.f32.mrb[89].mxu1  ;;  %v4937_v28 = vld [vmem:[#allocation16_spill] sm:$0xff] }
 0x19b   : > { %v3433_v20 = vpack.c.bf16 %v2693_v49, %v2693_v49  ;;  %v2694_v22 = vmax.f32 %v2633_v60, 0.0  ;;  %v2446_v25 = vmax.f32 %v4927_v57, %v1796_v54  ;;  %v3687_v23 = vpop.f32.mrb[90].mxu0  ;;  %v2509_v34 = vmax.f32 %v4928_v46, %v2292_v44  ;;  %v3811_v48 = vpop.f32.mrb[90].mxu1  ;;  %v4940_v24 = vld [vmem:[#allocation20_spill] sm:$0xff] }
 0x19c   : > { %v3435_v8 = vpack.c.bf16 %v2695_v63, %v2695_v63  ;;  %v2696_v11 = vmax.f32 %v2635_v15, 0.0  ;;  %v2449_v27 = vmax.f32 %v4929_v4, %v3687_v23  ;;  %v1799_v37 = vpop.f32.mrb[91].mxu0  ;;  %v2512_v12 = vmax.f32 %v4930_v14, %v3811_v48  ;;  %v2295_v21 = vpop.f32.mrb[91].mxu1  ;;  %v4938_v15 = vld [vmem:[#allocation18_spill] sm:$0xff] }
 0x19d   : > { %3000 = vst.msk [vmem:[%s4538_s27 + $0x5c] sm:$0xf] %vm2976_vm3, %v3433_v20  ;;  %v3434_v39 = vpack.c.bf16 %v2694_v22, %v2694_v22  ;;  %v2568_v18 = vmax.f32 %v2446_v25, %v2507_v6  ;;  %v2447_v40 = vmax.f32 %v4931_v41, %v1799_v37  ;;  %v2570_v0 = vmax.f32 %v2448_v3, %v2509_v34  ;;  %v4939_v3 = vld [vmem:[#allocation17_spill] sm:$0xff] }
 0x19e   : > { %3002 = vst.msk [vmem:[%s4538_s27 + $0x64] sm:$0xf] %vm2976_vm3, %v3435_v8  ;;  %v3436_v2 = vpack.c.bf16 %v2696_v11, %v2696_v11  ;;  %v2510_v13 = vmax.f32 %v4932_v43, %v2295_v21 }
 0x19f   : > { %3001 = vst.msk [vmem:[%s4538_s27 + $0x60] sm:$0xf] %vm2976_vm3, %v3434_v39  ;;  %v2636_v17 = vadd.f32 %v4527_v62, %v2568_v18  ;;  %v2569_v58 = vmax.f32 %v2447_v40, %v2508_v61  ;;  %v2638_v5 = vadd.f32 %v4527_v62, %v2570_v0  ;;  %v4934_v61 = vld [vmem:[#allocation23_spill] sm:$0xff] }
 0x1a0   : > { %3003 = vst.msk [vmem:[%s4538_s27 + $0x68] sm:$0xf] %vm2976_vm3, %v3436_v2  ;;  %v2571_v6 = vmax.f32 %v2449_v27, %v2510_v13  ;;  %v4941_v27 = vld [vmem:[#allocation29_spill] sm:$0xff]  ;;  %v4943_v40 = vld [vmem:[#allocation19_spill] sm:$0xff] }
 0x1a1   : > { %v2697_v36 = vmax.f32 %v2636_v17, 0.0  ;;  %v2637_v50 = vadd.f32 %v4527_v62, %v2569_v58  ;;  %v3690_v1 = vpop.f32.mrb[92].mxu0  ;;  %v2699_v52 = vmax.f32 %v2638_v5, 0.0  ;;  %v3814_v56 = vpop.f32.mrb[92].mxu1  ;;  %v4944_v17 = vld [vmem:[#allocation22_spill] sm:$0xff]  ;;  %v4945_v5 = vld [vmem:[#allocation24_spill] sm:$0xff] }
 0x1a2   : > { %v2639_v38 = vadd.f32 %v4527_v62, %v2571_v6  ;;  %v2452_v59 = vmax.f32 %v4933_v26, %v3690_v1  ;;  %v1812_v55 = vpop.f32.mrb[93].mxu0  ;;  %v2515_v31 = vmax.f32 %v4934_v61, %v3814_v56  ;;  %v2308_v7 = vpop.f32.mrb[93].mxu1  ;;  %v4948_v61 = vld [vmem:[#allocation28_spill] sm:$0xff] }
 0x1a3   : > { %v3437_v10 = vpack.c.bf16 %v2697_v36, %v2697_v36  ;;  %v2698_v29 = vmax.f32 %v2637_v50, 0.0  ;;  %v2450_v9 = vmax.f32 %v4935_v42, %v1812_v55  ;;  %v3691_v51 = vpop.f32.mrb[94].mxu0  ;;  %v3439_v33 = vpack.c.bf16 %v2699_v52, %v2699_v52  ;;  %v3815_v49 = vpop.f32.mrb[94].mxu1 }
 0x1a4   : > { %v2700_v45 = vmax.f32 %v2639_v38, 0.0  ;;  %v2513_v32 = vmax.f32 %v4936_v47, %v2308_v7  ;;  %v2453_v19 = vmax.f32 %v4937_v28, %v3691_v51  ;;  %v1815_v60 = vpop.f32.mrb[95].mxu0  ;;  %v2516_v16 = vmax.f32 %v4938_v15, %v3815_v49  ;;  %v2311_v54 = vpop.f32.mrb[95].mxu1  ;;  %v4946_v38 = vld [vmem:[#allocation26_spill] sm:$0xff] }
 0x1a5   : > { %3004 = vst.msk [vmem:[%s4538_s27 + $0x6c] sm:$0xf] %vm2976_vm3, %v3437_v10  ;;  %v3438_v35 = vpack.c.bf16 %v2698_v29, %v2698_v29  ;;  %v2572_v63 = vmax.f32 %v2450_v9, %v2511_v53  ;;  %v2451_v30 = vmax.f32 %v4939_v3, %v1815_v60  ;;  %3006 = vst.msk [vmem:[%s4538_s27 + $0x74] sm:$0xf] %vm2976_vm3, %v3439_v33 }
 0x1a6   : > { %v3440_v20 = vpack.c.bf16 %v2700_v45, %v2700_v45  ;;  %v2574_v22 = vmax.f32 %v2452_v59, %v2513_v32  ;;  %v2514_v57 = vmax.f32 %v4940_v24, %v2311_v54  ;;  %v4947_v59 = vld [vmem:[#allocation25_spill] sm:$0xff] }
 0x1a7   : > { %3005 = vst.msk [vmem:[%s4538_s27 + $0x70] sm:$0xf] %vm2976_vm3, %v3438_v35  ;;  %v2640_v25 = vadd.f32 %v4527_v62, %v2572_v63  ;;  %v2573_v44 = vmax.f32 %v2451_v30, %v2512_v12  ;;  %v4942_v12 = vld [vmem:[#allocation31_spill] sm:$0xff] }
 0x1a8   : > { %3007 = vst.msk [vmem:[%s4538_s27 + $0x78] sm:$0xf] %vm2976_vm3, %v3440_v20  ;;  %v2642_v53 = vadd.f32 %v4527_v62, %v2574_v22  ;;  %v2575_v23 = vmax.f32 %v2453_v19, %v2514_v57  ;;  %v4949_v19 = vld [vmem:[#allocation37_spill] sm:$0xff]  ;;  %v4951_v30 = vld [vmem:[#allocation27_spill] sm:$0xff] }
 0x1a9   : > { %v2701_v8 = vmax.f32 %v2640_v25, 0.0  ;;  %v2641_v11 = vadd.f32 %v4527_v62, %v2573_v44  ;;  %v3694_v46 = vpop.f32.mrb[96].mxu0  ;;  %v3818_v37 = vpop.f32.mrb[96].mxu1  ;;  %v4952_v25 = vld [vmem:[#allocation30_spill] sm:$0xff] }
 0x1aa   : > { %v2703_v34 = vmax.f32 %v2642_v53, 0.0  ;;  %v2643_v4 = vadd.f32 %v4527_v62, %v2575_v23  ;;  %v2456_v48 = vmax.f32 %v4941_v27, %v3694_v46  ;;  %v1828_v39 = vpop.f32.mrb[97].mxu0  ;;  %v2519_v41 = vmax.f32 %v4942_v12, %v3818_v37  ;;  %v2324_v2 = vpop.f32.mrb[97].mxu1  ;;  %v4953_v53 = vld [vmem:[#allocation32_spill] sm:$0xff] }
 0x1ab   : > { %v3441_v18 = vpack.c.bf16 %v2701_v8, %v2701_v8  ;;  %v2702_v14 = vmax.f32 %v2641_v11, 0.0  ;;  %v2454_v21 = vmax.f32 %v4943_v40, %v1828_v39  ;;  %v3695_v0 = vpop.f32.mrb[98].mxu0  ;;  %v2517_v58 = vmax.f32 %v4944_v17, %v2324_v2  ;;  %v3819_v36 = vpop.f32.mrb[98].mxu1  ;;  %v4956_v12 = vld [vmem:[#allocation36_spill] sm:$0xff] }
 0x1ac   : > { %v3443_v43 = vpack.c.bf16 %v2703_v34, %v2703_v34  ;;  %v2704_v13 = vmax.f32 %v2643_v4, 0.0  ;;  %v2457_v6 = vmax.f32 %v4945_v5, %v3695_v0  ;;  %v1831_v50 = vpop.f32.mrb[99].mxu0  ;;  %v2520_v26 = vmax.f32 %v4946_v38, %v3819_v36  ;;  %v2327_v55 = vpop.f32.mrb[99].mxu1  ;;  %v4954_v4 = vld [vmem:[#allocation34_spill] sm:$0xff] }
 0x1ad   : > { %3008 = vst.msk [vmem:[%s4538_s27 + $0x7c] sm:$0xf] %vm2976_vm3, %v3441_v18  ;;  %v3442_v1 = vpack.c.bf16 %v2702_v14, %v2702_v14  ;;  %v2576_v52 = vmax.f32 %v2454_v21, %v2515_v31  ;;  %v2455_v56 = vmax.f32 %v4947_v59, %v1831_v50  ;;  %v2578_v29 = vmax.f32 %v2456_v48, %v2517_v58  ;;  %v4955_v48 = vld [vmem:[#allocation33_spill] sm:$0xff] }
 0x1ae   : > { %3010 = vst.msk [vmem:[%s4538_s27 + $0x84] sm:$0xf] %vm2976_vm3, %v3443_v43  ;;  %v3444_v10 = vpack.c.bf16 %v2704_v13, %v2704_v13  ;;  %v2518_v42 = vmax.f32 %v4948_v61, %v2327_v55 }
 0x1af   : > { %3009 = vst.msk [vmem:[%s4538_s27 + $0x80] sm:$0xf] %vm2976_vm3, %v3442_v1  ;;  %v2644_v9 = vadd.f32 %v4527_v62, %v2576_v52  ;;  %v2577_v7 = vmax.f32 %v2455_v56, %v2516_v16  ;;  %v2646_v31 = vadd.f32 %v4527_v62, %v2578_v29  ;;  %v4950_v16 = vld [vmem:[#allocation39_spill] sm:$0xff] }
 0x1b0   : > { %3011 = vst.msk [vmem:[%s4538_s27 + $0x88] sm:$0xf] %vm2976_vm3, %v3444_v10  ;;  %v2579_v51 = vmax.f32 %v2457_v6, %v2518_v42  ;;  %v4957_v6 = vld [vmem:[#allocation45_spill] sm:$0xff]  ;;  %v4959_v56 = vld [vmem:[#allocation35_spill] sm:$0xff] }
 0x1b1   : > { %v2705_v33 = vmax.f32 %v2644_v9, 0.0  ;;  %v2645_v45 = vadd.f32 %v4527_v62, %v2577_v7  ;;  %v3698_v47 = vpop.f32.mrb[100].mxu0  ;;  %v2707_v32 = vmax.f32 %v2646_v31, 0.0  ;;  %v3822_v60 = vpop.f32.mrb[100].mxu1  ;;  %v4960_v9 = vld [vmem:[#allocation38_spill] sm:$0xff]  ;;  %v4961_v31 = vld [vmem:[#allocation40_spill] sm:$0xff] }
 0x1b2   : > { %v2647_v28 = vadd.f32 %v4527_v62, %v2579_v51  ;;  %v2460_v49 = vmax.f32 %v4949_v19, %v3698_v47  ;;  %v1844_v35 = vpop.f32.mrb[101].mxu0  ;;  %v2523_v3 = vmax.f32 %v4950_v16, %v3822_v60  ;;  %v2340_v20 = vpop.f32.mrb[101].mxu1  ;;  %v4964_v16 = vld [vmem:[#allocation44_spill] sm:$0xff] }
 0x1b3   : > { %v3445_v63 = vpack.c.bf16 %v2705_v33, %v2705_v33  ;;  %v2706_v15 = vmax.f32 %v2645_v45, 0.0  ;;  %v2458_v54 = vmax.f32 %v4951_v30, %v1844_v35  ;;  %v3699_v22 = vpop.f32.mrb[102].mxu0  ;;  %v3447_v24 = vpack.c.bf16 %v2707_v32, %v2707_v32  ;;  %v3823_v8 = vpop.f32.mrb[102].mxu1 }
 0x1b4   : > { %v2708_v57 = vmax.f32 %v2647_v28, 0.0  ;;  %v2521_v44 = vmax.f32 %v4952_v25, %v2340_v20  ;;  %v2461_v23 = vmax.f32 %v4953_v53, %v3699_v22  ;;  %v1847_v11 = vpop.f32.mrb[103].mxu0  ;;  %v2524_v27 = vmax.f32 %v4954_v4, %v3823_v8  ;;  %v2343_v39 = vpop.f32.mrb[103].mxu1  ;;  %v4962_v28 = vld [vmem:[#allocation42_spill] sm:$0xff] }
 0x1b5   : > { %3012 = vst.msk [vmem:[%s4538_s27 + $0x8c] sm:$0xf] %vm2976_vm3, %v3445_v63  ;;  %v3446_v46 = vpack.c.bf16 %v2706_v15, %v2706_v15  ;;  %v2580_v34 = vmax.f32 %v2458_v54, %v2519_v41  ;;  %v2459_v37 = vmax.f32 %v4955_v48, %v1847_v11  ;;  %3014 = vst.msk [vmem:[%s4538_s27 + $0x94] sm:$0xf] %vm2976_vm3, %v3447_v24 }
 0x1b6   : > { %v3448_v18 = vpack.c.bf16 %v2708_v57, %v2708_v57  ;;  %v2582_v14 = vmax.f32 %v2460_v49, %v2521_v44  ;;  %v2522_v40 = vmax.f32 %v4956_v12, %v2343_v39  ;;  %v4963_v49 = vld [vmem:[#allocation41_spill] sm:$0xff] }
 0x1b7   : > { %3013 = vst.msk [vmem:[%s4538_s27 + $0x90] sm:$0xf] %vm2976_vm3, %v3446_v46  ;;  %v2648_v21 = vadd.f32 %v4527_v62, %v2580_v34  ;;  %v2581_v2 = vmax.f32 %v2459_v37, %v2520_v26  ;;  %v4958_v26 = vld [vmem:[#allocation47_spill] sm:$0xff] }
 0x1b8   : > { %3015 = vst.msk [vmem:[%s4538_s27 + $0x98] sm:$0xf] %vm2976_vm3, %v3448_v18  ;;  %v2650_v41 = vadd.f32 %v4527_v62, %v2582_v14  ;;  %v2583_v0 = vmax.f32 %v2461_v23, %v2522_v40  ;;  %v4965_v23 = vld [vmem:[#allocation53_spill] sm:$0xff]  ;;  %v4967_v37 = vld [vmem:[#allocation43_spill] sm:$0xff] }
 0x1b9   : > { %v2709_v43 = vmax.f32 %v2648_v21, 0.0  ;;  %v2649_v13 = vadd.f32 %v4527_v62, %v2581_v2  ;;  %v3702_v17 = vpop.f32.mrb[104].mxu0  ;;  %v3826_v50 = vpop.f32.mrb[104].mxu1  ;;  %v4968_v21 = vld [vmem:[#allocation46_spill] sm:$0xff] }
 0x1ba   : > { %v2711_v58 = vmax.f32 %v2650_v41, 0.0  ;;  %v2651_v5 = vadd.f32 %v4527_v62, %v2583_v0  ;;  %v2464_v36 = vmax.f32 %v4957_v6, %v3702_v17  ;;  %v1860_v1 = vpop.f32.mrb[105].mxu0  ;;  %v2527_v59 = vmax.f32 %v4958_v26, %v3826_v50  ;;  %v2356_v10 = vpop.f32.mrb[105].mxu1  ;;  %v4969_v41 = vld [vmem:[#allocation48_spill] sm:$0xff] }
 0x1bb   : > { %v3449_v52 = vpack.c.bf16 %v2709_v43, %v2709_v43  ;;  %v2710_v38 = vmax.f32 %v2649_v13, 0.0  ;;  %v2462_v55 = vmax.f32 %v4959_v56, %v1860_v1  ;;  %v3703_v29 = vpop.f32.mrb[106].mxu0  ;;  %v2525_v7 = vmax.f32 %v4960_v9, %v2356_v10  ;;  %v3827_v33 = vpop.f32.mrb[106].mxu1  ;;  %v4972_v26 = vld [vmem:[#allocation52_spill] sm:$0xff] }
 0x1bc   : > { %v3451_v61 = vpack.c.bf16 %v2711_v58, %v2711_v58  ;;  %v2712_v42 = vmax.f32 %v2651_v5, 0.0  ;;  %v2465_v51 = vmax.f32 %v4961_v31, %v3703_v29  ;;  %v1863_v45 = vpop.f32.mrb[107].mxu0  ;;  %v2528_v19 = vmax.f32 %v4962_v28, %v3827_v33  ;;  %v2359_v35 = vpop.f32.mrb[107].mxu1  ;;  %v4970_v5 = vld [vmem:[#allocation50_spill] sm:$0xff] }
 0x1bd   : > { %3016 = vst.msk [vmem:[%s4538_s27 + $0x9c] sm:$0xf] %vm2976_vm3, %v3449_v52  ;;  %v3450_v47 = vpack.c.bf16 %v2710_v38, %v2710_v38  ;;  %v2584_v32 = vmax.f32 %v2462_v55, %v2523_v3  ;;  %v2463_v60 = vmax.f32 %v4963_v49, %v1863_v45  ;;  %v2586_v15 = vmax.f32 %v2464_v36, %v2525_v7  ;;  %v4971_v36 = vld [vmem:[#allocation49_spill] sm:$0xff] }
 0x1be   : > { %3018 = vst.msk [vmem:[%s4538_s27 + $0xa4] sm:$0xf] %vm2976_vm3, %v3451_v61  ;;  %v3452_v63 = vpack.c.bf16 %v2712_v42, %v2712_v42  ;;  %v2526_v30 = vmax.f32 %v4964_v16, %v2359_v35 }
 0x1bf   : > { %3017 = vst.msk [vmem:[%s4538_s27 + $0xa0] sm:$0xf] %vm2976_vm3, %v3450_v47  ;;  %v2652_v54 = vadd.f32 %v4527_v62, %v2584_v32  ;;  %v2585_v20 = vmax.f32 %v2463_v60, %v2524_v27  ;;  %v2654_v3 = vadd.f32 %v4527_v62, %v2586_v15  ;;  %v4966_v27 = vld [vmem:[#allocation55_spill] sm:$0xff] }
 0x1c0   : > { %3019 = vst.msk [vmem:[%s4538_s27 + $0xa8] sm:$0xf] %vm2976_vm3, %v3452_v63  ;;  %v2587_v22 = vmax.f32 %v2465_v51, %v2526_v30  ;;  %v4973_v51 = vld [vmem:[#allocation61_spill] sm:$0xff]  ;;  %v4975_v60 = vld [vmem:[#allocation51_spill] sm:$0xff] }
 0x1c1   : > { %v2713_v24 = vmax.f32 %v2652_v54, 0.0  ;;  %v2653_v57 = vadd.f32 %v4527_v62, %v2585_v20  ;;  %v3706_v25 = vpop.f32.mrb[108].mxu0  ;;  %v2715_v44 = vmax.f32 %v2654_v3, 0.0  ;;  %v3830_v11 = vpop.f32.mrb[108].mxu1  ;;  %v4976_v54 = vld [vmem:[#allocation54_spill] sm:$0xff]  ;;  %v4977_v3 = vld [vmem:[#allocation56_spill] sm:$0xff] }
 0x1c2   : > { %v2655_v53 = vadd.f32 %v4527_v62, %v2587_v22  ;;  %v2468_v8 = vmax.f32 %v4965_v23, %v3706_v25  ;;  %v1876_v46 = vpop.f32.mrb[109].mxu0  ;;  %v2531_v48 = vmax.f32 %v4966_v27, %v3830_v11  ;;  %v2372_v18 = vpop.f32.mrb[109].mxu1  ;;  %v4980_v27 = vld [vmem:[#allocation60_spill] sm:$0xff] }
 0x1c3   : > { %v3453_v34 = vpack.c.bf16 %v2713_v24, %v2713_v24  ;;  %v2714_v4 = vmax.f32 %v2653_v57, 0.0  ;;  %v2466_v39 = vmax.f32 %v4967_v37, %v1876_v46  ;;  %v3707_v14 = vpop.f32.mrb[110].mxu0  ;;  %v3455_v12 = vpack.c.bf16 %v2715_v44, %v2715_v44  ;;  %v3831_v43 = vpop.f32.mrb[110].mxu1 }
 0x1c4   : > { %v2716_v40 = vmax.f32 %v2655_v53, 0.0  ;;  %v2529_v2 = vmax.f32 %v4968_v21, %v2372_v18  ;;  %v2469_v0 = vmax.f32 %v4969_v41, %v3707_v14  ;;  %v1879_v13 = vpop.f32.mrb[111].mxu0  ;;  %v2532_v6 = vmax.f32 %v4970_v5, %v3831_v43  ;;  %v2375_v1 = vpop.f32.mrb[111].mxu1  ;;  %v4978_v53 = vld [vmem:[#allocation58_spill] sm:$0xff] }
 0x1c5   : > { %3020 = vst.msk [vmem:[%s4538_s27 + $0xac] sm:$0xf] %vm2976_vm3, %v3453_v34  ;;  %v3454_v17 = vpack.c.bf16 %v2714_v4, %v2714_v4  ;;  %v2588_v58 = vmax.f32 %v2466_v39, %v2527_v59  ;;  %v2467_v50 = vmax.f32 %v4971_v36, %v1879_v13  ;;  %3022 = vst.msk [vmem:[%s4538_s27 + $0xb4] sm:$0xf] %vm2976_vm3, %v3455_v12 }
 0x1c6   : > { %v3456_v52 = vpack.c.bf16 %v2716_v40, %v2716_v40  ;;  %v2590_v38 = vmax.f32 %v2468_v8, %v2529_v2  ;;  %v2530_v56 = vmax.f32 %v4972_v26, %v2375_v1  ;;  %v4979_v8 = vld [vmem:[#allocation57_spill] sm:$0xff] }
 0x1c7   : > { %3021 = vst.msk [vmem:[%s4538_s27 + $0xb0] sm:$0xf] %vm2976_vm3, %v3454_v17  ;;  %v2656_v55 = vadd.f32 %v4527_v62, %v2588_v58  ;;  %v2589_v10 = vmax.f32 %v2467_v50, %v2528_v19  ;;  %v4974_v19 = vld [vmem:[#allocation63_spill] sm:$0xff] }
 0x1c8   : > { %3023 = vst.msk [vmem:[%s4538_s27 + $0xb8] sm:$0xf] %vm2976_vm3, %v3456_v52  ;;  %v2658_v59 = vadd.f32 %v4527_v62, %v2590_v38  ;;  %v2591_v29 = vmax.f32 %v2469_v0, %v2530_v56  ;;  %v4981_v0 = vld [vmem:[#allocation69_spill] sm:$0xff]  ;;  %v4983_v50 = vld [vmem:[#allocation59_spill] sm:$0xff] }
 0x1c9   : > { %v2717_v61 = vmax.f32 %v2656_v55, 0.0  ;;  %v2657_v42 = vadd.f32 %v4527_v62, %v2589_v10  ;;  %v3710_v9 = vpop.f32.mrb[112].mxu0  ;;  %v3834_v45 = vpop.f32.mrb[112].mxu1  ;;  %v4984_v55 = vld [vmem:[#allocation62_spill] sm:$0xff] }
 0x1ca   : > { %v2719_v7 = vmax.f32 %v2658_v59, 0.0  ;;  %v2659_v31 = vadd.f32 %v4527_v62, %v2591_v29  ;;  %v2472_v33 = vmax.f32 %v4973_v51, %v3710_v9  ;;  %v1892_v47 = vpop.f32.mrb[113].mxu0  ;;  %v2535_v49 = vmax.f32 %v4974_v19, %v3834_v45  ;;  %v2388_v63 = vpop.f32.mrb[113].mxu1  ;;  %v4985_v59 = vld [vmem:[#allocation64_spill] sm:$0xff] }
 0x1cb   : > { %v3457_v32 = vpack.c.bf16 %v2717_v61, %v2717_v61  ;;  %v2718_v28 = vmax.f32 %v2657_v42, 0.0  ;;  %v2470_v35 = vmax.f32 %v4975_v60, %v1892_v47  ;;  %v3711_v15 = vpop.f32.mrb[114].mxu0  ;;  %v2533_v20 = vmax.f32 %v4976_v54, %v2388_v63  ;;  %v3835_v24 = vpop.f32.mrb[114].mxu1  ;;  %v4988_v19 = vld [vmem:[#allocation68_spill] sm:$0xff] }
 0x1cc   : > { %v3459_v16 = vpack.c.bf16 %v2719_v7, %v2719_v7  ;;  %v2720_v30 = vmax.f32 %v2659_v31, 0.0  ;;  %v2473_v22 = vmax.f32 %v4977_v3, %v3711_v15  ;;  %v1895_v57 = vpop.f32.mrb[115].mxu0  ;;  %v2536_v23 = vmax.f32 %v4978_v53, %v3835_v24  ;;  %v2391_v46 = vpop.f32.mrb[115].mxu1  ;;  %v4986_v31 = vld [vmem:[#allocation66_spill] sm:$0xff]  ;;  %v4990_v53 = vld [vmem:[#allocation67_spill] sm:$0xff] }
 0x1cd   : > { %3024 = vst.msk [vmem:[%s4538_s27 + $0xbc] sm:$0xf] %vm2976_vm3, %v3457_v32  ;;  %v3458_v25 = vpack.c.bf16 %v2718_v28, %v2718_v28  ;;  %v2592_v44 = vmax.f32 %v2470_v35, %v2531_v48  ;;  %v2471_v11 = vmax.f32 %v4979_v8, %v1895_v57  ;;  %v2594_v4 = vmax.f32 %v2472_v33, %v2533_v20  ;;  %v4987_v33 = vld [vmem:[#allocation65_spill] sm:$0xff] }
 0x1ce   : > { %3026 = vst.msk [vmem:[%s4538_s27 + $0xc4] sm:$0xf] %vm2976_vm3, %v3459_v16  ;;  %v3460_v34 = vpack.c.bf16 %v2720_v30, %v2720_v30  ;;  %v2534_v37 = vmax.f32 %v4980_v27, %v2391_v46 }
 0x1cf   : > { %3025 = vst.msk [vmem:[%s4538_s27 + $0xc0] sm:$0xf] %vm2976_vm3, %v3458_v25  ;;  %v2660_v39 = vadd.f32 %v4527_v62, %v2592_v44  ;;  %v2593_v18 = vmax.f32 %v2471_v11, %v2532_v6  ;;  %v2662_v48 = vadd.f32 %v4527_v62, %v2594_v4  ;;  %v4982_v6 = vld [vmem:[#allocation71_spill] sm:$0xff] }
 0x1d0   : > { %3027 = vst.msk [vmem:[%s4538_s27 + $0xc8] sm:$0xf] %vm2976_vm3, %v3460_v34  ;;  %v2595_v14 = vmax.f32 %v2473_v22, %v2534_v37  ;;  %v4989_v22 = vld [vmem:[#allocation70_spill] sm:$0xff]  ;;  %v4992_v4 = vld [vmem:[#allocation75_spill] sm:$0xff] }
 0x1d1   : > { %v2721_v12 = vmax.f32 %v2660_v39, 0.0  ;;  %v2661_v40 = vadd.f32 %v4527_v62, %v2593_v18  ;;  %v3714_v21 = vpop.f32.mrb[116].mxu0  ;;  %v2723_v2 = vmax.f32 %v2662_v48, 0.0  ;;  %v3838_v13 = vpop.f32.mrb[116].mxu1  ;;  %v4991_v34 = vld [vmem:[#allocation2_spill] sm:$0xff] }
 0x1d2   : > { %v2663_v41 = vadd.f32 %v4527_v62, %v2595_v14  ;;  %v2476_v43 = vmax.f32 %v4981_v0, %v3714_v21  ;;  %v1908_v17 = vpop.f32.mrb[117].mxu0  ;;  %v2539_v36 = vmax.f32 %v4982_v6, %v3838_v13  ;;  %v2404_v52 = vpop.f32.mrb[117].mxu1  ;;  %v4993_v27 = vmax.f32 %v4991_v34, %v4992_v4  ;;  %v4994_v39 = vld [vmem:[#allocation74_spill] sm:$0xff]  ;;  %v4996_v0 = vld [vmem:[#allocation3_spill] sm:$0xff] }
 0x1d3   : > { %v3461_v58 = vpack.c.bf16 %v2721_v12, %v2721_v12  ;;  %v2722_v5 = vmax.f32 %v2661_v40, 0.0  ;;  %v2474_v1 = vmax.f32 %v4983_v50, %v1908_v17  ;;  %v3715_v38 = vpop.f32.mrb[118].mxu0  ;;  %v3463_v26 = vpack.c.bf16 %v2723_v2, %v2723_v2  ;;  %v3839_v61 = vpop.f32.mrb[118].mxu1  ;;  %v4995_v12 = vld [vmem:[#allocation73_spill] sm:$0xff]  ;;  %v3974_v2 = vld [vmem:[%s4843_s2] ss:$0 sm:$0xff] }
 0x1d4   : > { %v2724_v56 = vmax.f32 %v2663_v41, 0.0  ;;  %v2537_v10 = vmax.f32 %v4984_v55, %v2404_v52  ;;  %v2477_v29 = vmax.f32 %v4985_v59, %v3715_v38  ;;  %v1911_v42 = vpop.f32.mrb[119].mxu0  ;;  %v2540_v51 = vmax.f32 %v4986_v31, %v3839_v61  ;;  %v2407_v47 = vpop.f32.mrb[119].mxu1 }
 0x1d5   : > { %3028 = vst.msk [vmem:[%s4538_s27 + $0xcc] sm:$0xf] %vm2976_vm3, %v3461_v58  ;;  %v3462_v9 = vpack.c.bf16 %v2722_v5, %v2722_v5  ;;  %v2596_v7 = vmax.f32 %v2474_v1, %v2535_v49  ;;  %v2475_v45 = vmax.f32 %v4987_v33, %v1911_v42  ;;  %3030 = vst.msk [vmem:[%s4538_s27 + $0xd4] sm:$0xf] %vm2976_vm3, %v3463_v26 }
 0x1d6   : > { %v3464_v32 = vpack.c.bf16 %v2724_v56, %v2724_v56  ;;  %v2598_v28 = vmax.f32 %v2476_v43, %v2537_v10  ;;  %v2538_v60 = vmax.f32 %v4988_v19, %v2407_v47  ;;  %v4997_v43 = vld [vmem:[#allocation72_spill] sm:$0xff] }
 0x1d7   : > { %3029 = vst.msk [vmem:[%s4538_s27 + $0xd0] sm:$0xf] %vm2976_vm3, %v3462_v9  ;;  %v2664_v35 = vadd.f32 %v4527_v62, %v2596_v7  ;;  %v2597_v63 = vmax.f32 %v2475_v45, %v2536_v23  ;;  %v4998_v13 = vmax.f32 %v4996_v0, %v4997_v43 }
 0x1d8   : > { %3031 = vst.msk [vmem:[%s4538_s27 + $0xd8] sm:$0xf] %vm2976_vm3, %v3464_v32  ;;  %v2666_v49 = vadd.f32 %v4527_v62, %v2598_v28  ;;  %v2599_v15 = vmax.f32 %v2477_v29, %v2538_v60 }
 0x1d9   : > { %v2725_v16 = vmax.f32 %v2664_v35, 0.0  ;;  %v2665_v30 = vadd.f32 %v4527_v62, %v2597_v63  ;;  %v3718_v54 = vpop.f32.mrb[120].mxu0 }
 0x1da   : > { %v2727_v20 = vmax.f32 %v2666_v49, 0.0  ;;  %v2667_v3 = vadd.f32 %v4527_v62, %v2599_v15  ;;  %v2480_v24 = vmax.f32 %v3718_v54, %v4989_v22  ;;  %v1924_v57 = vpop.f32.mrb[121].mxu0 }
 0x1db   : > { %v3465_v25 = vpack.c.bf16 %v2725_v16, %v2725_v16  ;;  %v2726_v44 = vmax.f32 %v2665_v30, 0.0  ;;  %v2478_v23 = vmax.f32 %v4990_v53, %v1924_v57  ;;  %v3719_v8 = vpop.f32.mrb[122].mxu0 }
 0x1dc   : > { %v3467_v11 = vpack.c.bf16 %v2727_v20, %v2727_v20  ;;  %v2728_v46 = vmax.f32 %v2667_v3, 0.0  ;;  %v2541_v37 = vmax.f32 %v4993_v27, %v2480_v24  ;;  %v2481_v18 = vmax.f32 %v3719_v8, %v4994_v39  ;;  %v1927_v62 = vpop.f32.mrb[123].mxu0 }
 0x1dd   : > { %3032 = vst.msk [vmem:[%s4538_s27 + $0xdc] sm:$0xf] %vm2976_vm3, %v3465_v25  ;;  %v3466_v48 = vpack.c.bf16 %v2726_v44, %v2726_v44  ;;  %v2600_v14 = vmax.f32 %v2478_v23, %v2539_v36  ;;  %v2479_v40 = vmax.f32 %v4995_v12, %v1927_v62 }
 0x1de   : > { %3034 = vst.msk [vmem:[%s4538_s27 + $0xe4] sm:$0xf] %vm2976_vm3, %v3467_v11  ;;  %v3468_v21 = vpack.c.bf16 %v2728_v46, %v2728_v46  ;;  %v2609_v41 = vadd.f32 %v3974_v2, %v2541_v37  ;;  %v2542_v17 = vmax.f32 %v4998_v13, %v2481_v18 }
 0x1df   : > { %3033 = vst.msk [vmem:[%s4538_s27 + $0xe0] sm:$0xf] %vm2976_vm3, %v3466_v48  ;;  %v2668_v58 = vadd.f32 %v3974_v2, %v2600_v14  ;;  %v2601_v5 = vmax.f32 %v2479_v40, %v2540_v51 }
 0x1e0   : > { %3035 = vst.msk [vmem:[%s4538_s27 + $0xe8] sm:$0xf] %vm2976_vm3, %v3468_v21  ;;  %v2670_v6 = vmax.f32 %v2609_v41, 0.0  ;;  %v2610_v36 = vadd.f32 %v3974_v2, %v2542_v17 }
 0x1e1   : > { %v2729_v50 = vmax.f32 %v2668_v58, 0.0  ;;  %v2669_v1 = vadd.f32 %v3974_v2, %v2601_v5 }
 0x1e2   : > { %v3410_v52 = vpack.c.bf16 %v2670_v6, %v2670_v6  ;;  %v2671_v38 = vmax.f32 %v2610_v36, 0.0 }
 0x1e3   : > { %v3469_v26 = vpack.c.bf16 %v2729_v50, %v2729_v50  ;;  %v2730_v56 = vmax.f32 %v2669_v1, 0.0 }
 0x1e4   : > { %2977 = vst.msk [vmem:[%s4538_s27] sm:$0xf] %vm2976_vm3, %v3410_v52  ;;  %v3411_v55 = vpack.c.bf16 %v2671_v38, %v2671_v38 }
 0x1e5   : > { %3036 = vst.msk [vmem:[%s4538_s27 + $0xec] sm:$0xf] %vm2976_vm3, %v3469_v26  ;;  %v3470_v10 = vpack.c.bf16 %v2730_v56, %v2730_v56 }
 0x1e6   : > { %2978 = vst.msk [vmem:[%s4538_s27 + $0x4] sm:$0xf] %vm2976_vm3, %v3411_v55 }
 0x1e7   : > { %3037 = vst.msk [vmem:[%s4538_s27 + $0xf0] sm:$0xf] %vm2976_vm3, %v3470_v10 }
 0x1e8 PF: > { %s13_s12 = sadd.s32 1, %s3981_s12  }
 0x1e9   : > { %p10_p5 = scmp.ge.s32.totalorder %s13_s12, 4  }
 0x1eb   :  { %12 = sbr.rel (!%p10_p5) target bundleno = 1 (0x1), region = 62 }

// kernel: forward.5
= control target key start
LH: loop header
LB: loop body
LE: loop exit
PB: predicated region body
PF: predicated region fallthrough
CT: control target
= control target key end

     0   :  { %s2007_s12 = smov 0   ;;  %s2440_s0 = inlined_call_operand.vmem [shape: bf16[832,288], index: 0, kind: input, shape index: {}]   ;;  %s2441_s1 = inlined_call_operand.vmem [shape: bf16[288,64], index: 1, kind: input, shape index: {}]   ;;  %s2442_s2 = inlined_call_operand.vmem [shape: f32[1,64], index: 2, kind: input, shape index: {}]   ;;  %s2443_s3 = inlined_call_operand.vmem [shape: bf16[208,64], index: 3, kind: output, shape index: {}]  }
   0x1 LB: > { %s1572_s13 = sadd.s32 4294967295, %s1984_s12   ;;  %p1576_p0 = scmp.ge.s32.totalorder %s1984_s12, 1  ;;  %s1984_s12 = sphi %s2007_s12, %s13_s12  }
   0x2   : > { %p139_p1 = scmp.lt.s32.totalorder %s1984_s12, 3 }
   0x4   : > { %p140_p2 = pnand %p1576_p0, %p139_p1 }
   0x6   : > { %143 = sbr.rel (%p140_p2) target bundleno = 457 (0x1c9), region = 32 }
   0xd   : > { %v1856_v0 = vld [vmem:[%s2441_s1] sm:$0xff]   ;;  %v1986_v1 = vmov 0   ;;  %s164_s16 = smul.u32 52, %s1572_s13  ;;  %v1857_v2 = vld [vmem:[%s2441_s1 + $0x8] sm:$0xff]   ;;  %v1858_v3 = vld [vmem:[%s2441_s1 + $0x10] sm:$0xff]   ;;  %vm816_vm0 = vcmask 261120  }
   0xe   : > { %895 = vmatprep.subr.bf16.mxu0 %v1986_v1  ;;  %1814 = vmatprep.subr.bf16.mxu1 %v1986_v1  ;;  %v1859_v4 = vld [vmem:[%s2441_s1 + $0x18] sm:$0xff]   ;;  %v1860_v5 = vld [vmem:[%s2441_s1 + $0x20] sm:$0xff]   ;;  %v1861_v7 = vld [vmem:[%s2441_s1 + $0x28] sm:$0xff]   ;;  %vm1502_vm1 = vcmask 519168  }
   0xf   : > { %896 = vmatpush1.bf16.msra.mxu0 %v1856_v0  ;;  %1830 = vmatpush1.bf16.msra.mxu1 %v1856_v0  ;;  %p165_p3 = scmp.lt.s32.totalorder %s164_s16, 103  ;;  %v1862_v9 = vld [vmem:[%s2441_s1 + $0x30] sm:$0xff]   ;;  %v1863_v10 = vld [vmem:[%s2441_s1 + $0x38] sm:$0xff]   ;;  %v1864_v11 = vld [vmem:[%s2441_s1 + $0x40] sm:$0xff]  }
  0x10   : > { %897 = vmatprep.subr.bf16.mxu0 %v1986_v1  ;;  %1815 = vmatprep.subr.bf16.mxu1 %v1986_v1  ;;  %v1865_v12 = vld [vmem:[%s2441_s1 + $0x48] sm:$0xff]   ;;  %v1866_v13 = vld [vmem:[%s2441_s1 + $0x50] sm:$0xff]   ;;  %v1867_v14 = vld [vmem:[%s2441_s1 + $0x58] sm:$0xff]  }
  0x11   : > { %s2464_s16 = smov (!%p165_p3, %s164_s16), 103  ;;  %v1868_v15 = vld [vmem:[%s2441_s1 + $0x60] sm:$0xff]   ;;  %v1869_v16 = vld [vmem:[%s2441_s1 + $0x68] sm:$0xff]   ;;  %v1870_v17 = vld [vmem:[%s2441_s1 + $0x70] sm:$0xff]  }
  0x12   : > { %s1846_s23 = smul.u32 12, %s2464_s16  ;;  %v1871_v18 = vld [vmem:[%s2441_s1 + $0x78] sm:$0xff]   ;;  %v1878_v19 = vld [vmem:[%s2441_s1 + $0x80] sm:$0xff]   ;;  %v1897_v24 = vld [vmem:[%s2441_s1 + $0x88] sm:$0xff]  }
  0x13   : > { %898 = vmatpush1.bf16.msra.mxu0 %v1857_v2  ;;  %1831 = vmatpush1.bf16.msra.mxu1 %v1857_v2 }
  0x14   : > { %899 = vmatprep.subr.bf16.mxu0 %v1986_v1  ;;  %1816 = vmatprep.subr.bf16.mxu1 %v1986_v1  ;;  %s2043_s28 = scalar_lea.vmem %s2440_s0, %s1846_s23 }
  0x15   : > { %v1874_v6 = vld [vmem:[%s2043_s28 + $0x4] ss:$12 sps:$4 sm:$0xff]   ;;  %v1872_v20 = vld [vmem:[%s2043_s28] ss:$12 sps:$4 sm:$0xff]   ;;  %v1879_v22 = vld [vmem:[%s2043_s28 + $0x1c] ss:$12 sps:$4 sm:$0xff]  }
  0x16   : > { %v1877_v8 = vld [vmem:[%s2043_s28 + $0x1e4] ss:$12 sps:$4 sm:$0xff]   ;;  %927 = vmatprep.mubr.bf16.mxu0 %v1874_v6  ;;  %v1875_v21 = vld [vmem:[%s2043_s28 + $0x1e0] ss:$12 sps:$4 sm:$0xff]   ;;  %v1881_v23 = vld [vmem:[%s2043_s28 + $0x1fc] ss:$12 sps:$4 sm:$0xff]  }
  0x17   : > { %900 = vmatpush1.bf16.msra.mxu0 %v1858_v3  ;;  %1832 = vmatpush1.bf16.msra.mxu1 %v1858_v3  ;;  %v1883_v25 = vld [vmem:[%s2043_s28 + $0x18] ss:$12 sps:$4 sm:$0xff]   ;;  %v1885_v27 = vld [vmem:[%s2043_s28 + $0x34] ss:$12 sps:$4 sm:$0xff]   ;;  %v1889_v29 = vld [vmem:[%s2043_s28 + $0x30] ss:$12 sps:$4 sm:$0xff]  }
  0x18   : > { %901 = vmatprep.subr.bf16.mxu0 %v1986_v1  ;;  %1817 = vmatprep.subr.bf16.mxu1 %v1986_v1  ;;  %v1884_v26 = vld [vmem:[%s2043_s28 + $0x1f8] ss:$12 sps:$4 sm:$0xff]   ;;  %v1887_v28 = vld [vmem:[%s2043_s28 + $0x214] ss:$12 sps:$4 sm:$0xff]   ;;  %v1890_v30 = vld [vmem:[%s2043_s28 + $0x210] ss:$12 sps:$4 sm:$0xff]  }
  0x19   : > { %1087 = vmatprep.mubr.bf16.mxu1 %v1877_v8  ;;  %v1891_v31 = vld [vmem:[%s2043_s28 + $0x4c] ss:$12 sps:$4 sm:$0xff]   ;;  %v1895_v33 = vld [vmem:[%s2043_s28 + $0x48] ss:$12 sps:$4 sm:$0xff]   ;;  %v1898_v35 = vld [vmem:[%s2043_s28 + $0x64] ss:$12 sps:$4 sm:$0xff]  }
  0x1a   : > { %v1893_v32 = vld [vmem:[%s2043_s28 + $0x22c] ss:$12 sps:$4 sm:$0xff]   ;;  %v1896_v34 = vld [vmem:[%s2043_s28 + $0x228] ss:$12 sps:$4 sm:$0xff]   ;;  %v1900_v36 = vld [vmem:[%s2043_s28 + $0x244] ss:$12 sps:$4 sm:$0xff]  }
  0x1b   : > { %902 = vmatpush1.bf16.msra.mxu0 %v1859_v4  ;;  %1833 = vmatpush1.bf16.msra.mxu1 %v1859_v4  ;;  %v1902_v37 = vld [vmem:[%s2043_s28 + $0x60] ss:$12 sps:$4 sm:$0xff]   ;;  %v1904_v39 = vld [vmem:[%s2043_s28 + $0x7c] ss:$12 sps:$4 sm:$0xff]   ;;  %v1908_v41 = vld [vmem:[%s2043_s28 + $0x78] ss:$12 sps:$4 sm:$0xff]  }
  0x1c   : > { %903 = vmatprep.subr.bf16.mxu0 %v1986_v1  ;;  %1818 = vmatprep.subr.bf16.mxu1 %v1986_v1  ;;  %v1903_v38 = vld [vmem:[%s2043_s28 + $0x240] ss:$12 sps:$4 sm:$0xff]   ;;  %v1906_v40 = vld [vmem:[%s2043_s28 + $0x25c] ss:$12 sps:$4 sm:$0xff]   ;;  %v1909_v42 = vld [vmem:[%s2043_s28 + $0x258] ss:$12 sps:$4 sm:$0xff]  }
  0x1d   : > { %v1910_v43 = vld [vmem:[%s2043_s28 + $0x94] ss:$12 sps:$4 sm:$0xff]   ;;  %v1913_v45 = vld [vmem:[%s2043_s28 + $0x90] ss:$12 sps:$4 sm:$0xff]   ;;  %v1915_v47 = vld [vmem:[%s2043_s28 + $0xac] ss:$12 sps:$4 sm:$0xff]  }
  0x1e   : > { %v1912_v44 = vld [vmem:[%s2043_s28 + $0x8] ss:$12 sps:$4 sm:$0xff]   ;;  %v1914_v46 = vld [vmem:[%s2043_s28 + $0x20] ss:$12 sps:$4 sm:$0xff]   ;;  %v1917_v48 = vld [vmem:[%s2043_s28 + $0x38] ss:$12 sps:$4 sm:$0xff]  }
  0x1f   : > { %904 = vmatpush1.bf16.msra.mxu0 %v1860_v5  ;;  %1834 = vmatpush1.bf16.msra.mxu1 %v1860_v5  ;;  %v1918_v49 = vld [vmem:[%s2043_s28 + $0xa8] ss:$12 sps:$4 sm:$0xff]   ;;  %v1919_v50 = vld [vmem:[%s2043_s28 + $0x50] ss:$12 sps:$4 sm:$0xff]   ;;  %v1923_v53 = vld [vmem:[%s2043_s28 + $0xc0] ss:$12 sps:$4 sm:$0xff]  }
  0x20   : > { %905 = vmatprep.subr.bf16.mxu0 %v1986_v1  ;;  %1819 = vmatprep.subr.bf16.mxu1 %v1986_v1  ;;  %v1920_v51 = vld [vmem:[%s2043_s28 + $0xc4] ss:$12 sps:$4 sm:$0xff]   ;;  %v1922_v52 = vld [vmem:[%s2043_s28 + $0x68] ss:$12 sps:$4 sm:$0xff]   ;;  %v1924_v54 = vld [vmem:[%s2043_s28 + $0x80] ss:$12 sps:$4 sm:$0xff]  }
  0x21   : > { %v1925_v55 = vld [vmem:[%s2043_s28 + $0xdc] ss:$12 sps:$4 sm:$0xff]   ;;  %v1927_v56 = vld [vmem:[%s2043_s28 + $0x98] ss:$12 sps:$4 sm:$0xff]   ;;  %v1930_v59 = vld [vmem:[%s2043_s28 + $0xf4] ss:$12 sps:$4 sm:$0xff]  }
  0x22   : > { %v1928_v57 = vld [vmem:[%s2043_s28 + $0xd8] ss:$12 sps:$4 sm:$0xff]   ;;  %v1929_v58 = vld [vmem:[%s2043_s28 + $0xb0] ss:$12 sps:$4 sm:$0xff]   ;;  %v1932_v60 = vld [vmem:[%s2043_s28 + $0xc8] ss:$12 sps:$4 sm:$0xff]  }
  0x23   : > { %906 = vmatpush1.bf16.msra.mxu0 %v1861_v7  ;;  %1835 = vmatpush1.bf16.msra.mxu1 %v1861_v7  ;;  %v1933_v61 = vld [vmem:[%s2043_s28 + $0xf0] ss:$12 sps:$4 sm:$0xff]   ;;  %v1934_v62 = vld [vmem:[%s2043_s28 + $0xe0] ss:$12 sps:$4 sm:$0xff]   ;;  %v1937_v0 = vld [vmem:[%s2043_s28 + $0xf8] ss:$12 sps:$4 sm:$0xff]  }
  0x24   : > { %907 = vmatprep.subr.bf16.mxu0 %v1986_v1  ;;  %1820 = vmatprep.subr.bf16.mxu1 %v1986_v1  ;;  %v1935_v63 = vld [vmem:[%s2043_s28 + $0x10c] ss:$12 sps:$4 sm:$0xff]   ;;  %v1939_v2 = vld [vmem:[%s2043_s28 + $0x110] ss:$12 sps:$4 sm:$0xff]   ;;  %v1942_v4 = vld [vmem:[%s2043_s28 + $0x128] ss:$12 sps:$4 sm:$0xff]  }
  0x25   : > { %v1940_v3 = vld [vmem:[%s2043_s28 + $0x124] ss:$12 sps:$4 sm:$0xff]   ;;  %v1943_v5 = vld [vmem:[%s2043_s28 + $0x120] ss:$12 sps:$4 sm:$0xff]   ;;  %v1945_v7 = vld [vmem:[%s2043_s28 + $0x13c] ss:$12 sps:$4 sm:$0xff]  }
  0x26   : > { %v1944_v6 = vld [vmem:[%s2043_s28 + $0x140] ss:$12 sps:$4 sm:$0xff]   ;;  %v1947_v8 = vld [vmem:[%s2043_s28 + $0x158] ss:$12 sps:$4 sm:$0xff]  }
  0x27   : > { %908 = vmatpush1.bf16.msra.mxu0 %v1862_v9  ;;  %1836 = vmatpush1.bf16.msra.mxu1 %v1862_v9  ;;  %v1948_v9 = vld [vmem:[%s2043_s28 + $0x138] ss:$12 sps:$4 sm:$0xff]  }
  0x28   : > { %909 = vmatprep.subr.bf16.mxu0 %v1986_v1  ;;  %1821 = vmatprep.subr.bf16.mxu1 %v1986_v1 }
  0x2b   : > { %910 = vmatpush1.bf16.msra.mxu0 %v1863_v10  ;;  %1837 = vmatpush1.bf16.msra.mxu1 %v1863_v10  ;;  %v1949_v10 = vld [vmem:[%s2043_s28 + $0x170] ss:$12 sps:$4 sm:$0xff]  }
  0x2c   : > { %911 = vmatprep.subr.bf16.mxu0 %v1986_v1  ;;  %1822 = vmatprep.subr.bf16.mxu1 %v1986_v1 }
  0x2f   : > { %912 = vmatpush1.bf16.msra.mxu0 %v1864_v11  ;;  %1838 = vmatpush1.bf16.msra.mxu1 %v1864_v11  ;;  %v1950_v11 = vld [vmem:[%s2043_s28 + $0x154] ss:$12 sps:$4 sm:$0xff]  }
  0x30   : > { %913 = vmatprep.subr.bf16.mxu0 %v1986_v1  ;;  %1823 = vmatprep.subr.bf16.mxu1 %v1986_v1 }
  0x33   : > { %914 = vmatpush1.bf16.msra.mxu0 %v1865_v12  ;;  %1839 = vmatpush1.bf16.msra.mxu1 %v1865_v12  ;;  %v1952_v12 = vld [vmem:[%s2043_s28 + $0x188] ss:$12 sps:$4 sm:$0xff]  }
  0x34   : > { %915 = vmatprep.subr.bf16.mxu0 %v1986_v1  ;;  %1824 = vmatprep.subr.bf16.mxu1 %v1986_v1 }
  0x37   : > { %916 = vmatpush1.bf16.msra.mxu0 %v1866_v13  ;;  %1840 = vmatpush1.bf16.msra.mxu1 %v1866_v13  ;;  %v1953_v13 = vld [vmem:[%s2043_s28 + $0x150] ss:$12 sps:$4 sm:$0xff]  }
  0x38   : > { %917 = vmatprep.subr.bf16.mxu0 %v1986_v1  ;;  %1825 = vmatprep.subr.bf16.mxu1 %v1986_v1 }
  0x3b   : > { %918 = vmatpush1.bf16.msra.mxu0 %v1867_v14  ;;  %1841 = vmatpush1.bf16.msra.mxu1 %v1867_v14  ;;  %v1954_v14 = vld [vmem:[%s2043_s28 + $0x1a0] ss:$12 sps:$4 sm:$0xff]  }
  0x3c   : > { %919 = vmatprep.subr.bf16.mxu0 %v1986_v1  ;;  %1826 = vmatprep.subr.bf16.mxu1 %v1986_v1 }
  0x3f   : > { %920 = vmatpush1.bf16.msra.mxu0 %v1868_v15  ;;  %1842 = vmatpush1.bf16.msra.mxu1 %v1868_v15  ;;  %v1955_v15 = vld [vmem:[%s2043_s28 + $0x16c] ss:$12 sps:$4 sm:$0xff]  }
  0x40   : > { %921 = vmatprep.subr.bf16.mxu0 %v1986_v1  ;;  %1827 = vmatprep.subr.bf16.mxu1 %v1986_v1 }
  0x43   : > { %922 = vmatpush1.bf16.msra.mxu0 %v1869_v16  ;;  %1843 = vmatpush1.bf16.msra.mxu1 %v1869_v16  ;;  %v1957_v16 = vld [vmem:[%s2043_s28 + $0x1b8] ss:$12 sps:$4 sm:$0xff]  }
  0x44   : > { %923 = vmatprep.subr.bf16.mxu0 %v1986_v1  ;;  %1828 = vmatprep.subr.bf16.mxu1 %v1986_v1 }
  0x47   : > { %924 = vmatpush1.bf16.msra.mxu0 %v1870_v17  ;;  %1844 = vmatpush1.bf16.msra.mxu1 %v1870_v17  ;;  %v1958_v17 = vld [vmem:[%s2043_s28 + $0x168] ss:$12 sps:$4 sm:$0xff]  }
  0x48   : > { %925 = vmatprep.subr.bf16.mxu0 %v1986_v1  ;;  %1829 = vmatprep.subr.bf16.mxu1 %v1986_v1  ;;  %v1938_v1 = vld [vmem:[%s2043_s28 + $0x108] ss:$12 sps:$4 sm:$0xff]  }
  0x4b   : > { %926 = vmatpush1.bf16.msra.mxu0 %v1871_v18  ;;  %1845 = vmatpush1.bf16.msra.mxu1 %v1871_v18  ;;  %v1959_v18 = vld [vmem:[%s2043_s28 + $0x1d0] ss:$12 sps:$4 sm:$0xff]  }
  0x4c   : > { %1758 = vmatprep.subr.bf16.mxu1 %v1878_v19 }
  0x4e   : > { %928 = vmatmul.mubr.bf16.vlgmr.msra.gmra.mrb[0].mxu0 %v1872_v20  ;;  %1088 = vmatmul.mubr.bf16.vlgmr.msra.gmra.mrb[0].mxu1 %v1875_v21  ;;  %v1962_v20 = vld [vmem:[%s2043_s28 + $0x1e8] ss:$12 sps:$4 sm:$0xff]   ;;  %v1963_v21 = vld [vmem:[%s2043_s28 + $0x180] ss:$12 sps:$4 sm:$0xff]  }
  0x4f   : > { %935 = vmatprep.mubr.bf16.mxu0 %v1879_v22  ;;  %1095 = vmatprep.mubr.bf16.mxu1 %v1881_v23  ;;  %v1964_v22 = vld [vmem:[%s2043_s28 + $0x200] ss:$12 sps:$4 sm:$0xff]   ;;  %v1965_v23 = vld [vmem:[%s2043_s28 + $0x19c] ss:$12 sps:$4 sm:$0xff]  }
  0x50   : > { %1759 = vmatpush3.bf16.msra.mxu1 %v1878_v19  ;;  %v1960_v19 = vld [vmem:[%s2043_s28 + $0x184] ss:$12 sps:$4 sm:$0xff]  }
  0x51   : > { %1760 = vmatprep.subr.bf16.mxu1 %v1897_v24 }
  0x54   : > { %1761 = vmatpush3.bf16.msra.mxu1 %v1897_v24  ;;  %v1967_v24 = vld [vmem:[%s2043_s28 + $0x218] ss:$12 sps:$4 sm:$0xff]  }
  0x56   : > { %936 = vmatmul.mubr.bf16.gmra.mrb[4].mxu0 %v1883_v25  ;;  %1096 = vmatmul.mubr.bf16.gmra.mrb[4].mxu1 %v1884_v26  ;;  %v1968_v25 = vld [vmem:[%s2043_s28 + $0x198] ss:$12 sps:$4 sm:$0xff]   ;;  %v1969_v26 = vld [vmem:[%s2043_s28 + $0x230] ss:$12 sps:$4 sm:$0xff]  }
  0x57   : > { %943 = vmatprep.mubr.bf16.mxu0 %v1885_v27  ;;  %1103 = vmatprep.mubr.bf16.mxu1 %v1887_v28  ;;  %v1970_v27 = vld [vmem:[%s2043_s28 + $0x1b4] ss:$12 sps:$4 sm:$0xff]  }
  0x58   : > { %v1972_v28 = vld [vmem:[%s2043_s28 + $0x248] ss:$12 sps:$4 sm:$0xff]  }
  0x5e   : > { %944 = vmatmul.mubr.bf16.gmra.mrb[8].mxu0 %v1889_v29  ;;  %1104 = vmatmul.mubr.bf16.gmra.mrb[8].mxu1 %v1890_v30  ;;  %v1973_v29 = vld [vmem:[%s2043_s28 + $0x1b0] ss:$12 sps:$4 sm:$0xff]   ;;  %v1974_v30 = vld [vmem:[%s2043_s28 + $0x260] ss:$12 sps:$4 sm:$0xff]  }
  0x5f   : > { %951 = vmatprep.mubr.bf16.mxu0 %v1891_v31  ;;  %1111 = vmatprep.mubr.bf16.mxu1 %v1893_v32  ;;  %v1975_v31 = vld [vmem:[%s2043_s28 + $0x1cc] ss:$12 sps:$4 sm:$0xff]   ;;  %v1977_v32 = vld [vmem:[%s2043_s28 + $0x1c8] ss:$12 sps:$4 sm:$0xff]   ;;  %s171_s28 = smul.u32 13, %s1572_s13 }
  0x61   : > { %p172_p4 = scmp.lt.s32.totalorder %s171_s28, 25 }
  0x63   : > { %s2466_s28 = smov (!%p172_p4, %s171_s28), 25 }
  0x64   : > { %s1578_s5 = sshll.u32 %s2466_s28, 2 }
  0x65   : > { %s2358_s8 = scalar_lea.vmem %s2443_s3, %s1578_s5 }
  0x66   : > { %952 = vmatmul.mubr.bf16.gmra.mrb[12].mxu0 %v1895_v33  ;;  %1112 = vmatmul.mubr.bf16.gmra.mrb[12].mxu1 %v1896_v34 }
  0x67   : > { %959 = vmatprep.mubr.bf16.mxu0 %v1898_v35  ;;  %1119 = vmatprep.mubr.bf16.mxu1 %v1900_v36 }
  0x6e   : > { %960 = vmatmul.mubr.bf16.gmra.mrb[16].mxu0 %v1902_v37  ;;  %1120 = vmatmul.mubr.bf16.gmra.mrb[16].mxu1 %v1903_v38 }
  0x6f   : > { %967 = vmatprep.mubr.bf16.mxu0 %v1904_v39  ;;  %1127 = vmatprep.mubr.bf16.mxu1 %v1906_v40 }
  0x76   : > { %968 = vmatmul.mubr.bf16.gmra.mrb[20].mxu0 %v1908_v41  ;;  %1128 = vmatmul.mubr.bf16.gmra.mrb[20].mxu1 %v1909_v42 }
  0x77   : > { %975 = vmatprep.mubr.bf16.mxu0 %v1910_v43  ;;  %1762 = vmatprep.mubr.msk.bf16.mxu1 %vm816_vm0, %v1912_v44 }
  0x7e   : > { %976 = vmatmul.mubr.bf16.gmra.mrb[24].mxu0 %v1913_v45  ;;  %1763 = vmatmul.mubr.msk.bf16.vlgmr.msra.gmra.mrb[24].mxu1 %vm816_vm0, %v1914_v46 }
  0x7f   : > { %983 = vmatprep.mubr.bf16.mxu0 %v1915_v47  ;;  %1766 = vmatprep.mubr.msk.bf16.mxu1 %vm816_vm0, %v1917_v48 }
  0x86   : > { %984 = vmatmul.mubr.bf16.gmra.mrb[28].mxu0 %v1918_v49  ;;  %1767 = vmatmul.mubr.msk.bf16.gmra.mrb[28].mxu1 %vm816_vm0, %v1919_v50 }
  0x87   : > { %991 = vmatprep.mubr.bf16.mxu0 %v1920_v51  ;;  %1770 = vmatprep.mubr.msk.bf16.mxu1 %vm816_vm0, %v1922_v52 }
  0x8e   : > { %992 = vmatmul.mubr.bf16.gmra.mrb[32].mxu0 %v1923_v53  ;;  %1771 = vmatmul.mubr.msk.bf16.gmra.mrb[32].mxu1 %vm816_vm0, %v1924_v54 }
  0x8f   : > { %999 = vmatprep.mubr.bf16.mxu0 %v1925_v55  ;;  %1774 = vmatprep.mubr.msk.bf16.mxu1 %vm816_vm0, %v1927_v56 }
  0x96   : > { %1000 = vmatmul.mubr.bf16.gmra.mrb[36].mxu0 %v1928_v57  ;;  %1775 = vmatmul.mubr.msk.bf16.gmra.mrb[36].mxu1 %vm816_vm0, %v1929_v58 }
  0x97   : > { %1007 = vmatprep.mubr.bf16.mxu0 %v1930_v59  ;;  %1778 = vmatprep.mubr.msk.bf16.mxu1 %vm816_vm0, %v1932_v60 }
  0x9e   : > { %1008 = vmatmul.mubr.bf16.gmra.mrb[40].mxu0 %v1933_v61  ;;  %1779 = vmatmul.mubr.msk.bf16.gmra.mrb[40].mxu1 %vm816_vm0, %v1934_v62 }
  0x9f   : > { %1015 = vmatprep.mubr.bf16.mxu0 %v1935_v63  ;;  %1782 = vmatprep.mubr.msk.bf16.mxu1 %vm816_vm0, %v1937_v0 }
  0xa6   : > { %1016 = vmatmul.mubr.bf16.gmra.mrb[44].mxu0 %v1938_v1  ;;  %1783 = vmatmul.mubr.msk.bf16.gmra.mrb[44].mxu1 %vm816_vm0, %v1939_v2 }
  0xa7   : > { %1023 = vmatprep.mubr.bf16.mxu0 %v1940_v3  ;;  %1786 = vmatprep.mubr.msk.bf16.mxu1 %vm816_vm0, %v1942_v4 }
  0xae   : > { %1024 = vmatmul.mubr.bf16.gmra.mrb[48].mxu0 %v1943_v5  ;;  %1787 = vmatmul.mubr.msk.bf16.gmra.mrb[48].mxu1 %vm816_vm0, %v1944_v6 }
  0xaf   : > { %1031 = vmatprep.mubr.bf16.mxu0 %v1945_v7  ;;  %1790 = vmatprep.mubr.msk.bf16.mxu1 %vm816_vm0, %v1947_v8 }
  0xb6   : > { %1032 = vmatmul.mubr.bf16.gmra.mrb[52].mxu0 %v1948_v9  ;;  %1791 = vmatmul.mubr.msk.bf16.gmra.mrb[52].mxu1 %vm816_vm0, %v1949_v10 }
  0xb7   : > { %1039 = vmatprep.mubr.bf16.mxu0 %v1950_v11  ;;  %1794 = vmatprep.mubr.msk.bf16.mxu1 %vm816_vm0, %v1952_v12 }
  0xbe   : > { %1040 = vmatmul.mubr.bf16.gmra.mrb[56].mxu0 %v1953_v13  ;;  %1795 = vmatmul.mubr.msk.bf16.gmra.mrb[56].mxu1 %vm816_vm0, %v1954_v14 }
  0xbf   : > { %1047 = vmatprep.mubr.bf16.mxu0 %v1955_v15  ;;  %1798 = vmatprep.mubr.msk.bf16.mxu1 %vm816_vm0, %v1957_v16 }
  0xc6   : > { %1048 = vmatmul.mubr.bf16.gmra.mrb[60].mxu0 %v1958_v17  ;;  %1799 = vmatmul.mubr.msk.bf16.gmra.mrb[60].mxu1 %vm816_vm0, %v1959_v18 }
  0xc7   : > { %1055 = vmatprep.mubr.bf16.mxu0 %v1960_v19  ;;  %1802 = vmatprep.mubr.msk.bf16.mxu1 %vm816_vm0, %v1962_v20 }
  0xce   : > { %1056 = vmatmul.mubr.bf16.gmra.mrb[64].mxu0 %v1963_v21  ;;  %1803 = vmatmul.mubr.msk.bf16.gmra.mrb[64].mxu1 %vm816_vm0, %v1964_v22 }
  0xcf   : > { %1063 = vmatprep.mubr.bf16.mxu0 %v1965_v23  ;;  %1806 = vmatprep.mubr.msk.bf16.mxu1 %vm816_vm0, %v1967_v24 }
  0xd6   : > { %1064 = vmatmul.mubr.bf16.gmra.mrb[68].mxu0 %v1968_v25  ;;  %1807 = vmatmul.mubr.msk.bf16.gmra.mrb[68].mxu1 %vm816_vm0, %v1969_v26 }
  0xd7   : > { %1071 = vmatprep.mubr.bf16.mxu0 %v1970_v27  ;;  %1810 = vmatprep.mubr.msk.bf16.mxu1 %vm816_vm0, %v1972_v28 }
  0xde   : > { %1072 = vmatmul.mubr.bf16.gmra.mrb[72].mxu0 %v1973_v29  ;;  %1811 = vmatmul.mubr.msk.bf16.gmra.mrb[72].mxu1 %vm816_vm0, %v1974_v30 }
  0xdf   : > { %1079 = vmatprep.mubr.bf16.mxu0 %v1975_v31 }
  0xe6   : > { %1080 = vmatmul.mubr.bf16.gmra.mrb[76].mxu0 %v1977_v32 }
 0x121   : > { %v929_v33 = vpop.f32.mrb[0].mxu0  ;;  %v2212_v34 = vpop.f32.mrb[0].mxu1 }
 0x122   : > { %v931_v35 = vpop.f32.mrb[1].mxu0  ;;  %v1091_v36 = vpop.f32.mrb[1].mxu1 }
 0x123   : > { %v932_v37 = vpop.f32.mrb[2].mxu0  ;;  %v2214_v38 = vpop.f32.mrb[2].mxu1 }
 0x124   : > { %v934_v39 = vpop.f32.mrb[3].mxu0  ;;  %v1094_v40 = vpop.f32.mrb[3].mxu1 }
 0x129   : > { %v937_v41 = vpop.f32.mrb[4].mxu0  ;;  %v2216_v42 = vpop.f32.mrb[4].mxu1 }
 0x12a   : > { %v939_v43 = vpop.f32.mrb[5].mxu0  ;;  %v1099_v44 = vpop.f32.mrb[5].mxu1 }
 0x12b   : > { %v940_v45 = vpop.f32.mrb[6].mxu0  ;;  %v2218_v46 = vpop.f32.mrb[6].mxu1 }
 0x12c   : > { %v942_v47 = vpop.f32.mrb[7].mxu0  ;;  %v1102_v48 = vpop.f32.mrb[7].mxu1 }
 0x131   : > { %v945_v49 = vpop.f32.mrb[8].mxu0  ;;  %v2220_v50 = vpop.f32.mrb[8].mxu1 }
 0x132   : > { %v947_v51 = vpop.f32.mrb[9].mxu0  ;;  %v1107_v52 = vpop.f32.mrb[9].mxu1 }
 0x133   : > { %v948_v53 = vpop.f32.mrb[10].mxu0  ;;  %v2222_v54 = vpop.f32.mrb[10].mxu1 }
 0x134   : > { %v950_v55 = vpop.f32.mrb[11].mxu0  ;;  %v1110_v56 = vpop.f32.mrb[11].mxu1 }
 0x139   : > { %v953_v57 = vpop.f32.mrb[12].mxu0  ;;  %v2224_v58 = vpop.f32.mrb[12].mxu1 }
 0x13a   : > { %v955_v59 = vpop.f32.mrb[13].mxu0  ;;  %v1115_v60 = vpop.f32.mrb[13].mxu1 }
 0x13b   : > { %v956_v61 = vpop.f32.mrb[14].mxu0  ;;  %v2226_v62 = vpop.f32.mrb[14].mxu1 }
 0x13c   : > { %v958_v63 = vpop.f32.mrb[15].mxu0  ;;  %v1118_v0 = vpop.f32.mrb[15].mxu1 }
 0x141   : > { %v961_v1 = vpop.f32.mrb[16].mxu0  ;;  %v2228_v2 = vpop.f32.mrb[16].mxu1 }
 0x142   : > { %v963_v3 = vpop.f32.mrb[17].mxu0  ;;  %v1123_v4 = vpop.f32.mrb[17].mxu1 }
 0x143   : > { %v964_v5 = vpop.f32.mrb[18].mxu0  ;;  %v2230_v6 = vpop.f32.mrb[18].mxu1 }
 0x144   : > { %v966_v7 = vpop.f32.mrb[19].mxu0  ;;  %v1126_v8 = vpop.f32.mrb[19].mxu1 }
 0x149   : > { %v969_v9 = vpop.f32.mrb[20].mxu0  ;;  %v2232_v10 = vpop.f32.mrb[20].mxu1 }
 0x14a   : > { %v971_v11 = vpop.f32.mrb[21].mxu0  ;;  %v1131_v12 = vpop.f32.mrb[21].mxu1 }
 0x14b   : > { %v972_v13 = vpop.f32.mrb[22].mxu0  ;;  %v2234_v14 = vpop.f32.mrb[22].mxu1 }
 0x14c   : > { %v974_v15 = vpop.f32.mrb[23].mxu0  ;;  %v1134_v16 = vpop.f32.mrb[23].mxu1 }
 0x151   : > { %v977_v17 = vpop.f32.mrb[24].mxu0  ;;  %v1764_v18 = vpop.f32.mrb[24].mxu1 }
 0x152   : > { %v2236_v19 = vadd.f32 %v1764_v18, %v937_v41  ;;  %v979_v20 = vpop.f32.mrb[25].mxu0  ;;  %v1170_v21 = vpop.f32.mrb[25].mxu1 }
 0x153   : > { %v2238_v22 = vadd.f32 %v1170_v21, %v929_v33  ;;  %v980_v23 = vpop.f32.mrb[26].mxu0  ;;  %v1765_v24 = vpop.f32.mrb[26].mxu1 }
 0x154   : > { %v2240_v25 = vadd.f32 %v1765_v24, %v940_v45  ;;  %v982_v26 = vpop.f32.mrb[27].mxu0  ;;  %v1173_v27 = vpop.f32.mrb[27].mxu1 }
 0x155   : > { %2446 = vst [vmem:[#allocation2_spill] sm:$0xff] %v2238_v22  ;;  %v2242_v28 = vadd.f32 %v1173_v27, %v932_v37 }
 0x159   : > { %v985_v29 = vpop.f32.mrb[28].mxu0  ;;  %v1768_v30 = vpop.f32.mrb[28].mxu1 }
 0x15a   : > { %v2244_v31 = vadd.f32 %v1768_v30, %v953_v57  ;;  %v987_v32 = vpop.f32.mrb[29].mxu0  ;;  %v1186_v35 = vpop.f32.mrb[29].mxu1 }
 0x15b   : > { %v2246_v36 = vadd.f32 %v1186_v35, %v945_v49  ;;  %v988_v39 = vpop.f32.mrb[30].mxu0  ;;  %v1769_v40 = vpop.f32.mrb[30].mxu1 }
 0x15c   : > { %v2248_v33 = vadd.f32 %v1769_v40, %v956_v61  ;;  %v990_v41 = vpop.f32.mrb[31].mxu0  ;;  %v1189_v43 = vpop.f32.mrb[31].mxu1 }
 0x15d   : > { %v2250_v44 = vadd.f32 %v1189_v43, %v948_v53 }
 0x161   : > { %v993_v45 = vpop.f32.mrb[32].mxu0  ;;  %v1772_v47 = vpop.f32.mrb[32].mxu1 }
 0x162   : > { %v2252_v37 = vadd.f32 %v1772_v47, %v969_v9  ;;  %v995_v48 = vpop.f32.mrb[33].mxu0  ;;  %v1202_v51 = vpop.f32.mrb[33].mxu1 }
 0x163   : > { %v2254_v52 = vadd.f32 %v1202_v51, %v961_v1  ;;  %v996_v55 = vpop.f32.mrb[34].mxu0  ;;  %v1773_v56 = vpop.f32.mrb[34].mxu1 }
 0x164   : > { %v2256_v49 = vadd.f32 %v1773_v56, %v972_v13  ;;  %v998_v57 = vpop.f32.mrb[35].mxu0  ;;  %v1205_v59 = vpop.f32.mrb[35].mxu1 }
 0x165   : > { %v2258_v60 = vadd.f32 %v1205_v59, %v964_v5 }
 0x169   : > { %v1001_v61 = vpop.f32.mrb[36].mxu0  ;;  %v1776_v63 = vpop.f32.mrb[36].mxu1 }
 0x16a   : > { %v2260_v53 = vadd.f32 %v1776_v63, %v985_v29  ;;  %v1003_v0 = vpop.f32.mrb[37].mxu0  ;;  %v1218_v3 = vpop.f32.mrb[37].mxu1 }
 0x16b   : > { %v2262_v4 = vadd.f32 %v1218_v3, %v977_v17  ;;  %v1004_v7 = vpop.f32.mrb[38].mxu0  ;;  %v1777_v8 = vpop.f32.mrb[38].mxu1 }
 0x16c   : > { %v2266_v9 = vadd.f32 %v1777_v8, %v988_v39  ;;  %v1006_v11 = vpop.f32.mrb[39].mxu0  ;;  %v1221_v12 = vpop.f32.mrb[39].mxu1 }
 0x16d   : > { %v2268_v13 = vadd.f32 %v1221_v12, %v980_v23 }
 0x16f   : > { %2447 = vst [vmem:[#allocation3_spill] sm:$0xff] %v2268_v13 }
 0x171   : > { %v1009_v16 = vpop.f32.mrb[40].mxu0  ;;  %v1780_v17 = vpop.f32.mrb[40].mxu1 }
 0x172   : > { %v2274_v18 = vadd.f32 %v1780_v17, %v1001_v61  ;;  %v1011_v20 = vpop.f32.mrb[41].mxu0  ;;  %v1234_v21 = vpop.f32.mrb[41].mxu1 }
 0x173   : > { %v2276_v24 = vadd.f32 %v1234_v21, %v993_v45  ;;  %v1012_v26 = vpop.f32.mrb[42].mxu0  ;;  %v1781_v27 = vpop.f32.mrb[42].mxu1 }
 0x174   : > { %v2280_v29 = vadd.f32 %v1781_v27, %v1004_v7  ;;  %v1014_v30 = vpop.f32.mrb[43].mxu0  ;;  %v1237_v32 = vpop.f32.mrb[43].mxu1 }
 0x175   : > { %v2284_v39 = vadd.f32 %v1237_v32, %v996_v55 }
 0x179   : > { %v1017_v43 = vpop.f32.mrb[44].mxu0  ;;  %v1784_v45 = vpop.f32.mrb[44].mxu1 }
 0x17a   : > { %v2290_v47 = vadd.f32 %v1784_v45, %v1017_v43  ;;  %v1019_v48 = vpop.f32.mrb[45].mxu0  ;;  %v1250_v51 = vpop.f32.mrb[45].mxu1 }
 0x17b   : > { %v2292_v56 = vadd.f32 %v1250_v51, %v1009_v16  ;;  %v1020_v57 = vpop.f32.mrb[46].mxu0  ;;  %v1785_v59 = vpop.f32.mrb[46].mxu1 }
 0x17c   : > { %v2296_v61 = vadd.f32 %v1785_v59, %v1020_v57  ;;  %v1022_v63 = vpop.f32.mrb[47].mxu0  ;;  %v1253_v0 = vpop.f32.mrb[47].mxu1 }
 0x17d   : > { %v2300_v7 = vadd.f32 %v1253_v0, %v1012_v26 }
 0x181   : > { %v1025_v12 = vpop.f32.mrb[48].mxu0  ;;  %v1788_v16 = vpop.f32.mrb[48].mxu1 }
 0x182   : > { %v1027_v17 = vpop.f32.mrb[49].mxu0  ;;  %v1266_v20 = vpop.f32.mrb[49].mxu1 }
 0x183   : > { %v2306_v21 = vadd.f32 %v1266_v20, %v1025_v12  ;;  %v1028_v27 = vpop.f32.mrb[50].mxu0  ;;  %v1789_v30 = vpop.f32.mrb[50].mxu1 }
 0x184   : > { %v1030_v32 = vpop.f32.mrb[51].mxu0  ;;  %v1269_v43 = vpop.f32.mrb[51].mxu1 }
 0x185   : > { %v2310_v45 = vadd.f32 %v1269_v43, %v1028_v27 }
 0x189   : > { %v1033_v51 = vpop.f32.mrb[52].mxu0  ;;  %v1792_v57 = vpop.f32.mrb[52].mxu1 }
 0x18a   : > { %v2314_v59 = vadd.f32 %v1788_v16, %v1033_v51  ;;  %v1035_v63 = vpop.f32.mrb[53].mxu0  ;;  %v1282_v0 = vpop.f32.mrb[53].mxu1 }
 0x18b   : > { %v1036_v12 = vpop.f32.mrb[54].mxu0  ;;  %v1793_v17 = vpop.f32.mrb[54].mxu1 }
 0x18c   : > { %v1278_v20 = vadd.f32 %v1789_v30, %v1036_v12  ;;  %v1038_v15 = vpop.f32.mrb[55].mxu0  ;;  %v1285_v32 = vpop.f32.mrb[55].mxu1 }
 0x191   : > { %v1041_v8 = vpop.f32.mrb[56].mxu0  ;;  %v1796_v55 = vpop.f32.mrb[56].mxu1 }
 0x192   : > { %v1283_v40 = vadd.f32 %v1282_v0, %v1041_v8  ;;  %v1043_v26 = vpop.f32.mrb[57].mxu0  ;;  %v1298_v27 = vpop.f32.mrb[57].mxu1 }
 0x193   : > { %v1044_v43 = vpop.f32.mrb[58].mxu0  ;;  %v1797_v11 = vpop.f32.mrb[58].mxu1 }
 0x194   : > { %v1286_v48 = vadd.f32 %v1285_v32, %v1044_v43  ;;  %v1046_v23 = vpop.f32.mrb[59].mxu0  ;;  %v1301_v3 = vpop.f32.mrb[59].mxu1 }
 0x199   : > { %v1049_v16 = vpop.f32.mrb[60].mxu0  ;;  %v2316_v51 = vpop.f32.mrb[60].mxu1 }
 0x19a   : > { %v1291_v63 = vadd.f32 %v1792_v57, %v1049_v16  ;;  %v1051_v5 = vpop.f32.mrb[61].mxu0  ;;  %v2318_v41 = vpop.f32.mrb[61].mxu1 }
 0x19b   : > { %v1052_v15 = vpop.f32.mrb[62].mxu0  ;;  %v2320_v30 = vpop.f32.mrb[62].mxu1 }
 0x19c   : > { %v2322_v12 = vadd.f32 %v1793_v17, %v1052_v15  ;;  %v1054_v8 = vpop.f32.mrb[63].mxu0  ;;  %v2324_v26 = vpop.f32.mrb[63].mxu1 }
 0x1a1   : > { %v1057_v23 = vpop.f32.mrb[64].mxu0  ;;  %v1804_v0 = vpop.f32.mrb[64].mxu1 }
 0x1a2   : > { %v2328_v32 = vadd.f32 %v1298_v27, %v1057_v23  ;;  %v1339_v57 = vadd.f32 %v1804_v0, %v2216_v42  ;;  %v1059_v5 = vpop.f32.mrb[65].mxu0  ;;  %v1330_v43 = vpop.f32.mrb[65].mxu1  ;;  %v2336_v27 = vld [vmem:[%s2442_s2] ss:$0 sm:$0xff] }
 0x1a3   : > { %v1331_v16 = vadd.f32 %v1330_v43, %v2212_v34  ;;  %v1060_v1 = vpop.f32.mrb[66].mxu0  ;;  %v1805_v35 = vpop.f32.mrb[66].mxu1  ;;  %v2448_v34 = vmax.f32 %v2240_v25, %v2276_v24 }
 0x1a4   : > { %v1393_v17 = vmax.f32 %v1286_v48, %v1339_v57  ;;  %v1302_v15 = vadd.f32 %v1301_v3, %v1060_v1  ;;  %v1342_v8 = vadd.f32 %v1805_v35, %v2218_v46  ;;  %v1062_v13 = vpop.f32.mrb[67].mxu0  ;;  %v1333_v22 = vpop.f32.mrb[67].mxu1  ;;  %v2449_v1 = vmax.f32 %v2242_v28, %v2260_v53 }
 0x1a5   : > { %v1391_v23 = vmax.f32 %v1278_v20, %v1331_v16  ;;  %v1334_v42 = vadd.f32 %v1333_v22, %v2214_v38  ;;  %v2450_v35 = vmax.f32 %v2246_v36, %v2284_v39  ;;  %v2451_v38 = vmax.f32 %v2236_v19, %v2266_v9 }
 0x1a6   : > { %v1406_v0 = vmax.f32 %v2448_v34, %v1393_v17  ;;  %v1394_v5 = vmax.f32 %v1291_v63, %v1342_v8 }
 0x1a7   : > { %v1404_v3 = vmax.f32 %v2449_v1, %v1391_v23  ;;  %v1392_v46 = vmax.f32 %v1283_v40, %v1334_v42 }
 0x1a8   : > { %v1426_v13 = vadd.f32 %v2336_v27, %v1406_v0  ;;  %v1407_v48 = vmax.f32 %v2450_v35, %v1394_v5 }
 0x1a9   : > { %v1424_v20 = vadd.f32 %v2336_v27, %v1404_v3  ;;  %v1405_v22 = vmax.f32 %v2451_v38, %v1392_v46  ;;  %v1065_v25 = vpop.f32.mrb[68].mxu0  ;;  %v1808_v24 = vpop.f32.mrb[68].mxu1  ;;  %v2452_v3 = vmax.f32 %v2248_v33, %v2292_v56 }
 0x1aa   : > { %v1439_v63 = vmax.f32 %v1426_v13, 0.0  ;;  %v1427_v28 = vadd.f32 %v2336_v27, %v1407_v48  ;;  %v1307_v53 = vadd.f32 %v1796_v55, %v1065_v25  ;;  %v1355_v40 = vadd.f32 %v1808_v24, %v2224_v58  ;;  %v1067_v57 = vpop.f32.mrb[69].mxu0  ;;  %v1346_v43 = vpop.f32.mrb[69].mxu1 }
 0x1ab   : > { %v1437_v36 = vmax.f32 %v1424_v20, 0.0  ;;  %v1425_v19 = vadd.f32 %v2336_v27, %v1405_v22  ;;  %v1347_v9 = vadd.f32 %v1346_v43, %v2220_v50  ;;  %v1068_v39 = vpop.f32.mrb[70].mxu0  ;;  %v1809_v16 = vpop.f32.mrb[70].mxu1  ;;  %v2453_v13 = vmax.f32 %v2250_v44, %v2274_v18 }
 0x1ac   : > { %v1720_v55 = vpack.c.bf16 %v1439_v63, %v1439_v63  ;;  %v1440_v17 = vmax.f32 %v1427_v28, 0.0  ;;  %v1397_v58 = vmax.f32 %v1302_v15, %v1355_v40  ;;  %v1310_v8 = vadd.f32 %v1797_v11, %v1068_v39  ;;  %v1070_v23 = vpop.f32.mrb[71].mxu0  ;;  %v1349_v42 = vpop.f32.mrb[71].mxu1 }
 0x1ad   : > { %v1718_v34 = vpack.c.bf16 %v1437_v36, %v1437_v36  ;;  %v1438_v0 = vmax.f32 %v1425_v19, 0.0  ;;  %v1395_v5 = vmax.f32 %v2322_v12, %v1347_v9  ;;  %v1358_v1 = vadd.f32 %v1809_v16, %v2226_v62 }
 0x1ae   : > { %1506 = vst.msk [vmem:[%s2358_s8 + $0xc] sm:$0xf] %vm1502_vm1, %v1720_v55  ;;  %v1721_v50 = vpack.c.bf16 %v1440_v17, %v1440_v17  ;;  %v1410_v46 = vmax.f32 %v2452_v3, %v1397_v58  ;;  %v1350_v15 = vadd.f32 %v1349_v42, %v2222_v54  ;;  %v2454_v54 = vmax.f32 %v2254_v52, %v2300_v7 }
 0x1af   : > { %1504 = vst.msk [vmem:[%s2358_s8 + $0x4] sm:$0xf] %vm1502_vm1, %v1718_v34  ;;  %v1719_v11 = vpack.c.bf16 %v1438_v0, %v1438_v0  ;;  %v1408_v35 = vmax.f32 %v2453_v13, %v1395_v5  ;;  %v1398_v48 = vmax.f32 %v1307_v53, %v1358_v1  ;;  %v2455_v44 = vmax.f32 %v2244_v31, %v2280_v29 }
 0x1b0   : > { %1507 = vst.msk [vmem:[%s2358_s8 + $0x10] sm:$0xf] %vm1502_vm1, %v1721_v50  ;;  %v1430_v62 = vadd.f32 %v2336_v27, %v1410_v46  ;;  %v1396_v12 = vmax.f32 %v2328_v32, %v1350_v15  ;;  %v2457_v23 = vmax.f32 %v2256_v49, %v2306_v21 }
 0x1b1   : > { %1505 = vst.msk [vmem:[%s2358_s8 + $0x8] sm:$0xf] %vm1502_vm1, %v1719_v11  ;;  %v1428_v33 = vadd.f32 %v2336_v27, %v1408_v35  ;;  %v1411_v56 = vmax.f32 %v2454_v54, %v1398_v48  ;;  %v1073_v20 = vpop.f32.mrb[72].mxu0  ;;  %v1812_v38 = vpop.f32.mrb[72].mxu1 }
 0x1b2   : > { %v1443_v22 = vmax.f32 %v1430_v62, 0.0  ;;  %v1409_v18 = vmax.f32 %v2455_v44, %v1396_v12  ;;  %v1315_v25 = vadd.f32 %v2318_v41, %v1073_v20  ;;  %v1371_v24 = vadd.f32 %v1812_v38, %v2232_v10  ;;  %v1075_v32 = vpop.f32.mrb[73].mxu0  ;;  %v1362_v63 = vpop.f32.mrb[73].mxu1  ;;  %v2461_v12 = vld [vmem:[#allocation3_spill] sm:$0xff] }
 0x1b3   : > { %v1441_v28 = vmax.f32 %v1428_v33, 0.0  ;;  %v1431_v53 = vadd.f32 %v2336_v27, %v1411_v56  ;;  %v1363_v52 = vadd.f32 %v1362_v63, %v2228_v2  ;;  %v1076_v7 = vpop.f32.mrb[74].mxu0  ;;  %v1813_v40 = vpop.f32.mrb[74].mxu1 }
 0x1b4   : > { %v1724_v57 = vpack.c.bf16 %v1443_v22, %v1443_v22  ;;  %v1429_v43 = vadd.f32 %v2336_v27, %v1409_v18  ;;  %v1318_v31 = vadd.f32 %v2324_v26, %v1076_v7  ;;  %v1374_v29 = vadd.f32 %v1813_v40, %v2234_v14  ;;  %v1078_v10 = vpop.f32.mrb[75].mxu0  ;;  %v1365_v41 = vpop.f32.mrb[75].mxu1 }
 0x1b5   : > { %v1722_v36 = vpack.c.bf16 %v1441_v28, %v1441_v28  ;;  %v1444_v19 = vmax.f32 %v1431_v53, 0.0  ;;  %v1399_v9 = vmax.f32 %v1310_v8, %v1363_v52  ;;  %v1366_v39 = vadd.f32 %v1365_v41, %v2230_v6 }
 0x1b6   : > { %1510 = vst.msk [vmem:[%s2358_s8 + $0x1c] sm:$0xf] %vm1502_vm1, %v1724_v57  ;;  %v1442_v2 = vmax.f32 %v1429_v43, 0.0  ;;  %v1401_v16 = vmax.f32 %v1318_v31, %v1371_v24  ;;  %v2456_v26 = vmax.f32 %v2258_v60, %v2290_v47  ;;  %v2458_v8 = vmax.f32 %v2252_v37, %v2296_v61 }
 0x1b7   : > { %1508 = vst.msk [vmem:[%s2358_s8 + $0x14] sm:$0xf] %vm1502_vm1, %v1722_v36  ;;  %v1725_v55 = vpack.c.bf16 %v1444_v19, %v1444_v19  ;;  %v1400_v17 = vmax.f32 %v1315_v25, %v1366_v39 }
 0x1b8   : > { %v1412_v14 = vmax.f32 %v2456_v26, %v1399_v9  ;;  %v1723_v58 = vpack.c.bf16 %v1442_v2, %v1442_v2  ;;  %v1414_v42 = vmax.f32 %v2457_v23, %v1401_v16 }
 0x1b9   : > { %1511 = vst.msk [vmem:[%s2358_s8 + $0x20] sm:$0xf] %vm1502_vm1, %v1725_v55  ;;  %v1413_v34 = vmax.f32 %v2458_v8, %v1400_v17  ;;  %v1081_v0 = vpop.f32.mrb[76].mxu0 }
 0x1ba   : > { %v1432_v6 = vadd.f32 %v2336_v27, %v1412_v14  ;;  %1509 = vst.msk [vmem:[%s2358_s8 + $0x18] sm:$0xf] %vm1502_vm1, %v1723_v58  ;;  %v1434_v60 = vadd.f32 %v2336_v27, %v1414_v42  ;;  %v1323_v47 = vadd.f32 %v2316_v51, %v1081_v0  ;;  %v1083_v5 = vpop.f32.mrb[77].mxu0  ;;  %v2459_v51 = vmax.f32 %v2262_v4, %v2310_v45 }
 0x1bb   : > { %v1433_v21 = vadd.f32 %v2336_v27, %v1413_v34  ;;  %v1084_v1 = vpop.f32.mrb[78].mxu0 }
 0x1bc   : > { %v1445_v49 = vmax.f32 %v1432_v6, 0.0  ;;  %v1447_v50 = vmax.f32 %v1434_v60, 0.0  ;;  %v1402_v3 = vmax.f32 %v1323_v47, %v1374_v29  ;;  %v1326_v37 = vadd.f32 %v2320_v30, %v1084_v1  ;;  %v1086_v61 = vpop.f32.mrb[79].mxu0  ;;  %v2460_v30 = vld [vmem:[#allocation2_spill] sm:$0xff] }
 0x1bd   : > { %v1446_v15 = vmax.f32 %v1433_v21, 0.0  ;;  %v2462_v33 = vmax.f32 %v2460_v30, %v2461_v12 }
 0x1be   : > { %v1726_v46 = vpack.c.bf16 %v1445_v49, %v1445_v49  ;;  %v1728_v11 = vpack.c.bf16 %v1447_v50, %v1447_v50  ;;  %v1415_v13 = vmax.f32 %v2459_v51, %v1402_v3  ;;  %v1390_v35 = vmax.f32 %v2314_v59, %v1326_v37 }
 0x1bf   : > { %v1727_v48 = vpack.c.bf16 %v1446_v15, %v1446_v15 }
 0x1c0   : > { %1512 = vst.msk [vmem:[%s2358_s8 + $0x24] sm:$0xf] %vm1502_vm1, %v1726_v46  ;;  %1514 = vst.msk [vmem:[%s2358_s8 + $0x2c] sm:$0xf] %vm1502_vm1, %v1728_v11  ;;  %v1435_v62 = vadd.f32 %v2336_v27, %v1415_v13  ;;  %v1403_v54 = vmax.f32 %v2462_v33, %v1390_v35 }
 0x1c1   : > { %1513 = vst.msk [vmem:[%s2358_s8 + $0x28] sm:$0xf] %vm1502_vm1, %v1727_v48 }
 0x1c2   : > { %v1448_v56 = vmax.f32 %v1435_v62, 0.0  ;;  %v1423_v20 = vadd.f32 %v2336_v27, %v1403_v54 }
 0x1c4   : > { %v1729_v4 = vpack.c.bf16 %v1448_v56, %v1448_v56  ;;  %v1436_v45 = vmax.f32 %v1423_v20, 0.0 }
 0x1c6   : > { %1515 = vst.msk [vmem:[%s2358_s8 + $0x30] sm:$0xf] %vm1502_vm1, %v1729_v4  ;;  %v1717_v59 = vpack.c.bf16 %v1436_v45, %v1436_v45 }
 0x1c8   : > { %1503 = vst.msk [vmem:[%s2358_s8] sm:$0xf] %vm1502_vm1, %v1717_v59 }
 0x1c9 PF: > { %s13_s12 = sadd.s32 1, %s1984_s12  }
 0x1ca   : > { %p10_p5 = scmp.ge.s32.totalorder %s13_s12, 4  }
 0x1cc   :  { %12 = sbr.rel (!%p10_p5) target bundleno = 1 (0x1), region = 62 }

// kernel: forward.6
= control target key start
LH: loop header
LB: loop body
LE: loop exit
PB: predicated region body
PF: predicated region fallthrough
CT: control target
= control target key end

     0   :  { %s1175_s12 = smov 0   ;;  %s1329_s0 = inlined_call_operand.vmem [shape: bf16[128,576], index: 0, kind: input, shape index: {}]   ;;  %s1330_s1 = inlined_call_operand.vmem [shape: bf16[576,128], index: 1, kind: input, shape index: {}]   ;;  %s1331_s2 = inlined_call_operand.vmem [shape: f32[1,128], index: 2, kind: input, shape index: {}]   ;;  %s1332_s3 = inlined_call_operand.vmem [shape: bf16[32,128], index: 3, kind: output, shape index: {}]  }
   0x1 LB: > { %s881_s13 = sadd.s32 4294967295, %s1153_s12   ;;  %p885_p0 = scmp.ge.s32.totalorder %s1153_s12, 1  ;;  %s1153_s12 = sphi %s1175_s12, %s13_s12  }
   0x2   : > { %p139_p1 = scmp.lt.s32.totalorder %s1153_s12, 3 }
   0x4   : > { %p140_p2 = pnand %p885_p0, %p139_p1 }
   0x5   : > { %v1083_v0 = vld [vmem:[%s1330_s1 + $0x40] sm:$0xff] (!%p140_p2)   ;;  %v1087_v4 = vld [vmem:[%s1330_s1 + $0x48] sm:$0xff] (!%p140_p2)   ;;  %v1091_v8 = vld [vmem:[%s1330_s1 + $0x50] sm:$0xff] (!%p140_p2)   ;;  %s886_s19 = sshll.u32 (!%p140_p2), %s881_s13, 3  ;;  %vm590_vm0 = vcmask (!%p140_p2), 523264   ;;  %s888_s16 = sshll.u32 (!%p140_p2), %s881_s13, 1 }
   0x6   : > { %143 = sbr.rel (%p140_p2) target bundleno = 300 (0x12c), region = 32  ;;  %v1084_v1 = vld [vmem:[%s1330_s1 + $0xc0] sm:$0xff] (!%p140_p2)   ;;  %962 = vmatprep.subr.bf16.mxu0 (!%p140_p2), %v1083_v0  ;;  %v1088_v5 = vld [vmem:[%s1330_s1 + $0xc8] sm:$0xff] (!%p140_p2)   ;;  %v1092_v9 = vld [vmem:[%s1330_s1 + $0xd0] sm:$0xff] (!%p140_p2)   ;;  %p165_p3 = scmp.lt.s32.totalorder (!%p140_p2), %s886_s19, 15 }
   0x7   : > { %v1085_v2 = vld [vmem:[%s1330_s1] sm:$0xff] (!%p140_p2)   ;;  %1002 = vmatprep.subr.bf16.mxu1 (!%p140_p2), %v1084_v1  ;;  %v1089_v6 = vld [vmem:[%s1330_s1 + $0x8] sm:$0xff] (!%p140_p2)   ;;  %v1093_v10 = vld [vmem:[%s1330_s1 + $0x10] sm:$0xff] (!%p140_p2)   ;;  %p172_p4 = scmp.lt.s32.totalorder (!%p140_p2), %s888_s16, 3 }
   0x8   : > { %v1086_v3 = vld [vmem:[%s1330_s1 + $0x80] sm:$0xff] (!%p140_p2)   ;;  %963 = vmatpush3.bf16.msra.mxu0 (!%p140_p2), %v1085_v2  ;;  %v1090_v7 = vld [vmem:[%s1330_s1 + $0x88] sm:$0xff] (!%p140_p2)   ;;  %v1094_v11 = vld [vmem:[%s1330_s1 + $0x90] sm:$0xff] (!%p140_p2)  }
   0x9   : > { %1003 = vmatpush3.bf16.msra.mxu1 (!%p140_p2), %v1086_v3  ;;  %964 = vmatprep.subr.bf16.mxu0 (!%p140_p2), %v1087_v4  ;;  %v1095_v12 = vld [vmem:[%s1330_s1 + $0x58] sm:$0xff] (!%p140_p2)   ;;  %v1099_v16 = vld [vmem:[%s1330_s1 + $0x60] sm:$0xff] (!%p140_p2)   ;;  %v1103_v20 = vld [vmem:[%s1330_s1 + $0x68] sm:$0xff] (!%p140_p2)  }
   0xa   : > { %1004 = vmatprep.subr.bf16.mxu1 (!%p140_p2), %v1088_v5  ;;  %v1096_v13 = vld [vmem:[%s1330_s1 + $0xd8] sm:$0xff] (!%p140_p2)   ;;  %v1100_v17 = vld [vmem:[%s1330_s1 + $0xe0] sm:$0xff] (!%p140_p2)   ;;  %v1104_v21 = vld [vmem:[%s1330_s1 + $0xe8] sm:$0xff] (!%p140_p2)  }
   0xb   : > { %v1097_v14 = vld [vmem:[%s1330_s1 + $0x18] sm:$0xff] (!%p140_p2)   ;;  %v1101_v18 = vld [vmem:[%s1330_s1 + $0x20] sm:$0xff] (!%p140_p2)   ;;  %v1105_v22 = vld [vmem:[%s1330_s1 + $0x28] sm:$0xff] (!%p140_p2)  }
   0xc   : > { %965 = vmatpush3.bf16.msra.mxu0 (!%p140_p2), %v1089_v6  ;;  %v1098_v15 = vld [vmem:[%s1330_s1 + $0x98] sm:$0xff] (!%p140_p2)   ;;  %v1102_v19 = vld [vmem:[%s1330_s1 + $0xa0] sm:$0xff] (!%p140_p2)   ;;  %v1106_v23 = vld [vmem:[%s1330_s1 + $0xa8] sm:$0xff] (!%p140_p2)  }
   0xd   : > { %1005 = vmatpush3.bf16.msra.mxu1 %v1090_v7  ;;  %966 = vmatprep.subr.bf16.mxu0 %v1091_v8  ;;  %s1334_s19 = smov (!%p165_p3, %s886_s19), 15  ;;  %v1107_v24 = vld [vmem:[%s1330_s1 + $0x70] sm:$0xff]   ;;  %v1111_v28 = vld [vmem:[%s1330_s1 + $0x78] sm:$0xff]   ;;  %v1121_v36 = vld [vmem:[%s1330_s1 + $0x100] sm:$0xff]   ;;  %s1336_s16 = smov (!%p172_p4, %s888_s16), 3 }
   0xe   : > { %1006 = vmatprep.subr.bf16.mxu1 %v1092_v9  ;;  %v1108_v25 = vld [vmem:[%s1330_s1 + $0xf0] sm:$0xff]   ;;  %s1074_s17 = smul.u32 20, %s1334_s19  ;;  %v1112_v29 = vld [vmem:[%s1330_s1 + $0xf8] sm:$0xff]   ;;  %v1128_v39 = vld [vmem:[%s1330_s1 + $0x108] sm:$0xff]   ;;  %s889_s18 = sshll.u32 %s1336_s16, 2 }
   0xf   : > { %v1109_v26 = vld [vmem:[%s1330_s1 + $0x30] sm:$0xff]   ;;  %v1113_v30 = vld [vmem:[%s1330_s1 + $0x38] sm:$0xff]   ;;  %s175_s22 = scalar_lea.vmem %s1332_s3, %s889_s18 }
  0x10   : > { %967 = vmatpush3.bf16.msra.mxu0 %v1093_v10  ;;  %v1110_v27 = vld [vmem:[%s1330_s1 + $0xb0] sm:$0xff]   ;;  %s1278_s28 = scalar_lea.vmem %s1329_s0, %s1074_s17  ;;  %v1114_v31 = vld [vmem:[%s1330_s1 + $0xb8] sm:$0xff]  }
  0x11   : > { %1007 = vmatpush3.bf16.msra.mxu1 %v1094_v11  ;;  %968 = vmatprep.subr.bf16.mxu0 %v1095_v12  ;;  %v1115_v32 = vld [vmem:[%s1278_s28] ss:$20 sps:$4 sm:$0xff]   ;;  %v1117_v33 = vld [vmem:[%s1278_s28 + $0x4] ss:$20 sps:$4 sm:$0xff]   ;;  %v1118_v34 = vld [vmem:[%s1278_s28 + $0x8] ss:$20 sps:$4 sm:$0xff]  }
  0x12   : > { %1008 = vmatprep.subr.bf16.mxu1 %v1096_v13  ;;  %v1120_v35 = vld [vmem:[%s1278_s28 + $0xc] ss:$20 sps:$4 sm:$0xff]   ;;  %635 = vmatprep.mubr.bf16.mxu0 %v1117_v33  ;;  %v1124_v38 = vld [vmem:[%s1278_s28 + $0x34] ss:$20 sps:$4 sm:$0xff]   ;;  %v1127_v41 = vld [vmem:[%s1278_s28 + $0x30] ss:$20 sps:$4 sm:$0xff]  }
  0x13   : > { %700 = vmatprep.mubr.bf16.mxu1 %v1120_v35  ;;  %v1122_v37 = vld [vmem:[%s1278_s28 + $0x2c] ss:$20 sps:$4 sm:$0xff]   ;;  %v1126_v40 = vld [vmem:[%s1278_s28 + $0x28] ss:$20 sps:$4 sm:$0xff]   ;;  %v1135_v44 = vld [vmem:[%s1330_s1 + $0x110] sm:$0xff]  }
  0x14   : > { %969 = vmatpush3.bf16.msra.mxu0 %v1097_v14  ;;  %v1129_v42 = vld [vmem:[%s1278_s28 + $0x54] ss:$20 sps:$4 sm:$0xff]   ;;  %v1131_v43 = vld [vmem:[%s1278_s28 + $0x5c] ss:$20 sps:$4 sm:$0xff]   ;;  %v1134_v47 = vld [vmem:[%s1278_s28 + $0x58] ss:$20 sps:$4 sm:$0xff]  }
  0x15   : > { %1009 = vmatpush3.bf16.msra.mxu1 %v1098_v15  ;;  %970 = vmatprep.subr.bf16.mxu0 %v1099_v16  ;;  %v1142_v45 = vld [vmem:[%s1330_s1 + $0x118] sm:$0xff]   ;;  %v1133_v46 = vld [vmem:[%s1278_s28 + $0x50] ss:$20 sps:$4 sm:$0xff]   ;;  %v1141_v51 = vld [vmem:[%s1278_s28 + $0x80] ss:$20 sps:$4 sm:$0xff]  }
  0x16   : > { %1010 = vmatprep.subr.bf16.mxu1 %v1100_v17  ;;  %v1136_v48 = vld [vmem:[%s1278_s28 + $0x7c] ss:$20 sps:$4 sm:$0xff]   ;;  %v1138_v49 = vld [vmem:[%s1278_s28 + $0x84] ss:$20 sps:$4 sm:$0xff]   ;;  %v1144_v53 = vld [vmem:[%s1278_s28 + $0x60] ss:$20 sps:$4 sm:$0xff]  }
  0x17   : > { %v1140_v50 = vld [vmem:[%s1278_s28 + $0x78] ss:$20 sps:$4 sm:$0xff]   ;;  %v1143_v52 = vld [vmem:[%s1278_s28 + $0x10] ss:$20 sps:$4 sm:$0xff]   ;;  %v1146_v55 = vld [vmem:[%s1278_s28 + $0x88] ss:$20 sps:$4 sm:$0xff]  }
  0x18   : > { %971 = vmatpush3.bf16.msra.mxu0 %v1101_v18  ;;  %v1145_v54 = vld [vmem:[%s1278_s28 + $0x38] ss:$20 sps:$4 sm:$0xff]  }
  0x19   : > { %1011 = vmatpush3.bf16.msra.mxu1 %v1102_v19  ;;  %972 = vmatprep.subr.bf16.mxu0 %v1103_v20 }
  0x1a   : > { %1012 = vmatprep.subr.bf16.mxu1 %v1104_v21 }
  0x1c   : > { %973 = vmatpush3.bf16.msra.mxu0 %v1105_v22 }
  0x1d   : > { %1013 = vmatpush3.bf16.msra.mxu1 %v1106_v23  ;;  %974 = vmatprep.subr.bf16.mxu0 %v1107_v24 }
  0x1e   : > { %1014 = vmatprep.subr.bf16.mxu1 %v1108_v25 }
  0x20   : > { %975 = vmatpush3.bf16.msra.mxu0 %v1109_v26 }
  0x21   : > { %1015 = vmatpush3.bf16.msra.mxu1 %v1110_v27  ;;  %976 = vmatprep.subr.bf16.mxu0 %v1111_v28 }
  0x22   : > { %1016 = vmatprep.subr.bf16.mxu1 %v1112_v29 }
  0x24   : > { %977 = vmatpush3.bf16.msra.mxu0 %v1113_v30 }
  0x25   : > { %1017 = vmatpush3.bf16.msra.mxu1 %v1114_v31  ;;  %1050 = vmatprep.subr.bf16.mxu0 %v1121_v36 }
  0x26   : > { %1066 = vmatprep.subr.bf16.mxu1 %v1121_v36 }
  0x27   : > { %636 = vmatmul.mubr.bf16.vlgmr.msra.gmra.mrb[0].mxu0 %v1115_v32 }
  0x28   : > { %701 = vmatmul.mubr.bf16.vlgmr.msra.gmra.mrb[0].mxu1 %v1118_v34  ;;  %1051 = vmatpush3.bf16.msra.mxu0 %v1121_v36 }
  0x29   : > { %1070 = vmatpush3.bf16.msra.mxu1 %v1121_v36  ;;  %643 = vmatprep.mubr.bf16.mxu0 %v1122_v37 }
  0x2a   : > { %708 = vmatprep.mubr.bf16.mxu1 %v1124_v38  ;;  %1052 = vmatprep.subr.bf16.mxu0 %v1128_v39 }
  0x2b   : > { %1067 = vmatprep.subr.bf16.mxu1 %v1128_v39 }
  0x2c   : > { %1053 = vmatpush3.bf16.msra.mxu0 %v1128_v39 }
  0x2d   : > { %1071 = vmatpush3.bf16.msra.mxu1 %v1128_v39  ;;  %1054 = vmatprep.subr.bf16.mxu0 %v1135_v44 }
  0x2e   : > { %1068 = vmatprep.subr.bf16.mxu1 %v1135_v44 }
  0x2f   : > { %644 = vmatmul.mubr.bf16.gmra.mrb[4].mxu0 %v1126_v40 }
  0x30   : > { %709 = vmatmul.mubr.bf16.gmra.mrb[4].mxu1 %v1127_v41  ;;  %651 = vmatprep.mubr.bf16.mxu0 %v1129_v42 }
  0x31   : > { %716 = vmatprep.mubr.bf16.mxu1 %v1131_v43  ;;  %1055 = vmatpush3.bf16.msra.mxu0 %v1135_v44 }
  0x32   : > { %1072 = vmatpush3.bf16.msra.mxu1 %v1135_v44  ;;  %1056 = vmatprep.subr.bf16.mxu0 %v1142_v45 }
  0x33   : > { %1069 = vmatprep.subr.bf16.mxu1 %v1142_v45 }
  0x35   : > { %1057 = vmatpush3.bf16.msra.mxu0 %v1142_v45 }
  0x36   : > { %1073 = vmatpush3.bf16.msra.mxu1 %v1142_v45 }
  0x37   : > { %652 = vmatmul.mubr.bf16.gmra.mrb[8].mxu0 %v1133_v46 }
  0x38   : > { %717 = vmatmul.mubr.bf16.gmra.mrb[8].mxu1 %v1134_v47  ;;  %659 = vmatprep.mubr.bf16.mxu0 %v1136_v48 }
  0x39   : > { %724 = vmatprep.mubr.bf16.mxu1 %v1138_v49 }
  0x3f   : > { %660 = vmatmul.mubr.bf16.gmra.mrb[12].mxu0 %v1140_v50 }
  0x40   : > { %725 = vmatmul.mubr.bf16.gmra.mrb[12].mxu1 %v1141_v51  ;;  %1058 = vmatprep.mubr.msk.bf16.mxu0 %vm590_vm0, %v1143_v52 }
  0x41   : > { %1062 = vmatprep.mubr.msk.bf16.mxu1 %vm590_vm0, %v1144_v53 }
  0x47   : > { %1059 = vmatmul.mubr.msk.bf16.vlgmr.msra.gmra.mrb[16].mxu0 %vm590_vm0, %v1145_v54 }
  0x48   : > { %1063 = vmatmul.mubr.msk.bf16.vlgmr.msra.gmra.mrb[16].mxu1 %vm590_vm0, %v1146_v55 }
  0xfa   : > { %v978_v56 = vpop.f32.mrb[0].mxu0 }
  0xfb   : > { %v1018_v57 = vpop.f32.mrb[0].mxu1  ;;  %v979_v58 = vpop.f32.mrb[1].mxu0 }
  0xfc   : > { %v980_v59 = vadd.f32 %v979_v58, %v978_v56  ;;  %v1019_v60 = vpop.f32.mrb[1].mxu1  ;;  %v981_v61 = vpop.f32.mrb[2].mxu0 }
  0xfd   : > { %v1020_v62 = vadd.f32 %v1019_v60, %v1018_v57  ;;  %v1021_v63 = vpop.f32.mrb[2].mxu1  ;;  %v982_v0 = vpop.f32.mrb[3].mxu0 }
  0xfe   : > { %v983_v1 = vadd.f32 %v982_v0, %v981_v61  ;;  %v1022_v2 = vpop.f32.mrb[3].mxu1 }
  0xff   : > { %v1023_v3 = vadd.f32 %v1022_v2, %v1021_v63  ;;  %v703_v4 = vadd.f32 %v1020_v62, %v980_v59  ;;  %v950_v2 = vld [vmem:[%s1331_s2] ss:$0 sm:$0xff] }
 0x101   : > { %v706_v5 = vadd.f32 %v1023_v3, %v983_v1 }
 0x102   : > { %v984_v6 = vpop.f32.mrb[4].mxu0 }
 0x103   : > { %v1024_v7 = vpop.f32.mrb[4].mxu1  ;;  %v985_v8 = vpop.f32.mrb[5].mxu0 }
 0x104   : > { %v986_v9 = vadd.f32 %v985_v8, %v984_v6  ;;  %v1025_v10 = vpop.f32.mrb[5].mxu1  ;;  %v987_v11 = vpop.f32.mrb[6].mxu0 }
 0x105   : > { %v1026_v12 = vadd.f32 %v1025_v10, %v1024_v7  ;;  %v1027_v13 = vpop.f32.mrb[6].mxu1  ;;  %v988_v14 = vpop.f32.mrb[7].mxu0 }
 0x106   : > { %v989_v15 = vadd.f32 %v988_v14, %v987_v11  ;;  %v1028_v16 = vpop.f32.mrb[7].mxu1 }
 0x107   : > { %v1029_v17 = vadd.f32 %v1028_v16, %v1027_v13  ;;  %v711_v18 = vadd.f32 %v1026_v12, %v986_v9 }
 0x109   : > { %v714_v19 = vadd.f32 %v1029_v17, %v989_v15 }
 0x10a   : > { %v990_v20 = vpop.f32.mrb[8].mxu0 }
 0x10b   : > { %v1030_v21 = vpop.f32.mrb[8].mxu1  ;;  %v991_v22 = vpop.f32.mrb[9].mxu0 }
 0x10c   : > { %v992_v23 = vadd.f32 %v991_v22, %v990_v20  ;;  %v1031_v24 = vpop.f32.mrb[9].mxu1  ;;  %v993_v25 = vpop.f32.mrb[10].mxu0 }
 0x10d   : > { %v1032_v26 = vadd.f32 %v1031_v24, %v1030_v21  ;;  %v1033_v27 = vpop.f32.mrb[10].mxu1  ;;  %v994_v28 = vpop.f32.mrb[11].mxu0 }
 0x10e   : > { %v995_v29 = vadd.f32 %v994_v28, %v993_v25  ;;  %v1034_v30 = vpop.f32.mrb[11].mxu1 }
 0x10f   : > { %v1035_v31 = vadd.f32 %v1034_v30, %v1033_v27  ;;  %v719_v32 = vadd.f32 %v1032_v26, %v992_v23 }
 0x111   : > { %v722_v33 = vadd.f32 %v1035_v31, %v995_v29 }
 0x112   : > { %v996_v34 = vpop.f32.mrb[12].mxu0 }
 0x113   : > { %v1036_v35 = vpop.f32.mrb[12].mxu1  ;;  %v997_v36 = vpop.f32.mrb[13].mxu0 }
 0x114   : > { %v998_v37 = vadd.f32 %v997_v36, %v996_v34  ;;  %v1037_v38 = vpop.f32.mrb[13].mxu1  ;;  %v999_v39 = vpop.f32.mrb[14].mxu0 }
 0x115   : > { %v1038_v40 = vadd.f32 %v1037_v38, %v1036_v35  ;;  %v1039_v41 = vpop.f32.mrb[14].mxu1  ;;  %v1000_v42 = vpop.f32.mrb[15].mxu0 }
 0x116   : > { %v1001_v43 = vadd.f32 %v1000_v42, %v999_v39  ;;  %v1040_v44 = vpop.f32.mrb[15].mxu1 }
 0x117   : > { %v1041_v45 = vadd.f32 %v1040_v44, %v1039_v41  ;;  %v727_v46 = vadd.f32 %v1038_v40, %v998_v37 }
 0x119   : > { %v730_v47 = vadd.f32 %v1041_v45, %v1001_v43 }
 0x11a   : > { %v1060_v48 = vpop.f32.mrb[16].mxu0 }
 0x11b   : > { %v776_v49 = vadd.f32 %v1060_v48, %v711_v18  ;;  %v1064_v50 = vpop.f32.mrb[16].mxu1  ;;  %v767_v51 = vpop.f32.mrb[17].mxu0 }
 0x11c   : > { %v792_v52 = vadd.f32 %v1064_v50, %v727_v46  ;;  %v768_v53 = vadd.f32 %v767_v51, %v703_v4  ;;  %v783_v54 = vpop.f32.mrb[17].mxu1  ;;  %v1061_v55 = vpop.f32.mrb[18].mxu0 }
 0x11d   : > { %v784_v56 = vadd.f32 %v783_v54, %v719_v32  ;;  %v779_v57 = vadd.f32 %v1061_v55, %v714_v19  ;;  %v1065_v58 = vpop.f32.mrb[18].mxu1  ;;  %v770_v59 = vpop.f32.mrb[19].mxu0 }
 0x11e   : > { %v798_v60 = vmax.f32 %v768_v53, %v776_v49  ;;  %v795_v61 = vadd.f32 %v1065_v58, %v730_v47  ;;  %v771_v62 = vadd.f32 %v770_v59, %v706_v5  ;;  %v786_v63 = vpop.f32.mrb[19].mxu1 }
 0x11f   : > { %v800_v0 = vmax.f32 %v784_v56, %v792_v52  ;;  %v787_v1 = vadd.f32 %v786_v63, %v722_v33 }
 0x120   : > { %v799_v3 = vmax.f32 %v771_v62, %v779_v57 }
 0x121   : > { %v802_v6 = vmax.f32 %v798_v60, %v800_v0  ;;  %v801_v4 = vmax.f32 %v787_v1, %v795_v61 }
 0x123   : > { %v811_v7 = vadd.f32 %v950_v2, %v802_v6  ;;  %v803_v8 = vmax.f32 %v799_v3, %v801_v4 }
 0x125   : > { %v812_v9 = vadd.f32 %v950_v2, %v803_v8  ;;  %v813_v10 = vmax.f32 %v811_v7, 0.0 }
 0x127   : > { %v814_v11 = vmax.f32 %v812_v9, 0.0 }
 0x129   : > { %v960_v5 = vpack.c.bf16 %v814_v11, %v813_v10 }
 0x12b   : > { %961 = vst [vmem:[%s175_s22] sm:$0xff] %v960_v5  }
 0x12c PF: > { %s13_s12 = sadd.s32 1, %s1153_s12  }
 0x12d   : > { %p10_p5 = scmp.ge.s32.totalorder %s13_s12, 4  }
 0x12f   :  { %12 = sbr.rel (!%p10_p5) target bundleno = 1 (0x1), region = 62 }

// kernel: forward.7
= control target key start
LH: loop header
LB: loop body
LE: loop exit
PB: predicated region body
PF: predicated region fallthrough
CT: control target
= control target key end

     0   :  { %vm1393_vm0 = vcmask 80896   ;;  %s2526_s1 = inlined_call_operand.vmem [shape: bf16[1152,256], index: 1, kind: input, shape index: {}]   ;;  %s2527_s0 = inlined_call_operand.vmem [shape: bf16[32,1152], index: 0, kind: input, shape index: {}]   ;;  %s2528_s3 = inlined_call_operand.vmem [shape: f32[256,10], index: 3, kind: input, shape index: {}]   ;;  %s2529_s2 = inlined_call_operand.vmem [shape: f32[1,256], index: 2, kind: input, shape index: {}]   ;;  %s2530_s4 = inlined_call_operand.vmem [shape: f32[1,10], index: 4, kind: input, shape index: {}]   ;;  %s2531_s5 = inlined_call_operand.vmem [shape: f32[8,10], index: 5, kind: output, shape index: {}]  }
   0x1   :  { %v1662_v0 = vld [vmem:[%s2526_s1 + $0x4] ss:$8 sps:$4 sm:$0xff]   ;;  %v1666_v2 = vld [vmem:[%s2526_s1] ss:$8 sps:$4 sm:$0xff]   ;;  %v1668_v4 = vld [vmem:[%s2526_s1 + $0x14] ss:$8 sps:$4 sm:$0xff]  }
   0x2   :  { %v1664_v1 = vld [vmem:[%s2526_s1 + $0x204] ss:$8 sps:$4 sm:$0xff]   ;;  %997 = vmatprep.subr.bf16.mxu1 %v1662_v0  ;;  %v1667_v3 = vld [vmem:[%s2526_s1 + $0x200] ss:$8 sps:$4 sm:$0xff]   ;;  %v1670_v5 = vld [vmem:[%s2526_s1 + $0x214] ss:$8 sps:$4 sm:$0xff]  }
   0x3   :  { %1103 = vmatprep.subr.bf16.mxu0 %v1664_v1  ;;  %998 = vmatpush1.bf16.msra.mxu1 %v1666_v2  ;;  %v1672_v6 = vld [vmem:[%s2526_s1 + $0x10] ss:$8 sps:$4 sm:$0xff]   ;;  %v1674_v8 = vld [vmem:[%s2526_s1 + $0x24] ss:$8 sps:$4 sm:$0xff]   ;;  %v1678_v10 = vld [vmem:[%s2526_s1 + $0x20] ss:$8 sps:$4 sm:$0xff]  }
   0x4   :  { %1104 = vmatpush1.bf16.msra.mxu0 %v1667_v3  ;;  %999 = vmatprep.subr.bf16.mxu1 %v1668_v4  ;;  %v1673_v7 = vld [vmem:[%s2526_s1 + $0x210] ss:$8 sps:$4 sm:$0xff]   ;;  %v1676_v9 = vld [vmem:[%s2526_s1 + $0x224] ss:$8 sps:$4 sm:$0xff]   ;;  %v1679_v11 = vld [vmem:[%s2526_s1 + $0x220] ss:$8 sps:$4 sm:$0xff]  }
   0x5   :  { %1105 = vmatprep.subr.bf16.mxu0 %v1670_v5  ;;  %v1680_v12 = vld [vmem:[%s2526_s1 + $0x34] ss:$8 sps:$4 sm:$0xff]   ;;  %v1684_v14 = vld [vmem:[%s2526_s1 + $0x30] ss:$8 sps:$4 sm:$0xff]   ;;  %v1686_v16 = vld [vmem:[%s2526_s1 + $0x44] ss:$8 sps:$4 sm:$0xff]  }
   0x6   :  { %v1682_v13 = vld [vmem:[%s2526_s1 + $0x234] ss:$8 sps:$4 sm:$0xff]   ;;  %v1685_v15 = vld [vmem:[%s2526_s1 + $0x230] ss:$8 sps:$4 sm:$0xff]   ;;  %v1688_v17 = vld [vmem:[%s2526_s1 + $0x244] ss:$8 sps:$4 sm:$0xff]  }
   0x7   :  { %1000 = vmatpush1.bf16.msra.mxu1 %v1672_v6  ;;  %v1690_v18 = vld [vmem:[%s2526_s1 + $0x40] ss:$8 sps:$4 sm:$0xff]   ;;  %v1692_v20 = vld [vmem:[%s2526_s1 + $0x54] ss:$8 sps:$4 sm:$0xff]   ;;  %v1696_v22 = vld [vmem:[%s2526_s1 + $0x50] ss:$8 sps:$4 sm:$0xff]  }
   0x8   :  { %1106 = vmatpush1.bf16.msra.mxu0 %v1673_v7  ;;  %1001 = vmatprep.subr.bf16.mxu1 %v1674_v8  ;;  %v1691_v19 = vld [vmem:[%s2526_s1 + $0x240] ss:$8 sps:$4 sm:$0xff]   ;;  %v1694_v21 = vld [vmem:[%s2526_s1 + $0x254] ss:$8 sps:$4 sm:$0xff]   ;;  %v1697_v23 = vld [vmem:[%s2526_s1 + $0x250] ss:$8 sps:$4 sm:$0xff]  }
   0x9   :  { %1107 = vmatprep.subr.bf16.mxu0 %v1676_v9  ;;  %v1698_v24 = vld [vmem:[%s2526_s1 + $0x64] ss:$8 sps:$4 sm:$0xff]   ;;  %v1702_v26 = vld [vmem:[%s2526_s1 + $0x60] ss:$8 sps:$4 sm:$0xff]   ;;  %v1704_v28 = vld [vmem:[%s2526_s1 + $0x74] ss:$8 sps:$4 sm:$0xff]  }
   0xa   :  { %v1700_v25 = vld [vmem:[%s2526_s1 + $0x264] ss:$8 sps:$4 sm:$0xff]   ;;  %v1703_v27 = vld [vmem:[%s2526_s1 + $0x260] ss:$8 sps:$4 sm:$0xff]   ;;  %v1706_v29 = vld [vmem:[%s2526_s1 + $0x274] ss:$8 sps:$4 sm:$0xff]  }
   0xb   :  { %1002 = vmatpush1.bf16.msra.mxu1 %v1678_v10  ;;  %v1708_v30 = vld [vmem:[%s2526_s1 + $0x70] ss:$8 sps:$4 sm:$0xff]   ;;  %v1710_v32 = vld [vmem:[%s2526_s1 + $0x84] ss:$8 sps:$4 sm:$0xff]   ;;  %v1714_v34 = vld [vmem:[%s2526_s1 + $0x80] ss:$8 sps:$4 sm:$0xff]  }
   0xc   :  { %1108 = vmatpush1.bf16.msra.mxu0 %v1679_v11  ;;  %1003 = vmatprep.subr.bf16.mxu1 %v1680_v12  ;;  %v1709_v31 = vld [vmem:[%s2526_s1 + $0x270] ss:$8 sps:$4 sm:$0xff]   ;;  %v1712_v33 = vld [vmem:[%s2526_s1 + $0x284] ss:$8 sps:$4 sm:$0xff]   ;;  %v1715_v35 = vld [vmem:[%s2526_s1 + $0x280] ss:$8 sps:$4 sm:$0xff]  }
   0xd   :  { %1109 = vmatprep.subr.bf16.mxu0 %v1682_v13  ;;  %v1716_v36 = vld [vmem:[%s2526_s1 + $0x94] ss:$8 sps:$4 sm:$0xff]   ;;  %v1720_v38 = vld [vmem:[%s2526_s1 + $0x90] ss:$8 sps:$4 sm:$0xff]   ;;  %v1722_v40 = vld [vmem:[%s2526_s1 + $0xa4] ss:$8 sps:$4 sm:$0xff]  }
   0xe   :  { %v1718_v37 = vld [vmem:[%s2526_s1 + $0x294] ss:$8 sps:$4 sm:$0xff]   ;;  %v1721_v39 = vld [vmem:[%s2526_s1 + $0x290] ss:$8 sps:$4 sm:$0xff]   ;;  %v1724_v41 = vld [vmem:[%s2526_s1 + $0x2a4] ss:$8 sps:$4 sm:$0xff]  }
   0xf   :  { %1004 = vmatpush1.bf16.msra.mxu1 %v1684_v14  ;;  %v1726_v42 = vld [vmem:[%s2526_s1 + $0xa0] ss:$8 sps:$4 sm:$0xff]   ;;  %v1728_v44 = vld [vmem:[%s2526_s1 + $0xb4] ss:$8 sps:$4 sm:$0xff]   ;;  %v1732_v46 = vld [vmem:[%s2526_s1 + $0xb0] ss:$8 sps:$4 sm:$0xff]  }
  0x10   :  { %1110 = vmatpush1.bf16.msra.mxu0 %v1685_v15  ;;  %1005 = vmatprep.subr.bf16.mxu1 %v1686_v16  ;;  %v1727_v43 = vld [vmem:[%s2526_s1 + $0x2a0] ss:$8 sps:$4 sm:$0xff]   ;;  %v1730_v45 = vld [vmem:[%s2526_s1 + $0x2b4] ss:$8 sps:$4 sm:$0xff]   ;;  %v1733_v47 = vld [vmem:[%s2526_s1 + $0x2b0] ss:$8 sps:$4 sm:$0xff]  }
  0x11   :  { %1111 = vmatprep.subr.bf16.mxu0 %v1688_v17  ;;  %v1760_v48 = vld [vmem:[%s2527_s0 + $0x4] ss:$36 sps:$4 sm:$0xff]   ;;  %v1766_v51 = vld [vmem:[%s2527_s0 + $0x14] ss:$36 sps:$4 sm:$0xff]  }
  0x12   :  { %v1734_v49 = vld [vmem:[%s2526_s1 + $0xc4] ss:$8 sps:$4 sm:$0xff]   ;;  %1029 = vmatprep.mubr.bf16.mxu1 %v1760_v48  ;;  %v1738_v52 = vld [vmem:[%s2526_s1 + $0xc0] ss:$8 sps:$4 sm:$0xff]   ;;  %v1740_v54 = vld [vmem:[%s2526_s1 + $0xd4] ss:$8 sps:$4 sm:$0xff]   ;;  %1135 = vmatprep.mubr.bf16.mxu0 %v1766_v51 }
  0x13   :  { %1006 = vmatpush1.bf16.msra.mxu1 %v1690_v18  ;;  %v1736_v50 = vld [vmem:[%s2526_s1 + $0x2c4] ss:$8 sps:$4 sm:$0xff]   ;;  %v1739_v53 = vld [vmem:[%s2526_s1 + $0x2c0] ss:$8 sps:$4 sm:$0xff]   ;;  %v1742_v55 = vld [vmem:[%s2526_s1 + $0x2d4] ss:$8 sps:$4 sm:$0xff]  }
  0x14   :  { %1112 = vmatpush1.bf16.msra.mxu0 %v1691_v19  ;;  %1007 = vmatprep.subr.bf16.mxu1 %v1692_v20  ;;  %v1744_v56 = vld [vmem:[%s2526_s1 + $0xd0] ss:$8 sps:$4 sm:$0xff]   ;;  %v1746_v58 = vld [vmem:[%s2526_s1 + $0xe4] ss:$8 sps:$4 sm:$0xff]   ;;  %v1750_v60 = vld [vmem:[%s2526_s1 + $0xe0] ss:$8 sps:$4 sm:$0xff]  }
  0x15   :  { %1113 = vmatprep.subr.bf16.mxu0 %v1694_v21  ;;  %v1745_v57 = vld [vmem:[%s2526_s1 + $0x2d0] ss:$8 sps:$4 sm:$0xff]   ;;  %v1748_v59 = vld [vmem:[%s2526_s1 + $0x2e4] ss:$8 sps:$4 sm:$0xff]   ;;  %v1751_v61 = vld [vmem:[%s2526_s1 + $0x2e0] ss:$8 sps:$4 sm:$0xff]  }
  0x16   :  { %v1752_v62 = vld [vmem:[%s2526_s1 + $0xf4] ss:$8 sps:$4 sm:$0xff]   ;;  %v1756_v0 = vld [vmem:[%s2526_s1 + $0xf0] ss:$8 sps:$4 sm:$0xff]   ;;  %v1763_v2 = vld [vmem:[%s2526_s1 + $0x104] ss:$8 sps:$4 sm:$0xff]  }
  0x17   :  { %1008 = vmatpush1.bf16.msra.mxu1 %v1696_v22  ;;  %v1754_v63 = vld [vmem:[%s2526_s1 + $0x2f4] ss:$8 sps:$4 sm:$0xff]   ;;  %v1757_v1 = vld [vmem:[%s2526_s1 + $0x2f0] ss:$8 sps:$4 sm:$0xff]   ;;  %v1769_v3 = vld [vmem:[%s2526_s1 + $0x304] ss:$8 sps:$4 sm:$0xff]  }
  0x18   :  { %1114 = vmatpush1.bf16.msra.mxu0 %v1697_v23  ;;  %1009 = vmatprep.subr.bf16.mxu1 %v1698_v24  ;;  %v1758_v4 = vld [vmem:[%s2527_s0] ss:$36 sps:$4 sm:$0xff]   ;;  %v1764_v6 = vld [vmem:[%s2527_s0 + $0x10] ss:$36 sps:$4 sm:$0xff]  }
  0x19   :  { %1115 = vmatprep.subr.bf16.mxu0 %v1700_v25  ;;  %v1761_v5 = vld [vmem:[%s2526_s1 + $0x100] ss:$8 sps:$4 sm:$0xff]   ;;  %v1772_v8 = vld [vmem:[%s2526_s1 + $0x114] ss:$8 sps:$4 sm:$0xff]   ;;  %v1770_v10 = vld [vmem:[%s2526_s1 + $0x110] ss:$8 sps:$4 sm:$0xff]  }
  0x1a   :  { %v1767_v7 = vld [vmem:[%s2526_s1 + $0x300] ss:$8 sps:$4 sm:$0xff]   ;;  %v1775_v9 = vld [vmem:[%s2526_s1 + $0x314] ss:$8 sps:$4 sm:$0xff]   ;;  %v1773_v11 = vld [vmem:[%s2526_s1 + $0x310] ss:$8 sps:$4 sm:$0xff]  }
  0x1b   :  { %1010 = vmatpush1.bf16.msra.mxu1 %v1702_v26  ;;  %v1778_v12 = vld [vmem:[%s2526_s1 + $0x124] ss:$8 sps:$4 sm:$0xff]   ;;  %v1776_v14 = vld [vmem:[%s2526_s1 + $0x120] ss:$8 sps:$4 sm:$0xff]   ;;  %v1784_v16 = vld [vmem:[%s2526_s1 + $0x134] ss:$8 sps:$4 sm:$0xff]  }
  0x1c   :  { %1116 = vmatpush1.bf16.msra.mxu0 %v1703_v27  ;;  %1011 = vmatprep.subr.bf16.mxu1 %v1704_v28  ;;  %v1781_v13 = vld [vmem:[%s2526_s1 + $0x324] ss:$8 sps:$4 sm:$0xff]   ;;  %v1779_v15 = vld [vmem:[%s2526_s1 + $0x320] ss:$8 sps:$4 sm:$0xff]   ;;  %v1787_v17 = vld [vmem:[%s2526_s1 + $0x334] ss:$8 sps:$4 sm:$0xff]  }
  0x1d   :  { %1117 = vmatprep.subr.bf16.mxu0 %v1706_v29  ;;  %v1782_v18 = vld [vmem:[%s2526_s1 + $0x130] ss:$8 sps:$4 sm:$0xff]   ;;  %v1790_v20 = vld [vmem:[%s2526_s1 + $0x144] ss:$8 sps:$4 sm:$0xff]   ;;  %v1788_v22 = vld [vmem:[%s2526_s1 + $0x140] ss:$8 sps:$4 sm:$0xff]  }
  0x1e   :  { %v1785_v19 = vld [vmem:[%s2526_s1 + $0x330] ss:$8 sps:$4 sm:$0xff]   ;;  %v1793_v21 = vld [vmem:[%s2526_s1 + $0x344] ss:$8 sps:$4 sm:$0xff]   ;;  %v1791_v23 = vld [vmem:[%s2526_s1 + $0x340] ss:$8 sps:$4 sm:$0xff]  }
  0x1f   :  { %1012 = vmatpush1.bf16.msra.mxu1 %v1708_v30  ;;  %v1796_v24 = vld [vmem:[%s2526_s1 + $0x154] ss:$8 sps:$4 sm:$0xff]   ;;  %v1794_v26 = vld [vmem:[%s2526_s1 + $0x150] ss:$8 sps:$4 sm:$0xff]   ;;  %v1850_v29 = vld [vmem:[%s2527_s0 + $0x48] ss:$36 sps:$4 sm:$0xff]  }
  0x20   :  { %1118 = vmatpush1.bf16.msra.mxu0 %v1709_v31  ;;  %1013 = vmatprep.subr.bf16.mxu1 %v1710_v32  ;;  %v1799_v25 = vld [vmem:[%s2526_s1 + $0x354] ss:$8 sps:$4 sm:$0xff]   ;;  %v1797_v27 = vld [vmem:[%s2526_s1 + $0x350] ss:$8 sps:$4 sm:$0xff]   ;;  %v1802_v30 = vld [vmem:[%s2526_s1 + $0x164] ss:$8 sps:$4 sm:$0xff]  }
  0x21   :  { %1119 = vmatprep.subr.bf16.mxu0 %v1712_v33  ;;  %v1848_v28 = vld [vmem:[%s2527_s0 + $0x4c] ss:$36 sps:$4 sm:$0xff]   ;;  %v1854_v32 = vld [vmem:[%s2527_s0 + $0x5c] ss:$36 sps:$4 sm:$0xff]  }
  0x22   :  { %v1805_v31 = vld [vmem:[%s2526_s1 + $0x364] ss:$8 sps:$4 sm:$0xff]   ;;  %v1800_v33 = vld [vmem:[%s2526_s1 + $0x160] ss:$8 sps:$4 sm:$0xff]   ;;  %v1818_v48 = vld [vmem:[%s2526_s1 + $0x190] ss:$8 sps:$4 sm:$0xff]  }
  0x23   :  { %1014 = vmatpush1.bf16.msra.mxu1 %v1714_v34  ;;  %v1803_v34 = vld [vmem:[%s2526_s1 + $0x360] ss:$8 sps:$4 sm:$0xff]   ;;  %v1829_v51 = vld [vmem:[%s2526_s1 + $0x3a4] ss:$8 sps:$4 sm:$0xff]  }
  0x24   :  { %1120 = vmatpush1.bf16.msra.mxu0 %v1715_v35  ;;  %1015 = vmatprep.subr.bf16.mxu1 %v1716_v36  ;;  %v1859_v35 = vld [vmem:[%s2527_s0 + $0x58] ss:$36 sps:$4 sm:$0xff]  }
  0x25   :  { %1121 = vmatprep.subr.bf16.mxu0 %v1718_v37  ;;  %v1808_v36 = vld [vmem:[%s2526_s1 + $0x174] ss:$8 sps:$4 sm:$0xff]  }
  0x26   :  { %v1811_v37 = vld [vmem:[%s2526_s1 + $0x374] ss:$8 sps:$4 sm:$0xff]  }
  0x27   :  { %1016 = vmatpush1.bf16.msra.mxu1 %v1720_v38  ;;  %v1806_v38 = vld [vmem:[%s2526_s1 + $0x170] ss:$8 sps:$4 sm:$0xff]  }
  0x28   :  { %1122 = vmatpush1.bf16.msra.mxu0 %v1721_v39  ;;  %1017 = vmatprep.subr.bf16.mxu1 %v1722_v40  ;;  %v1809_v39 = vld [vmem:[%s2526_s1 + $0x370] ss:$8 sps:$4 sm:$0xff]   ;;  %v1814_v40 = vld [vmem:[%s2526_s1 + $0x184] ss:$8 sps:$4 sm:$0xff]  }
  0x29   :  { %1123 = vmatprep.subr.bf16.mxu0 %v1724_v41  ;;  %v1868_v41 = vld [vmem:[%s2527_s0 + $0xc] ss:$36 sps:$4 sm:$0xff]  }
  0x2b   :  { %1018 = vmatpush1.bf16.msra.mxu1 %v1726_v42  ;;  %v1817_v42 = vld [vmem:[%s2526_s1 + $0x384] ss:$8 sps:$4 sm:$0xff]  }
  0x2c   :  { %1124 = vmatpush1.bf16.msra.mxu0 %v1727_v43  ;;  %1019 = vmatprep.subr.bf16.mxu1 %v1728_v44  ;;  %v1871_v43 = vld [vmem:[%s2527_s0 + $0x1c] ss:$36 sps:$4 sm:$0xff]  }
  0x2d   :  { %1125 = vmatprep.subr.bf16.mxu0 %v1730_v45  ;;  %v1812_v44 = vld [vmem:[%s2526_s1 + $0x180] ss:$8 sps:$4 sm:$0xff]  }
  0x2e   :  { %v1815_v45 = vld [vmem:[%s2526_s1 + $0x380] ss:$8 sps:$4 sm:$0xff]  }
  0x2f   :  { %1020 = vmatpush1.bf16.msra.mxu1 %v1732_v46  ;;  %v1820_v46 = vld [vmem:[%s2526_s1 + $0x194] ss:$8 sps:$4 sm:$0xff]  }
  0x30   :  { %1126 = vmatpush1.bf16.msra.mxu0 %v1733_v47  ;;  %1021 = vmatprep.subr.bf16.mxu1 %v1734_v49  ;;  %v1823_v47 = vld [vmem:[%s2526_s1 + $0x394] ss:$8 sps:$4 sm:$0xff]   ;;  %v1821_v49 = vld [vmem:[%s2526_s1 + $0x390] ss:$8 sps:$4 sm:$0xff]  }
  0x31   :  { %1127 = vmatprep.subr.bf16.mxu0 %v1736_v50  ;;  %v1826_v50 = vld [vmem:[%s2526_s1 + $0x1a4] ss:$8 sps:$4 sm:$0xff]  }
  0x33   :  { %1022 = vmatpush1.bf16.msra.mxu1 %v1738_v52  ;;  %v1824_v52 = vld [vmem:[%s2526_s1 + $0x1a0] ss:$8 sps:$4 sm:$0xff]  }
  0x34   :  { %1128 = vmatpush1.bf16.msra.mxu0 %v1739_v53  ;;  %1023 = vmatprep.subr.bf16.mxu1 %v1740_v54  ;;  %v1827_v53 = vld [vmem:[%s2526_s1 + $0x3a0] ss:$8 sps:$4 sm:$0xff]   ;;  %v1832_v54 = vld [vmem:[%s2526_s1 + $0x1b4] ss:$8 sps:$4 sm:$0xff]  }
  0x35   :  { %1129 = vmatprep.subr.bf16.mxu0 %v1742_v55  ;;  %v1835_v55 = vld [vmem:[%s2526_s1 + $0x3b4] ss:$8 sps:$4 sm:$0xff]  }
  0x37   :  { %1024 = vmatpush1.bf16.msra.mxu1 %v1744_v56  ;;  %v1830_v56 = vld [vmem:[%s2526_s1 + $0x1b0] ss:$8 sps:$4 sm:$0xff]  }
  0x38   :  { %1130 = vmatpush1.bf16.msra.mxu0 %v1745_v57  ;;  %1025 = vmatprep.subr.bf16.mxu1 %v1746_v58  ;;  %v1833_v57 = vld [vmem:[%s2526_s1 + $0x3b0] ss:$8 sps:$4 sm:$0xff]   ;;  %v1838_v58 = vld [vmem:[%s2526_s1 + $0x1c4] ss:$8 sps:$4 sm:$0xff]  }
  0x39   :  { %1131 = vmatprep.subr.bf16.mxu0 %v1748_v59  ;;  %v1841_v59 = vld [vmem:[%s2526_s1 + $0x3c4] ss:$8 sps:$4 sm:$0xff]  }
  0x3b   :  { %1026 = vmatpush1.bf16.msra.mxu1 %v1750_v60  ;;  %v1836_v60 = vld [vmem:[%s2526_s1 + $0x1c0] ss:$8 sps:$4 sm:$0xff]  }
  0x3c   :  { %1132 = vmatpush1.bf16.msra.mxu0 %v1751_v61  ;;  %1027 = vmatprep.subr.bf16.mxu1 %v1752_v62  ;;  %v1839_v61 = vld [vmem:[%s2526_s1 + $0x3c0] ss:$8 sps:$4 sm:$0xff]   ;;  %v1844_v62 = vld [vmem:[%s2526_s1 + $0x1d4] ss:$8 sps:$4 sm:$0xff]  }
  0x3d   :  { %1133 = vmatprep.subr.bf16.mxu0 %v1754_v63  ;;  %v1847_v63 = vld [vmem:[%s2526_s1 + $0x3d4] ss:$8 sps:$4 sm:$0xff]  }
  0x3f   :  { %1028 = vmatpush1.bf16.msra.mxu1 %v1756_v0  ;;  %v1842_v0 = vld [vmem:[%s2526_s1 + $0x1d0] ss:$8 sps:$4 sm:$0xff]  }
  0x40   :  { %1134 = vmatpush1.bf16.msra.mxu0 %v1757_v1  ;;  %1050 = vmatprep.subr.bf16.mxu1 %v1763_v2  ;;  %v1845_v1 = vld [vmem:[%s2526_s1 + $0x3d0] ss:$8 sps:$4 sm:$0xff]   ;;  %v1853_v2 = vld [vmem:[%s2526_s1 + $0x1e4] ss:$8 sps:$4 sm:$0xff]  }
  0x41   :  { %1156 = vmatprep.subr.bf16.mxu0 %v1769_v3  ;;  %v1858_v3 = vld [vmem:[%s2526_s1 + $0x3e4] ss:$8 sps:$4 sm:$0xff]  }
  0x42   :  { %1030 = vmatmul.mubr.bf16.vlgmr.msra.gmra.mrb[0].mxu1 %v1758_v4  ;;  %v1851_v4 = vld [vmem:[%s2526_s1 + $0x1e0] ss:$8 sps:$4 sm:$0xff]  }
  0x43   :  { %1136 = vmatmul.mubr.bf16.vlgmr.msra.gmra.mrb[0].mxu0 %v1764_v6  ;;  %1051 = vmatpush1.bf16.msra.mxu1 %v1761_v5  ;;  %v1856_v5 = vld [vmem:[%s2526_s1 + $0x3e0] ss:$8 sps:$4 sm:$0xff]   ;;  %v1862_v6 = vld [vmem:[%s2526_s1 + $0x1f4] ss:$8 sps:$4 sm:$0xff]  }
  0x44   :  { %1157 = vmatpush1.bf16.msra.mxu0 %v1767_v7  ;;  %1052 = vmatprep.subr.bf16.mxu1 %v1772_v8  ;;  %v1865_v7 = vld [vmem:[%s2526_s1 + $0x3f4] ss:$8 sps:$4 sm:$0xff]   ;;  %v1860_v8 = vld [vmem:[%s2526_s1 + $0x1f0] ss:$8 sps:$4 sm:$0xff]  }
  0x45   :  { %1158 = vmatprep.subr.bf16.mxu0 %v1775_v9  ;;  %1039 = vmatprep.mubr.bf16.mxu1 %v1848_v28  ;;  %v1863_v9 = vld [vmem:[%s2526_s1 + $0x3f0] ss:$8 sps:$4 sm:$0xff]  }
  0x46   :  { %1145 = vmatprep.mubr.bf16.mxu0 %v1854_v32  ;;  %v1889_v28 = vld [vmem:[%s2526_s1 + $0x450] ss:$8 sps:$4 sm:$0xff]  }
  0x47   :  { %1053 = vmatpush1.bf16.msra.mxu1 %v1770_v10  ;;  %v1874_v10 = vld [vmem:[%s2526_s1 + $0x404] ss:$8 sps:$4 sm:$0xff]   ;;  %v1899_v32 = vld [vmem:[%s2526_s1 + $0x470] ss:$8 sps:$4 sm:$0xff]  }
  0x48   :  { %1159 = vmatpush1.bf16.msra.mxu0 %v1773_v11  ;;  %1054 = vmatprep.subr.bf16.mxu1 %v1778_v12  ;;  %v1866_v11 = vld [vmem:[%s2527_s0 + $0x8] ss:$36 sps:$4 sm:$0xff]   ;;  %v1869_v12 = vld [vmem:[%s2527_s0 + $0x18] ss:$36 sps:$4 sm:$0xff]  }
  0x49   :  { %1160 = vmatprep.subr.bf16.mxu0 %v1781_v13  ;;  %v1872_v13 = vld [vmem:[%s2526_s1 + $0x400] ss:$8 sps:$4 sm:$0xff]  }
  0x4a   :  { %1040 = vmatmul.mubr.bf16.gmra.mrb[4].mxu1 %v1850_v29  ;;  %v1898_v29 = vld [vmem:[%s2526_s1 + $0x464] ss:$8 sps:$4 sm:$0xff]  }
  0x4b   :  { %1055 = vmatpush1.bf16.msra.mxu1 %v1776_v14  ;;  %1146 = vmatmul.mubr.bf16.gmra.mrb[4].mxu0 %v1859_v35  ;;  %v1887_v14 = vld [vmem:[%s2527_s0 + $0x54] ss:$36 sps:$4 sm:$0xff]   ;;  %v1300_v35 = vld [vmem:[%s2528_s3 + $0x80] sm:$0xff] }
  0x4c   :  { %1161 = vmatpush1.bf16.msra.mxu0 %v1779_v15  ;;  %1056 = vmatprep.subr.bf16.mxu1 %v1784_v16  ;;  %v1877_v15 = vld [vmem:[%s2526_s1 + $0x414] ss:$8 sps:$4 sm:$0xff]   ;;  %v1893_v16 = vld [vmem:[%s2527_s0 + $0x64] ss:$36 sps:$4 sm:$0xff]  }
  0x4d   :  { %1162 = vmatprep.subr.bf16.mxu0 %v1787_v17  ;;  %1082 = vmatprep.mubr.bf16.mxu1 %v1868_v41  ;;  %v1875_v17 = vld [vmem:[%s2526_s1 + $0x410] ss:$8 sps:$4 sm:$0xff]  }
  0x4e   :  { %1188 = vmatprep.mubr.bf16.mxu0 %v1871_v43  ;;  %v1303_v41 = vld [vmem:[%s2528_s3 + $0x98] sm:$0xff] }
  0x4f   :  { %1057 = vmatpush1.bf16.msra.mxu1 %v1782_v18  ;;  %v1880_v18 = vld [vmem:[%s2526_s1 + $0x424] ss:$8 sps:$4 sm:$0xff]  }
  0x50   :  { %1163 = vmatpush1.bf16.msra.mxu0 %v1785_v19  ;;  %1058 = vmatprep.subr.bf16.mxu1 %v1790_v20  ;;  %v1892_v19 = vld [vmem:[%s2527_s0 + $0x50] ss:$36 sps:$4 sm:$0xff]   ;;  %v1895_v20 = vld [vmem:[%s2527_s0 + $0x60] ss:$36 sps:$4 sm:$0xff]  }
  0x51   :  { %1164 = vmatprep.subr.bf16.mxu0 %v1793_v21  ;;  %v1878_v21 = vld [vmem:[%s2526_s1 + $0x420] ss:$8 sps:$4 sm:$0xff]  }
  0x53   :  { %1059 = vmatpush1.bf16.msra.mxu1 %v1788_v22  ;;  %v1883_v22 = vld [vmem:[%s2526_s1 + $0x434] ss:$8 sps:$4 sm:$0xff]  }
  0x54   :  { %1165 = vmatpush1.bf16.msra.mxu0 %v1791_v23  ;;  %1060 = vmatprep.subr.bf16.mxu1 %v1796_v24  ;;  %v1881_v23 = vld [vmem:[%s2526_s1 + $0x430] ss:$8 sps:$4 sm:$0xff]   ;;  %v1904_v24 = vmov 0  }
  0x55   :  { %1166 = vmatprep.subr.bf16.mxu0 %v1799_v25  ;;  %v1886_v25 = vld [vmem:[%s2526_s1 + $0x444] ss:$8 sps:$4 sm:$0xff]  }
  0x57   :  { %1061 = vmatpush1.bf16.msra.mxu1 %v1794_v26  ;;  %v1884_v26 = vld [vmem:[%s2526_s1 + $0x440] ss:$8 sps:$4 sm:$0xff]  }
  0x58   :  { %1167 = vmatpush1.bf16.msra.mxu0 %v1797_v27  ;;  %1062 = vmatprep.subr.bf16.mxu1 %v1802_v30  ;;  %v1891_v27 = vld [vmem:[%s2526_s1 + $0x454] ss:$8 sps:$4 sm:$0xff]   ;;  %v1896_v30 = vld [vmem:[%s2526_s1 + $0x460] ss:$8 sps:$4 sm:$0xff]  }
  0x59   :  { %1168 = vmatprep.subr.bf16.mxu0 %v1805_v31  ;;  %v1901_v31 = vld [vmem:[%s2526_s1 + $0x474] ss:$8 sps:$4 sm:$0xff]  }
  0x5b   :  { %1063 = vmatpush1.bf16.msra.mxu1 %v1800_v33  ;;  %v1902_v33 = vld [vmem:[%s2527_s0 + $0x20] ss:$36 sps:$4 sm:$0xff]  }
  0x5c   :  { %1169 = vmatpush1.bf16.msra.mxu0 %v1803_v34  ;;  %1064 = vmatprep.subr.bf16.mxu1 %v1808_v36  ;;  %v1903_v34 = vld [vmem:[%s2527_s0 + $0x68] ss:$36 sps:$4 sm:$0xff]  }
  0x5d   :  { %1170 = vmatprep.subr.bf16.mxu0 %v1811_v37  ;;  %v1301_v36 = vld [vmem:[%s2528_s3 + $0x88] sm:$0xff]  ;;  %v1284_v37 = vld [vmem:[%s2528_s3] sm:$0xff] }
  0x5f   :  { %1065 = vmatpush1.bf16.msra.mxu1 %v1806_v38  ;;  %v1597_v38 = vpack.c.bf16 %v1301_v36, %v1300_v35 }
  0x60   :  { %1171 = vmatpush1.bf16.msra.mxu0 %v1809_v39  ;;  %1066 = vmatprep.subr.bf16.mxu1 %v1814_v40  ;;  %v1285_v39 = vld [vmem:[%s2528_s3 + $0x8] sm:$0xff]  ;;  %v1302_v40 = vld [vmem:[%s2528_s3 + $0x90] sm:$0xff] }
  0x61   :  { %1172 = vmatprep.subr.bf16.mxu0 %v1817_v42  ;;  %v1599_v42 = vpack.c.bf16 %v1285_v39, %v1284_v37  ;;  %v1601_v43 = vpack.c.bf16 %v1303_v41, %v1302_v40 }
  0x63   :  { %1067 = vmatpush1.bf16.msra.mxu1 %v1812_v44  ;;  %v1286_v44 = vld [vmem:[%s2528_s3 + $0x10] sm:$0xff] }
  0x64   :  { %1173 = vmatpush1.bf16.msra.mxu0 %v1815_v45  ;;  %1068 = vmatprep.subr.bf16.mxu1 %v1820_v46  ;;  %v1287_v45 = vld [vmem:[%s2528_s3 + $0x18] sm:$0xff]  ;;  %v1304_v46 = vld [vmem:[%s2528_s3 + $0xa0] sm:$0xff] }
  0x65   :  { %1174 = vmatprep.subr.bf16.mxu0 %v1823_v47  ;;  %v1305_v47 = vld [vmem:[%s2528_s3 + $0xa8] sm:$0xff] }
  0x67   :  { %1069 = vmatpush1.bf16.msra.mxu1 %v1818_v48  ;;  %v1603_v48 = vpack.c.bf16 %v1287_v45, %v1286_v44  ;;  %v1268_v45 = vld [vmem:[%s2529_s2] sm:$0x3] }
  0x68   :  { %1175 = vmatpush1.bf16.msra.mxu0 %v1821_v49  ;;  %1070 = vmatprep.subr.bf16.mxu1 %v1826_v50  ;;  %v1605_v49 = vpack.c.bf16 %v1305_v47, %v1304_v46  ;;  %v1288_v50 = vld [vmem:[%s2528_s3 + $0x20] sm:$0xff] }
  0x69   :  { %1176 = vmatprep.subr.bf16.mxu0 %v1829_v51  ;;  %v1289_v51 = vld [vmem:[%s2528_s3 + $0x28] sm:$0xff] }
  0x6b   :  { %1071 = vmatpush1.bf16.msra.mxu1 %v1824_v52  ;;  %v1607_v52 = vpack.c.bf16 %v1289_v51, %v1288_v50 }
  0x6c   :  { %1177 = vmatpush1.bf16.msra.mxu0 %v1827_v53  ;;  %1072 = vmatprep.subr.bf16.mxu1 %v1832_v54  ;;  %v1306_v53 = vld [vmem:[%s2528_s3 + $0xb0] sm:$0xff]  ;;  %v1307_v54 = vld [vmem:[%s2528_s3 + $0xb8] sm:$0xff] }
  0x6d   :  { %1178 = vmatprep.subr.bf16.mxu0 %v1835_v55  ;;  %v1609_v55 = vpack.c.bf16 %v1307_v54, %v1306_v53 }
  0x6f   :  { %1073 = vmatpush1.bf16.msra.mxu1 %v1830_v56  ;;  %v1290_v56 = vld [vmem:[%s2528_s3 + $0x30] sm:$0xff] }
  0x70   :  { %1179 = vmatpush1.bf16.msra.mxu0 %v1833_v57  ;;  %1074 = vmatprep.subr.bf16.mxu1 %v1838_v58  ;;  %v1291_v57 = vld [vmem:[%s2528_s3 + $0x38] sm:$0xff] }
  0x71   :  { %1180 = vmatprep.subr.bf16.mxu0 %v1841_v59  ;;  %v1611_v58 = vpack.c.bf16 %v1291_v57, %v1290_v56  ;;  %v1308_v59 = vld [vmem:[%s2528_s3 + $0xc0] sm:$0xff] }
  0x73   :  { %1075 = vmatpush1.bf16.msra.mxu1 %v1836_v60  ;;  %v1309_v60 = vld [vmem:[%s2528_s3 + $0xc8] sm:$0xff] }
  0x74   :  { %1181 = vmatpush1.bf16.msra.mxu0 %v1839_v61  ;;  %1076 = vmatprep.subr.bf16.mxu1 %v1844_v62  ;;  %v1613_v61 = vpack.c.bf16 %v1309_v60, %v1308_v59  ;;  %v1292_v62 = vld [vmem:[%s2528_s3 + $0x40] sm:$0xff] }
  0x75   :  { %1182 = vmatprep.subr.bf16.mxu0 %v1847_v63  ;;  %v1293_v63 = vld [vmem:[%s2528_s3 + $0x48] sm:$0xff] }
  0x77   :  { %1077 = vmatpush1.bf16.msra.mxu1 %v1842_v0  ;;  %v1615_v0 = vpack.c.bf16 %v1293_v63, %v1292_v62 }
  0x78   :  { %1183 = vmatpush1.bf16.msra.mxu0 %v1845_v1  ;;  %1078 = vmatprep.subr.bf16.mxu1 %v1853_v2  ;;  %v1310_v1 = vld [vmem:[%s2528_s3 + $0xd0] sm:$0xff]  ;;  %v1311_v2 = vld [vmem:[%s2528_s3 + $0xd8] sm:$0xff] }
  0x79   :  { %1184 = vmatprep.subr.bf16.mxu0 %v1858_v3  ;;  %v1617_v3 = vpack.c.bf16 %v1311_v2, %v1310_v1 }
  0x7b   :  { %1079 = vmatpush1.bf16.msra.mxu1 %v1851_v4  ;;  %v1294_v4 = vld [vmem:[%s2528_s3 + $0x50] sm:$0xff] }
  0x7c   :  { %1185 = vmatpush1.bf16.msra.mxu0 %v1856_v5  ;;  %1080 = vmatprep.subr.bf16.mxu1 %v1862_v6  ;;  %v1295_v5 = vld [vmem:[%s2528_s3 + $0x58] sm:$0xff] }
  0x7d   :  { %1186 = vmatprep.subr.bf16.mxu0 %v1865_v7  ;;  %v1619_v6 = vpack.c.bf16 %v1295_v5, %v1294_v4  ;;  %v1312_v7 = vld [vmem:[%s2528_s3 + $0xe0] sm:$0xff] }
  0x7f   :  { %1081 = vmatpush1.bf16.msra.mxu1 %v1860_v8  ;;  %v1313_v8 = vld [vmem:[%s2528_s3 + $0xe8] sm:$0xff] }
  0x80   :  { %1187 = vmatpush1.bf16.msra.mxu0 %v1863_v9  ;;  %1598 = vmatprep.subr.bf16.mxu1 %v1597_v38  ;;  %v1621_v9 = vpack.c.bf16 %v1313_v8, %v1312_v7 }
  0x81   :  { %1209 = vmatprep.subr.bf16.mxu0 %v1874_v10  ;;  %v1296_v10 = vld [vmem:[%s2528_s3 + $0x60] sm:$0xff] }
  0x82   :  { %1083 = vmatmul.mubr.bf16.vlgmr.msra.gmra.mrb[0].mxu1 %v1866_v11  ;;  %v1297_v11 = vld [vmem:[%s2528_s3 + $0x68] sm:$0xff] }
  0x83   :  { %1189 = vmatmul.mubr.bf16.vlgmr.msra.gmra.mrb[0].mxu0 %v1869_v12  ;;  %1092 = vmatprep.mubr.bf16.mxu1 %v1887_v14  ;;  %v1623_v12 = vpack.c.bf16 %v1297_v11, %v1296_v10  ;;  %v1315_v14 = vld [vmem:[%s2528_s3 + $0xf8] sm:$0xff] }
  0x84   :  { %1210 = vmatpush1.bf16.msra.mxu0 %v1872_v13  ;;  %1198 = vmatprep.mubr.bf16.mxu0 %v1893_v16  ;;  %v1314_v13 = vld [vmem:[%s2528_s3 + $0xf0] sm:$0xff] }
  0x85   :  { %1211 = vmatprep.subr.bf16.mxu0 %v1877_v15  ;;  %1600 = vmatpush3.bf16.msra.mxu1 %v1599_v42  ;;  %v1625_v15 = vpack.c.bf16 %v1315_v14, %v1314_v13  ;;  %v1298_v16 = vld [vmem:[%s2528_s3 + $0x70] sm:$0xff] }
  0x86   :  { %1602 = vmatprep.subr.bf16.mxu1 %v1601_v43 }
  0x88   :  { %1212 = vmatpush1.bf16.msra.mxu0 %v1875_v17  ;;  %v1299_v17 = vld [vmem:[%s2528_s3 + $0x78] sm:$0xff] }
  0x89   :  { %1213 = vmatprep.subr.bf16.mxu0 %v1880_v18  ;;  %1604 = vmatpush3.bf16.msra.mxu1 %v1603_v48  ;;  %v1627_v18 = vpack.c.bf16 %v1299_v17, %v1298_v16 }
  0x8a   :  { %1093 = vmatmul.mubr.bf16.gmra.mrb[4].mxu1 %v1892_v19  ;;  %1606 = vmatprep.subr.bf16.mxu1 %v1605_v49 }
  0x8b   :  { %1199 = vmatmul.mubr.bf16.gmra.mrb[4].mxu0 %v1895_v20 }
  0x8c   :  { %1214 = vmatpush1.bf16.msra.mxu0 %v1878_v21  ;;  %1241 = vmatprep.mubr.bf16.mxu0 %v1904_v24 }
  0x8d   :  { %1215 = vmatprep.subr.bf16.mxu0 %v1883_v22  ;;  %1608 = vmatpush3.bf16.msra.mxu1 %v1607_v52 }
  0x8e   :  { %1610 = vmatprep.subr.bf16.mxu1 %v1609_v55 }
  0x90   :  { %1216 = vmatpush1.bf16.msra.mxu0 %v1881_v23 }
  0x91   :  { %1217 = vmatprep.subr.bf16.mxu0 %v1886_v25  ;;  %1612 = vmatpush3.bf16.msra.mxu1 %v1611_v58 }
  0x92   :  { %1614 = vmatprep.subr.bf16.mxu1 %v1613_v61  ;;  %v1561_v61 = vld [vmem:[%s2530_s4] ss:$0 sm:$0xff] }
  0x94   :  { %1218 = vmatpush1.bf16.msra.mxu0 %v1884_v26 }
  0x95   :  { %1219 = vmatprep.subr.bf16.mxu0 %v1891_v27  ;;  %1616 = vmatpush3.bf16.msra.mxu1 %v1615_v0 }
  0x96   :  { %1618 = vmatprep.subr.bf16.mxu1 %v1617_v3 }
  0x98   :  { %1220 = vmatpush1.bf16.msra.mxu0 %v1889_v28 }
  0x99   :  { %1221 = vmatprep.subr.bf16.mxu0 %v1898_v29  ;;  %1620 = vmatpush3.bf16.msra.mxu1 %v1619_v6 }
  0x9a   :  { %1622 = vmatprep.subr.bf16.mxu1 %v1621_v9 }
  0x9c   :  { %1222 = vmatpush1.bf16.msra.mxu0 %v1896_v30  ;;  %v1270_v30 = vlaneseq }
  0x9d   :  { %1223 = vmatprep.subr.bf16.mxu0 %v1901_v31  ;;  %1624 = vmatpush3.bf16.msra.mxu1 %v1623_v12 }
  0x9e   :  { %1626 = vmatprep.subr.bf16.mxu1 %v1625_v15  ;;  %v1271_v37 = vshrl.u32 %v1270_v30, 7 }
  0xa0   :  { %1224 = vmatpush1.bf16.msra.mxu0 %v1899_v32  ;;  %v1272_v42 = vsub.s32 0, %v1271_v37  ;;  %v1276_v46 = vsub.s32 1, %v1271_v37 }
  0xa1   :  { %1628 = vmatpush3.bf16.msra.mxu1 %v1627_v18 }
  0xa2   :  { %v1273_v51 = vrot.slane %v1268_v45, %v1272_v42  ;;  %v1277_v53 = vrot.slane %v1268_v45, %v1276_v46 }
  0xa3   :  { %1242 = vmatmul.mubr.bf16.vlgmr.msra.gmra.mrb[0].mxu0 %v1902_v33 }
  0xa4   :  { %1251 = vmatprep.mubr.bf16.mxu0 %v1904_v24 }
  0xab   :  { %1252 = vmatmul.mubr.bf16.gmra.mrb[4].mxu0 %v1903_v34 }
 0x155   :  { %v1084_v19 = vpop.f32.mrb[0].mxu1 }
 0x156   :  { %v1086_v20 = vpop.f32.mrb[1].mxu1 }
 0x157   :  { %v1088_v21 = vpop.f32.mrb[2].mxu1 }
 0x158   :  { %v1090_v22 = vpop.f32.mrb[3].mxu1 }
 0x15d   :  { %v1094_v23 = vpop.f32.mrb[4].mxu1 }
 0x15e   :  { %v1096_v24 = vpop.f32.mrb[5].mxu1 }
 0x15f   :  { %v1098_v25 = vpop.f32.mrb[6].mxu1 }
 0x160   :  { %v1100_v26 = vpop.f32.mrb[7].mxu1 }
 0x176   :  { %v1243_v27 = vpop.f32.mrb[0].mxu0 }
 0x177   :  { %v1629_v28 = vadd.f32 %v1243_v27, %v1084_v19  ;;  %v1245_v29 = vpop.f32.mrb[1].mxu0 }
 0x178   :  { %v1630_v31 = vadd.f32 %v1245_v29, %v1086_v20  ;;  %v1247_v32 = vpop.f32.mrb[2].mxu0 }
 0x179   :  { %v1631_v33 = vadd.f32 %v1247_v32, %v1088_v21  ;;  %v1249_v34 = vpop.f32.mrb[3].mxu0 }
 0x17a   :  { %v1632_v35 = vadd.f32 %v1249_v34, %v1090_v22 }
 0x17b   :  { %v1262_v36 = vmax.f32 %v1629_v28, %v1631_v33 }
 0x17c   :  { %v1263_v38 = vmax.f32 %v1630_v31, %v1632_v35 }
 0x17e   :  { %v1253_v39 = vpop.f32.mrb[4].mxu0 }
 0x17f   :  { %v1633_v40 = vadd.f32 %v1253_v39, %v1094_v23  ;;  %v1255_v41 = vpop.f32.mrb[5].mxu0 }
 0x180   :  { %v1634_v43 = vadd.f32 %v1255_v41, %v1096_v24  ;;  %v1257_v44 = vpop.f32.mrb[6].mxu0 }
 0x181   :  { %v1635_v47 = vadd.f32 %v1257_v44, %v1098_v25  ;;  %v1259_v48 = vpop.f32.mrb[7].mxu0 }
 0x182   :  { %v1636_v49 = vadd.f32 %v1259_v48, %v1100_v26 }
 0x183   :  { %v1264_v50 = vmax.f32 %v1633_v40, %v1635_v47 }
 0x184   :  { %v1265_v52 = vmax.f32 %v1634_v43, %v1636_v49 }
 0x185   :  { %v1266_v54 = vmax.f32 %v1262_v36, %v1264_v50 }
 0x186   :  { %v1267_v55 = vmax.f32 %v1263_v38, %v1265_v52 }
 0x187   :  { %v1280_v56 = vadd.f32 %v1273_v51, %v1266_v54 }
 0x188   :  { %v1281_v57 = vadd.f32 %v1277_v53, %v1267_v55 }
 0x189   :  { %v1282_v59 = vmax.f32 %v1280_v56, 0.0 }
 0x18a   :  { %v1283_v58 = vmax.f32 %v1281_v57, 0.0 }
 0x18c   :  { %1387 = vmatprep.mubr.f32.mxu1 %v1283_v58 }
 0x18d   :  { %1388 = vmatmul.mubr.f32.vlgmr.msra.gmra.mrb[8].mxu1 %v1282_v59 }
 0x260   :  { %v1594_v60 = vpop.f32.mrb[8].mxu1 }
 0x261   :  { %v1595_v62 = vpop.f32.mrb[9].mxu1 }
 0x262   :  { %v1596_v63 = vadd.f32 %v1595_v62, %v1594_v60 }
 0x264   :  { %v1390_v0 = vadd.f32 %v1596_v63, %v1561_v61 }
 0x266   :  { %1394 = vst.msk [vmem:[%s2531_s5] sm:$0xff] %vm1393_vm0, %v1390_v0 }

</bundles_post_ra>
